<compile_context>
chip_gen: v7x
topology: tpu7x:2x2x1
jax: 0.10.0
libtpu: 0.0.40
codegen_flags: <defaults>
</compile_context>

<pallas_src>
import numpy as np
import jax
import jax.numpy as jnp
from jax.experimental import pallas as pl
from jax.experimental.pallas import tpu as pltpu

NUM_CLASSES = 4
H_IN = 16            # input spatial size, 1 channel
K = 3                # conv kernel size
C1, C2 = 6, 16       # conv output channels
H1 = H_IN - K + 1    # 14 : conv1 output spatial
P1 = H1 // 2         # 7  : pool1 output spatial
H2 = P1 - K + 1      # 5  : conv2 output spatial
P2 = H2 // 2         # 2  : pool2 output spatial
FC1, FC2 = 128, 64   # MLP hidden sizes
FLAT = C2 * P2 * P2  # 64 : flattened feature size
LANES = 128          # lane-dense padded width
NEG_PAD = -1e30      # bias for padded logit lanes (vanishes in softmax)
BLOCK_B = 8          # images per grid step (tunable; keep a multiple of 8)

# ---- packed constant-buffer row layout (all offsets 8-aligned) --------------
_W1T = 0                       # K blocks of H_IN rows, lanes H1*C1 (84)
_B1 = _W1T + K * H_IN          # 48  : 1 row, lanes 84
_SA1 = _B1 + 8                 # 56  : 84 rows, lanes 42
_SB1 = _SA1 + 88               # 144 : 84 rows, lanes 42
_RA1 = _SB1 + 88               # 232 : 7 rows, lanes 14
_RB1 = _RA1 + 8                # 240 : 7 rows, lanes 14
_W2T = _RB1 + 8                # 248 : K blocks of stride 48 (42 used), lanes 80
_B2 = _W2T + K * 48            # 392 : 1 row, lanes 80
_SA2 = _B2 + 8                 # 400 : 80 rows, lanes 32
_SB2 = _SA2 + 80               # 480 : 80 rows, lanes 32
_W1F = _SB2 + 80               # 560 : 64 rows, lanes 128
_FB1 = _W1F + FLAT             # 624 : 1 row, lanes 128
_W2F = _FB1 + 8                # 632 : 128 rows, lanes 64
_FB2 = _W2F + FC1              # 760 : 1 row, lanes 64
_W3F = _FB2 + 8                # 768 : 64 rows, lanes 128 (zero-padded)
_FB3 = _W3F + FC2              # 832 : 1 row, lanes 128 (pad lanes = NEG_PAD)
_CROWS = _FB3 + 8              # 840 total rows


def _dot(a, b):
    return jnp.dot(a, b, preferred_element_type=jnp.float32)


# ------------------------------ fused kernel --------------------------------

def _fused_net_kernel(x_ref, c_ref, o_ref, feat_ref):
    # Constant slices (static -> cheap); loaded once per grid step.
    w1t = tuple(c_ref[_W1T + kh * H_IN:_W1T + kh * H_IN + H_IN, :H1 * C1]
                for kh in range(K))
    b1 = c_ref[_B1:_B1 + 1, :H1 * C1]
    sa1 = c_ref[_SA1:_SA1 + H1 * C1, :P1 * C1]
    sb1 = c_ref[_SB1:_SB1 + H1 * C1, :P1 * C1]
    ra1 = c_ref[_RA1:_RA1 + P1, :H1]
    rb1 = c_ref[_RB1:_RB1 + P1, :H1]
    w2t = tuple(c_ref[_W2T + kh * 48:_W2T + kh * 48 + P1 * C1, :H2 * C2]
                for kh in range(K))
    b2 = c_ref[_B2:_B2 + 1, :H2 * C2]
    sa2 = c_ref[_SA2:_SA2 + H2 * C2, :P2 * C2]
    sb2 = c_ref[_SB2:_SB2 + H2 * C2, :P2 * C2]
    w1f = c_ref[_W1F:_W1F + FLAT, :FC1]
    fb1 = c_ref[_FB1:_FB1 + 1, :FC1]
    w2f = c_ref[_W2F:_W2F + FC1, :FC2]
    fb2 = c_ref[_FB2:_FB2 + 1, :FC2]
    w3f = c_ref[_W3F:_W3F + FC2, :LANES]
    fb3 = c_ref[_FB3:_FB3 + 1, :LANES]

    bt = x_ref.shape[0]
    for b in range(bt):                                        # unrolled
        x = x_ref[b]                                           # (16, 16)

        # conv1 + bias + ReLU : rows = ho (14), lanes = wo*C1 + co (84)
        acc1 = _dot(x[0:H1, :], w1t[0])
        for kh in range(1, K):
            acc1 = acc1 + _dot(x[kh:kh + H1, :], w1t[kh])
        c1 = jnp.maximum(acc1 + b1, 0.0)

        # maxpool1 2x2 -> (7, 42): lane-pair max via selectors, then row pairs.
        t1 = jnp.maximum(_dot(c1, sa1), _dot(c1, sb1))
        p1 = jnp.maximum(_dot(ra1, t1), _dot(rb1, t1))

        # conv2 + bias + ReLU : rows = ho (5), lanes = wo*C2 + co (80)
        acc2 = _dot(p1[0:H2, :], w2t[0])
        for kh in range(1, K):
            acc2 = acc2 + _dot(p1[kh:kh + H2, :], w2t[kh])
        c2 = jnp.maximum(acc2 + b2, 0.0)

        # maxpool2: W pairs via selectors -> (5, 32), then H pairs by slicing.
        t2 = jnp.maximum(_dot(c2, sa2), _dot(c2, sb2))
        r0 = jnp.maximum(t2[0:1, :], t2[1:2, :])               # pooled h=0
        r1 = jnp.maximum(t2[2:3, :], t2[3:4, :])               # pooled h=1
        feat_ref[b:b + 1, :] = jnp.concatenate([r0, r1], axis=-1)  # (1, 64)

    # Batched FC stack over the whole block.
    feats = feat_ref[...]                                      # (Bt, 64)
    h = jnp.maximum(_dot(feats, w1f) + fb1, 0.0)               # (Bt, 128)
    h = jnp.maximum(_dot(h, w2f) + fb2, 0.0)                   # (Bt, 64)
    logits = _dot(h, w3f) + fb3                                # (Bt, 128)
    # log_softmax; padded lanes carry ~-1e30 so exp() underflows to 0 exactly.
    m = jnp.max(logits, axis=-1, keepdims=True)
    z = logits - m
    lse = jnp.log(jnp.sum(jnp.exp(z), axis=-1, keepdims=True))
    o_ref[...] = z - lse                                       # lane-dense store


# ----------------------------- forward wrapper -------------------------------

def forward(x_nchw, packed, block_b=BLOCK_B):
    """x_nchw: (B, 1, 16, 16) float32 (PyTorch layout) -> (B, NUM_CLASSES)."""
    B = x_nchw.shape[0]
    x = x_nchw[:, 0, :, :].astype(jnp.float32)                 # (B, 16, 16)

    bt = block_b
    g = -(-B // bt)                                            # cdiv
    Bp = g * bt
    if Bp != B:
        x = jnp.pad(x, ((0, Bp - B), (0, 0), (0, 0)))

    out = pl.pallas_call(
        _fused_net_kernel,
        out_shape=jax.ShapeDtypeStruct((Bp, LANES), jnp.float32),
        grid_spec=pltpu.PrefetchScalarGridSpec(
            num_scalar_prefetch=0,
            grid=(g,),
            in_specs=[
                pl.BlockSpec((bt, H_IN, H_IN), lambda i: (i, 0, 0)),
                pl.BlockSpec((_CROWS, LANES), lambda i: (0, 0)),
            ],
            out_specs=pl.BlockSpec((bt, LANES), lambda i: (i, 0)),
            scratch_shapes=[pltpu.VMEM((bt, FLAT), jnp.float32)],
        ),
        compiler_params=pltpu.CompilerParams(
            dimension_semantics=("parallel",)),
    )(x, packed)
    return out[:B, :NUM_CLASSES]


# -------------------- one-time host-side weight preparation ------------------

def prepare_params(params):
    """Pack all the rearranged constants (Toeplitz conv weights, pool selector
    matrices, flatten-permuted fc weights, biases) into ONE (840, 128) f32
    buffer with 8-aligned row offsets.  Runs once on the host, outside jit."""
    w1 = np.asarray(params["conv1_w"], np.float32)   # (C1, 1, K, K) OIHW
    b1 = np.asarray(params["conv1_b"], np.float32)
    w2 = np.asarray(params["conv2_w"], np.float32)   # (C2, C1, K, K)
    b2 = np.asarray(params["conv2_b"], np.float32)
    f1w = np.asarray(params["fc1_w"], np.float32)    # (FC1, C2*P2*P2)
    f1b = np.asarray(params["fc1_b"], np.float32)
    f2w = np.asarray(params["fc2_w"], np.float32)    # (FC2, FC1)
    f2b = np.asarray(params["fc2_b"], np.float32)
    f3w = np.asarray(params["fc3_w"], np.float32)    # (NUM_CLASSES, FC2)
    f3b = np.asarray(params["fc3_b"], np.float32)

    C = np.zeros((_CROWS, LANES), np.float32)

    # conv1 Toeplitz weights: lane = wo*C1 + co, row = input col (per kh block)
    for kh in range(K):
        for kw in range(K):
            for co in range(C1):
                for wo in range(H1):
                    C[_W1T + kh * H_IN + wo + kw, wo * C1 + co] = w1[co, 0, kh, kw]
    C[_B1, :H1 * C1] = np.tile(b1, H1)

    # pool1 selectors: W pairs (lane space) and H pairs (row space)
    for wo in range(P1):
        for c in range(C1):
            C[_SA1 + (2 * wo) * C1 + c, wo * C1 + c] = 1.0
            C[_SB1 + (2 * wo + 1) * C1 + c, wo * C1 + c] = 1.0
    for ho in range(P1):
        C[_RA1 + ho, 2 * ho] = 1.0
        C[_RB1 + ho, 2 * ho + 1] = 1.0

    # conv2 Toeplitz weights: row = wi*C1 + ci (42), lane = wo*C2 + co (80)
    for kh in range(K):
        for kw in range(K):
            for ci in range(C1):
                for co in range(C2):
                    for wo in range(H2):
                        C[_W2T + kh * 48 + (wo + kw) * C1 + ci,
                          wo * C2 + co] = w2[co, ci, kh, kw]
    C[_B2, :H2 * C2] = np.tile(b2, H2)

    # pool2 W-pair selectors (H pooling is done with static row slices)
    for wo in range(P2):
        for c in range(C2):
            C[_SA2 + (2 * wo) * C2 + c, wo * C2 + c] = 1.0
            C[_SB2 + (2 * wo + 1) * C2 + c, wo * C2 + c] = 1.0

    # fc1 with the PyTorch NCHW flatten (k = c*P2*P2 + h*P2 + w) folded in;
    # kernel feature lane = h*(P2*C2) + w*C2 + c.
    for h in range(P2):
        for w in range(P2):
            for c in range(C2):
                C[_W1F + h * (P2 * C2) + w * C2 + c, :FC1] = \
                    f1w[:, c * P2 * P2 + h * P2 + w]
    C[_FB1, :FC1] = f1b

    C[_W2F:_W2F + FC1, :FC2] = f2w.T
    C[_FB2, :FC2] = f2b

    # fc3 padded to 128 lanes; padded bias lanes get NEG_PAD so they vanish
    # in the in-kernel log_softmax (padding must stay exactly as set here).
    C[_W3F:_W3F + FC2, :NUM_CLASSES] = f3w.T
    C[_FB3, :] = NEG_PAD
    C[_FB3, :NUM_CLASSES] = f3b

    return jnp.asarray(C)


# ------------------------- params & pure-JAX reference -----------------------

def init_params(key):
    ks = jax.random.split(key, 10)

    def w(k, shape, fan_in):
        return (jax.random.normal(k, shape, jnp.float32)
                / np.sqrt(float(fan_in))).astype(jnp.float32)

    return {
        "conv1_w": w(ks[0], (C1, 1, K, K), K * K),        # PyTorch OIHW
        "conv1_b": w(ks[1], (C1,), K * K),
        "conv2_w": w(ks[2], (C2, C1, K, K), C1 * K * K),
        "conv2_b": w(ks[3], (C2,), C1 * K * K),
        "fc1_w": w(ks[4], (FC1, FLAT), FLAT),             # PyTorch (out, in)
        "fc1_b": w(ks[5], (FC1,), FLAT),
        "fc2_w": w(ks[6], (FC2, FC1), FC1),
        "fc2_b": w(ks[7], (FC2,), FC1),
        "fc3_w": w(ks[8], (NUM_CLASSES, FC2), FC2),
        "fc3_b": w(ks[9], (NUM_CLASSES,), FC2),
    }


def reference(x_nchw, p):
    hi = jax.lax.Precision.HIGHEST

    def conv(x, w, b):
        y = jax.lax.conv_general_dilated(
            x, w, (1, 1), "VALID",
            dimension_numbers=("NCHW", "OIHW", "NCHW"), precision=hi)
        return y + b[None, :, None, None]

    def pool(x):
        return jax.lax.reduce_window(x, -jnp.inf, jax.lax.max,
                                     (1, 1, 2, 2), (1, 1, 2, 2), "VALID")

    h = pool(jnp.maximum(conv(x_nchw, p["conv1_w"], p["conv1_b"]), 0.0))
    h = pool(jnp.maximum(conv(h, p["conv2_w"], p["conv2_b"]), 0.0))
    h = h.reshape(x_nchw.shape[0], -1)
    h = jnp.maximum(jnp.dot(h, p["fc1_w"].T, precision=hi) + p["fc1_b"], 0.0)
    h = jnp.maximum(jnp.dot(h, p["fc2_w"].T, precision=hi) + p["fc2_b"], 0.0)
    logits = jnp.dot(h, p["fc3_w"].T, precision=hi) + p["fc3_b"]
    return jax.nn.log_softmax(logits, axis=-1)


# ----------------------------------- main ------------------------------------

if __name__ == "__main__":
    key = jax.random.PRNGKey(0)
    k_x, k_p = jax.random.split(key)
    B = 16                                                     # 2 grid steps
    x = jax.random.normal(k_x, (B, 1, H_IN, H_IN), jnp.float32)   # NCHW
    params = init_params(k_p)
    packed = prepare_params(params)   # one-time host-side weight packing

    out = jax.jit(forward)(x, packed)
    out = jax.block_until_ready(out)

    ref = jax.block_until_ready(reference(x, params))
    assert out.shape == (B, NUM_CLASSES), out.shape
    np.testing.assert_allclose(np.asarray(out), np.asarray(ref),
                               rtol=2e-3, atol=2e-3)
    print("KERNEL_OK")
</pallas_src>

<mosaic_0001>
module attributes {stable_mosaic.version = 11 : i64} {
  func.func @_fused_net_kernel(%arg0: i32, %arg1: memref<8x16x16xf32, #tpu.memory_space<vmem>>, %arg2: memref<840x128xf32, #tpu.memory_space<vmem>>, %arg3: memref<8x128xf32, #tpu.memory_space<vmem>>, %arg4: memref<8x64xf32, #tpu.memory_space<vmem>>) attributes {dimension_semantics = [#tpu.dimension_semantics<parallel>], iteration_bounds = array<i64: 2>, scalar_prefetch = 0 : i64, scratch_operands = 1 : i64, tpu.core_type = #tpu.core_type<tc>, window_params = [{transform_indices = @transform_0, window_bounds = array<i64: 8, 16, 16>}, {pipeline_mode = #tpu.pipeline_mode<synchronous>, transform_indices = @transform_1, window_bounds = array<i64: 840, 128>}, {transform_indices = @transform_2, window_bounds = array<i64: 8, 128>}]} {
    %c0 = arith.constant 0 : index
    %c0_0 = arith.constant 0 : index
    %0 = vector.load %arg2[%c0, %c0_0] : memref<840x128xf32, #tpu.memory_space<vmem>>, vector<16x84xf32>
    %c16 = arith.constant 16 : index
    %c0_1 = arith.constant 0 : index
    %1 = vector.load %arg2[%c16, %c0_1] : memref<840x128xf32, #tpu.memory_space<vmem>>, vector<16x84xf32>
    %c32 = arith.constant 32 : index
    %c0_2 = arith.constant 0 : index
    %2 = vector.load %arg2[%c32, %c0_2] : memref<840x128xf32, #tpu.memory_space<vmem>>, vector<16x84xf32>
    %c48 = arith.constant 48 : index
    %c0_3 = arith.constant 0 : index
    %3 = vector.load %arg2[%c48, %c0_3] : memref<840x128xf32, #tpu.memory_space<vmem>>, vector<1x84xf32>
    %c56 = arith.constant 56 : index
    %c0_4 = arith.constant 0 : index
    %4 = vector.load %arg2[%c56, %c0_4] : memref<840x128xf32, #tpu.memory_space<vmem>>, vector<84x42xf32>
    %c144 = arith.constant 144 : index
    %c0_5 = arith.constant 0 : index
    %5 = vector.load %arg2[%c144, %c0_5] : memref<840x128xf32, #tpu.memory_space<vmem>>, vector<84x42xf32>
    %c232 = arith.constant 232 : index
    %c0_6 = arith.constant 0 : index
    %6 = vector.load %arg2[%c232, %c0_6] : memref<840x128xf32, #tpu.memory_space<vmem>>, vector<7x14xf32>
    %c240 = arith.constant 240 : index
    %c0_7 = arith.constant 0 : index
    %7 = vector.load %arg2[%c240, %c0_7] : memref<840x128xf32, #tpu.memory_space<vmem>>, vector<7x14xf32>
    %c248 = arith.constant 248 : index
    %c0_8 = arith.constant 0 : index
    %8 = vector.load %arg2[%c248, %c0_8] : memref<840x128xf32, #tpu.memory_space<vmem>>, vector<42x80xf32>
    %c296 = arith.constant 296 : index
    %c0_9 = arith.constant 0 : index
    %9 = vector.load %arg2[%c296, %c0_9] : memref<840x128xf32, #tpu.memory_space<vmem>>, vector<42x80xf32>
    %c344 = arith.constant 344 : index
    %c0_10 = arith.constant 0 : index
    %10 = vector.load %arg2[%c344, %c0_10] : memref<840x128xf32, #tpu.memory_space<vmem>>, vector<42x80xf32>
    %c392 = arith.constant 392 : index
    %c0_11 = arith.constant 0 : index
    %11 = vector.load %arg2[%c392, %c0_11] : memref<840x128xf32, #tpu.memory_space<vmem>>, vector<1x80xf32>
    %c400 = arith.constant 400 : index
    %c0_12 = arith.constant 0 : index
    %12 = vector.load %arg2[%c400, %c0_12] : memref<840x128xf32, #tpu.memory_space<vmem>>, vector<80x32xf32>
    %c480 = arith.constant 480 : index
    %c0_13 = arith.constant 0 : index
    %13 = vector.load %arg2[%c480, %c0_13] : memref<840x128xf32, #tpu.memory_space<vmem>>, vector<80x32xf32>
    %c560 = arith.constant 560 : index
    %c0_14 = arith.constant 0 : index
    %14 = vector.load %arg2[%c560, %c0_14] : memref<840x128xf32, #tpu.memory_space<vmem>>, vector<64x128xf32>
    %c624 = arith.constant 624 : index
    %c0_15 = arith.constant 0 : index
    %15 = vector.load %arg2[%c624, %c0_15] : memref<840x128xf32, #tpu.memory_space<vmem>>, vector<1x128xf32>
    %c632 = arith.constant 632 : index
    %c0_16 = arith.constant 0 : index
    %16 = vector.load %arg2[%c632, %c0_16] : memref<840x128xf32, #tpu.memory_space<vmem>>, vector<128x64xf32>
    %c760 = arith.constant 760 : index
    %c0_17 = arith.constant 0 : index
    %17 = vector.load %arg2[%c760, %c0_17] : memref<840x128xf32, #tpu.memory_space<vmem>>, vector<1x64xf32>
    %c768 = arith.constant 768 : index
    %c0_18 = arith.constant 0 : index
    %18 = vector.load %arg2[%c768, %c0_18] : memref<840x128xf32, #tpu.memory_space<vmem>>, vector<64x128xf32>
    %c832 = arith.constant 832 : index
    %c0_19 = arith.constant 0 : index
    %19 = vector.load %arg2[%c832, %c0_19] : memref<840x128xf32, #tpu.memory_space<vmem>>, vector<1x128xf32>
    %c0_20 = arith.constant 0 : index
    %c0_21 = arith.constant 0 : index
    %c0_22 = arith.constant 0 : index
    %20 = vector.load %arg1[%c0_20, %c0_21, %c0_22] : memref<8x16x16xf32, #tpu.memory_space<vmem>>, vector<1x16x16xf32>
    %21 = vector.shape_cast %20 : vector<1x16x16xf32> to vector<16x16xf32>
    %22 = vector.extract_strided_slice %21 {offsets = [0, 0], sizes = [14, 16], strides = [1, 1]} : vector<16x16xf32> to vector<14x16xf32>
    %cst = arith.constant dense<0.000000e+00> : vector<14x84xf32>
    %23 = tpu.matmul %22, %0, %cst {dimension_numbers = #tpu.dot_dimension_numbers<[1], [0], [0], [1], [0, 0, 1, 1], [], []>} : vector<14x16xf32>, vector<16x84xf32>, vector<14x84xf32> -> vector<14x84xf32>
    %24 = vector.extract_strided_slice %21 {offsets = [1, 0], sizes = [14, 16], strides = [1, 1]} : vector<16x16xf32> to vector<14x16xf32>
    %cst_23 = arith.constant dense<0.000000e+00> : vector<14x84xf32>
    %25 = tpu.matmul %24, %1, %cst_23 {dimension_numbers = #tpu.dot_dimension_numbers<[1], [0], [0], [1], [0, 0, 1, 1], [], []>} : vector<14x16xf32>, vector<16x84xf32>, vector<14x84xf32> -> vector<14x84xf32>
    %26 = arith.addf %23, %25 : vector<14x84xf32>
    %27 = vector.extract_strided_slice %21 {offsets = [2, 0], sizes = [14, 16], strides = [1, 1]} : vector<16x16xf32> to vector<14x16xf32>
    %cst_24 = arith.constant dense<0.000000e+00> : vector<14x84xf32>
    %28 = tpu.matmul %27, %2, %cst_24 {dimension_numbers = #tpu.dot_dimension_numbers<[1], [0], [0], [1], [0, 0, 1, 1], [], []>} : vector<14x16xf32>, vector<16x84xf32>, vector<14x84xf32> -> vector<14x84xf32>
    %29 = arith.addf %26, %28 : vector<14x84xf32>
    %30 = vector.broadcast %3 : vector<1x84xf32> to vector<14x84xf32>
    %31 = arith.addf %29, %30 : vector<14x84xf32>
    %cst_25 = arith.constant 0.000000e+00 : f32
    %32 = vector.broadcast %cst_25 : f32 to vector<14x84xf32>
    %33 = arith.maximumf %31, %32 : vector<14x84xf32>
    %cst_26 = arith.constant dense<0.000000e+00> : vector<14x42xf32>
    %34 = tpu.matmul %33, %4, %cst_26 {dimension_numbers = #tpu.dot_dimension_numbers<[1], [0], [0], [1], [0, 0, 1, 1], [], []>} : vector<14x84xf32>, vector<84x42xf32>, vector<14x42xf32> -> vector<14x42xf32>
    %cst_27 = arith.constant dense<0.000000e+00> : vector<14x42xf32>
    %35 = tpu.matmul %33, %5, %cst_27 {dimension_numbers = #tpu.dot_dimension_numbers<[1], [0], [0], [1], [0, 0, 1, 1], [], []>} : vector<14x84xf32>, vector<84x42xf32>, vector<14x42xf32> -> vector<14x42xf32>
    %36 = arith.maximumf %34, %35 : vector<14x42xf32>
    %cst_28 = arith.constant dense<0.000000e+00> : vector<7x42xf32>
    %37 = tpu.matmul %6, %36, %cst_28 {dimension_numbers = #tpu.dot_dimension_numbers<[1], [0], [0], [1], [0, 0, 1, 1], [], []>} : vector<7x14xf32>, vector<14x42xf32>, vector<7x42xf32> -> vector<7x42xf32>
    %cst_29 = arith.constant dense<0.000000e+00> : vector<7x42xf32>
    %38 = tpu.matmul %7, %36, %cst_29 {dimension_numbers = #tpu.dot_dimension_numbers<[1], [0], [0], [1], [0, 0, 1, 1], [], []>} : vector<7x14xf32>, vector<14x42xf32>, vector<7x42xf32> -> vector<7x42xf32>
    %39 = arith.maximumf %37, %38 : vector<7x42xf32>
    %40 = vector.extract_strided_slice %39 {offsets = [0, 0], sizes = [5, 42], strides = [1, 1]} : vector<7x42xf32> to vector<5x42xf32>
    %cst_30 = arith.constant dense<0.000000e+00> : vector<5x80xf32>
    %41 = tpu.matmul %40, %8, %cst_30 {dimension_numbers = #tpu.dot_dimension_numbers<[1], [0], [0], [1], [0, 0, 1, 1], [], []>} : vector<5x42xf32>, vector<42x80xf32>, vector<5x80xf32> -> vector<5x80xf32>
    %42 = vector.extract_strided_slice %39 {offsets = [1, 0], sizes = [5, 42], strides = [1, 1]} : vector<7x42xf32> to vector<5x42xf32>
    %cst_31 = arith.constant dense<0.000000e+00> : vector<5x80xf32>
    %43 = tpu.matmul %42, %9, %cst_31 {dimension_numbers = #tpu.dot_dimension_numbers<[1], [0], [0], [1], [0, 0, 1, 1], [], []>} : vector<5x42xf32>, vector<42x80xf32>, vector<5x80xf32> -> vector<5x80xf32>
    %44 = arith.addf %41, %43 : vector<5x80xf32>
    %45 = vector.extract_strided_slice %39 {offsets = [2, 0], sizes = [5, 42], strides = [1, 1]} : vector<7x42xf32> to vector<5x42xf32>
    %cst_32 = arith.constant dense<0.000000e+00> : vector<5x80xf32>
    %46 = tpu.matmul %45, %10, %cst_32 {dimension_numbers = #tpu.dot_dimension_numbers<[1], [0], [0], [1], [0, 0, 1, 1], [], []>} : vector<5x42xf32>, vector<42x80xf32>, vector<5x80xf32> -> vector<5x80xf32>
    %47 = arith.addf %44, %46 : vector<5x80xf32>
    %48 = vector.broadcast %11 : vector<1x80xf32> to vector<5x80xf32>
    %49 = arith.addf %47, %48 : vector<5x80xf32>
    %cst_33 = arith.constant 0.000000e+00 : f32
    %50 = vector.broadcast %cst_33 : f32 to vector<5x80xf32>
    %51 = arith.maximumf %49, %50 : vector<5x80xf32>
    %cst_34 = arith.constant dense<0.000000e+00> : vector<5x32xf32>
    %52 = tpu.matmul %51, %12, %cst_34 {dimension_numbers = #tpu.dot_dimension_numbers<[1], [0], [0], [1], [0, 0, 1, 1], [], []>} : vector<5x80xf32>, vector<80x32xf32>, vector<5x32xf32> -> vector<5x32xf32>
    %cst_35 = arith.constant dense<0.000000e+00> : vector<5x32xf32>
    %53 = tpu.matmul %51, %13, %cst_35 {dimension_numbers = #tpu.dot_dimension_numbers<[1], [0], [0], [1], [0, 0, 1, 1], [], []>} : vector<5x80xf32>, vector<80x32xf32>, vector<5x32xf32> -> vector<5x32xf32>
    %54 = arith.maximumf %52, %53 : vector<5x32xf32>
    %55 = vector.extract_strided_slice %54 {offsets = [0, 0], sizes = [1, 32], strides = [1, 1]} : vector<5x32xf32> to vector<1x32xf32>
    %56 = vector.extract_strided_slice %54 {offsets = [1, 0], sizes = [1, 32], strides = [1, 1]} : vector<5x32xf32> to vector<1x32xf32>
    %57 = arith.maximumf %55, %56 : vector<1x32xf32>
    %58 = vector.extract_strided_slice %54 {offsets = [2, 0], sizes = [1, 32], strides = [1, 1]} : vector<5x32xf32> to vector<1x32xf32>
    %59 = vector.extract_strided_slice %54 {offsets = [3, 0], sizes = [1, 32], strides = [1, 1]} : vector<5x32xf32> to vector<1x32xf32>
    %60 = arith.maximumf %58, %59 : vector<1x32xf32>
    %61 = tpu.concatenate %57, %60 in 1 : vector<1x32xf32>, vector<1x32xf32> -> vector<1x64xf32>
    %c0_36 = arith.constant 0 : index
    %c0_37 = arith.constant 0 : index
    %62 = vector.load %arg4[%c0_36, %c0_37] : memref<8x64xf32, #tpu.memory_space<vmem>>, vector<1x64xf32>
    tpu.vector_store %arg4[%c0_36, %c0_37], %61 {strides = array<i32>} : memref<8x64xf32, #tpu.memory_space<vmem>>, vector<1x64xf32>,
    %c1 = arith.constant 1 : index
    %c0_38 = arith.constant 0 : index
    %c0_39 = arith.constant 0 : index
    %63 = vector.load %arg1[%c1, %c0_38, %c0_39] : memref<8x16x16xf32, #tpu.memory_space<vmem>>, vector<1x16x16xf32>
    %64 = vector.shape_cast %63 : vector<1x16x16xf32> to vector<16x16xf32>
    %65 = vector.extract_strided_slice %64 {offsets = [0, 0], sizes = [14, 16], strides = [1, 1]} : vector<16x16xf32> to vector<14x16xf32>
    %cst_40 = arith.constant dense<0.000000e+00> : vector<14x84xf32>
    %66 = tpu.matmul %65, %0, %cst_40 {dimension_numbers = #tpu.dot_dimension_numbers<[1], [0], [0], [1], [0, 0, 1, 1], [], []>} : vector<14x16xf32>, vector<16x84xf32>, vector<14x84xf32> -> vector<14x84xf32>
    %67 = vector.extract_strided_slice %64 {offsets = [1, 0], sizes = [14, 16], strides = [1, 1]} : vector<16x16xf32> to vector<14x16xf32>
    %cst_41 = arith.constant dense<0.000000e+00> : vector<14x84xf32>
    %68 = tpu.matmul %67, %1, %cst_41 {dimension_numbers = #tpu.dot_dimension_numbers<[1], [0], [0], [1], [0, 0, 1, 1], [], []>} : vector<14x16xf32>, vector<16x84xf32>, vector<14x84xf32> -> vector<14x84xf32>
    %69 = arith.addf %66, %68 : vector<14x84xf32>
    %70 = vector.extract_strided_slice %64 {offsets = [2, 0], sizes = [14, 16], strides = [1, 1]} : vector<16x16xf32> to vector<14x16xf32>
    %cst_42 = arith.constant dense<0.000000e+00> : vector<14x84xf32>
    %71 = tpu.matmul %70, %2, %cst_42 {dimension_numbers = #tpu.dot_dimension_numbers<[1], [0], [0], [1], [0, 0, 1, 1], [], []>} : vector<14x16xf32>, vector<16x84xf32>, vector<14x84xf32> -> vector<14x84xf32>
    %72 = arith.addf %69, %71 : vector<14x84xf32>
    %73 = vector.broadcast %3 : vector<1x84xf32> to vector<14x84xf32>
    %74 = arith.addf %72, %73 : vector<14x84xf32>
    %cst_43 = arith.constant 0.000000e+00 : f32
    %75 = vector.broadcast %cst_43 : f32 to vector<14x84xf32>
    %76 = arith.maximumf %74, %75 : vector<14x84xf32>
    %cst_44 = arith.constant dense<0.000000e+00> : vector<14x42xf32>
    %77 = tpu.matmul %76, %4, %cst_44 {dimension_numbers = #tpu.dot_dimension_numbers<[1], [0], [0], [1], [0, 0, 1, 1], [], []>} : vector<14x84xf32>, vector<84x42xf32>, vector<14x42xf32> -> vector<14x42xf32>
    %cst_45 = arith.constant dense<0.000000e+00> : vector<14x42xf32>
    %78 = tpu.matmul %76, %5, %cst_45 {dimension_numbers = #tpu.dot_dimension_numbers<[1], [0], [0], [1], [0, 0, 1, 1], [], []>} : vector<14x84xf32>, vector<84x42xf32>, vector<14x42xf32> -> vector<14x42xf32>
    %79 = arith.maximumf %77, %78 : vector<14x42xf32>
    %cst_46 = arith.constant dense<0.000000e+00> : vector<7x42xf32>
    %80 = tpu.matmul %6, %79, %cst_46 {dimension_numbers = #tpu.dot_dimension_numbers<[1], [0], [0], [1], [0, 0, 1, 1], [], []>} : vector<7x14xf32>, vector<14x42xf32>, vector<7x42xf32> -> vector<7x42xf32>
    %cst_47 = arith.constant dense<0.000000e+00> : vector<7x42xf32>
    %81 = tpu.matmul %7, %79, %cst_47 {dimension_numbers = #tpu.dot_dimension_numbers<[1], [0], [0], [1], [0, 0, 1, 1], [], []>} : vector<7x14xf32>, vector<14x42xf32>, vector<7x42xf32> -> vector<7x42xf32>
    %82 = arith.maximumf %80, %81 : vector<7x42xf32>
    %83 = vector.extract_strided_slice %82 {offsets = [0, 0], sizes = [5, 42], strides = [1, 1]} : vector<7x42xf32> to vector<5x42xf32>
    %cst_48 = arith.constant dense<0.000000e+00> : vector<5x80xf32>
    %84 = tpu.matmul %83, %8, %cst_48 {dimension_numbers = #tpu.dot_dimension_numbers<[1], [0], [0], [1], [0, 0, 1, 1], [], []>} : vector<5x42xf32>, vector<42x80xf32>, vector<5x80xf32> -> vector<5x80xf32>
    %85 = vector.extract_strided_slice %82 {offsets = [1, 0], sizes = [5, 42], strides = [1, 1]} : vector<7x42xf32> to vector<5x42xf32>
    %cst_49 = arith.constant dense<0.000000e+00> : vector<5x80xf32>
    %86 = tpu.matmul %85, %9, %cst_49 {dimension_numbers = #tpu.dot_dimension_numbers<[1], [0], [0], [1], [0, 0, 1, 1], [], []>} : vector<5x42xf32>, vector<42x80xf32>, vector<5x80xf32> -> vector<5x80xf32>
    %87 = arith.addf %84, %86 : vector<5x80xf32>
    %88 = vector.extract_strided_slice %82 {offsets = [2, 0], sizes = [5, 42], strides = [1, 1]} : vector<7x42xf32> to vector<5x42xf32>
    %cst_50 = arith.constant dense<0.000000e+00> : vector<5x80xf32>
    %89 = tpu.matmul %88, %10, %cst_50 {dimension_numbers = #tpu.dot_dimension_numbers<[1], [0], [0], [1], [0, 0, 1, 1], [], []>} : vector<5x42xf32>, vector<42x80xf32>, vector<5x80xf32> -> vector<5x80xf32>
    %90 = arith.addf %87, %89 : vector<5x80xf32>
    %91 = vector.broadcast %11 : vector<1x80xf32> to vector<5x80xf32>
    %92 = arith.addf %90, %91 : vector<5x80xf32>
    %cst_51 = arith.constant 0.000000e+00 : f32
    %93 = vector.broadcast %cst_51 : f32 to vector<5x80xf32>
    %94 = arith.maximumf %92, %93 : vector<5x80xf32>
    %cst_52 = arith.constant dense<0.000000e+00> : vector<5x32xf32>
    %95 = tpu.matmul %94, %12, %cst_52 {dimension_numbers = #tpu.dot_dimension_numbers<[1], [0], [0], [1], [0, 0, 1, 1], [], []>} : vector<5x80xf32>, vector<80x32xf32>, vector<5x32xf32> -> vector<5x32xf32>
    %cst_53 = arith.constant dense<0.000000e+00> : vector<5x32xf32>
    %96 = tpu.matmul %94, %13, %cst_53 {dimension_numbers = #tpu.dot_dimension_numbers<[1], [0], [0], [1], [0, 0, 1, 1], [], []>} : vector<5x80xf32>, vector<80x32xf32>, vector<5x32xf32> -> vector<5x32xf32>
    %97 = arith.maximumf %95, %96 : vector<5x32xf32>
    %98 = vector.extract_strided_slice %97 {offsets = [0, 0], sizes = [1, 32], strides = [1, 1]} : vector<5x32xf32> to vector<1x32xf32>
    %99 = vector.extract_strided_slice %97 {offsets = [1, 0], sizes = [1, 32], strides = [1, 1]} : vector<5x32xf32> to vector<1x32xf32>
    %100 = arith.maximumf %98, %99 : vector<1x32xf32>
    %101 = vector.extract_strided_slice %97 {offsets = [2, 0], sizes = [1, 32], strides = [1, 1]} : vector<5x32xf32> to vector<1x32xf32>
    %102 = vector.extract_strided_slice %97 {offsets = [3, 0], sizes = [1, 32], strides = [1, 1]} : vector<5x32xf32> to vector<1x32xf32>
    %103 = arith.maximumf %101, %102 : vector<1x32xf32>
    %104 = tpu.concatenate %100, %103 in 1 : vector<1x32xf32>, vector<1x32xf32> -> vector<1x64xf32>
    %c1_54 = arith.constant 1 : index
    %c0_55 = arith.constant 0 : index
    %105 = vector.load %arg4[%c1_54, %c0_55] : memref<8x64xf32, #tpu.memory_space<vmem>>, vector<1x64xf32>
    tpu.vector_store %arg4[%c1_54, %c0_55], %104 {strides = array<i32>} : memref<8x64xf32, #tpu.memory_space<vmem>>, vector<1x64xf32>,
    %c2 = arith.constant 2 : index
    %c0_56 = arith.constant 0 : index
    %c0_57 = arith.constant 0 : index
    %106 = vector.load %arg1[%c2, %c0_56, %c0_57] : memref<8x16x16xf32, #tpu.memory_space<vmem>>, vector<1x16x16xf32>
    %107 = vector.shape_cast %106 : vector<1x16x16xf32> to vector<16x16xf32>
    %108 = vector.extract_strided_slice %107 {offsets = [0, 0], sizes = [14, 16], strides = [1, 1]} : vector<16x16xf32> to vector<14x16xf32>
    %cst_58 = arith.constant dense<0.000000e+00> : vector<14x84xf32>
    %109 = tpu.matmul %108, %0, %cst_58 {dimension_numbers = #tpu.dot_dimension_numbers<[1], [0], [0], [1], [0, 0, 1, 1], [], []>} : vector<14x16xf32>, vector<16x84xf32>, vector<14x84xf32> -> vector<14x84xf32>
    %110 = vector.extract_strided_slice %107 {offsets = [1, 0], sizes = [14, 16], strides = [1, 1]} : vector<16x16xf32> to vector<14x16xf32>
    %cst_59 = arith.constant dense<0.000000e+00> : vector<14x84xf32>
    %111 = tpu.matmul %110, %1, %cst_59 {dimension_numbers = #tpu.dot_dimension_numbers<[1], [0], [0], [1], [0, 0, 1, 1], [], []>} : vector<14x16xf32>, vector<16x84xf32>, vector<14x84xf32> -> vector<14x84xf32>
    %112 = arith.addf %109, %111 : vector<14x84xf32>
    %113 = vector.extract_strided_slice %107 {offsets = [2, 0], sizes = [14, 16], strides = [1, 1]} : vector<16x16xf32> to vector<14x16xf32>
    %cst_60 = arith.constant dense<0.000000e+00> : vector<14x84xf32>
    %114 = tpu.matmul %113, %2, %cst_60 {dimension_numbers = #tpu.dot_dimension_numbers<[1], [0], [0], [1], [0, 0, 1, 1], [], []>} : vector<14x16xf32>, vector<16x84xf32>, vector<14x84xf32> -> vector<14x84xf32>
    %115 = arith.addf %112, %114 : vector<14x84xf32>
    %116 = vector.broadcast %3 : vector<1x84xf32> to vector<14x84xf32>
    %117 = arith.addf %115, %116 : vector<14x84xf32>
    %cst_61 = arith.constant 0.000000e+00 : f32
    %118 = vector.broadcast %cst_61 : f32 to vector<14x84xf32>
    %119 = arith.maximumf %117, %118 : vector<14x84xf32>
    %cst_62 = arith.constant dense<0.000000e+00> : vector<14x42xf32>
    %120 = tpu.matmul %119, %4, %cst_62 {dimension_numbers = #tpu.dot_dimension_numbers<[1], [0], [0], [1], [0, 0, 1, 1], [], []>} : vector<14x84xf32>, vector<84x42xf32>, vector<14x42xf32> -> vector<14x42xf32>
    %cst_63 = arith.constant dense<0.000000e+00> : vector<14x42xf32>
    %121 = tpu.matmul %119, %5, %cst_63 {dimension_numbers = #tpu.dot_dimension_numbers<[1], [0], [0], [1], [0, 0, 1, 1], [], []>} : vector<14x84xf32>, vector<84x42xf32>, vector<14x42xf32> -> vector<14x42xf32>
    %122 = arith.maximumf %120, %121 : vector<14x42xf32>
    %cst_64 = arith.constant dense<0.000000e+00> : vector<7x42xf32>
    %123 = tpu.matmul %6, %122, %cst_64 {dimension_numbers = #tpu.dot_dimension_numbers<[1], [0], [0], [1], [0, 0, 1, 1], [], []>} : vector<7x14xf32>, vector<14x42xf32>, vector<7x42xf32> -> vector<7x42xf32>
    %cst_65 = arith.constant dense<0.000000e+00> : vector<7x42xf32>
    %124 = tpu.matmul %7, %122, %cst_65 {dimension_numbers = #tpu.dot_dimension_numbers<[1], [0], [0], [1], [0, 0, 1, 1], [], []>} : vector<7x14xf32>, vector<14x42xf32>, vector<7x42xf32> -> vector<7x42xf32>
    %125 = arith.maximumf %123, %124 : vector<7x42xf32>
    %126 = vector.extract_strided_slice %125 {offsets = [0, 0], sizes = [5, 42], strides = [1, 1]} : vector<7x42xf32> to vector<5x42xf32>
    %cst_66 = arith.constant dense<0.000000e+00> : vector<5x80xf32>
    %127 = tpu.matmul %126, %8, %cst_66 {dimension_numbers = #tpu.dot_dimension_numbers<[1], [0], [0], [1], [0, 0, 1, 1], [], []>} : vector<5x42xf32>, vector<42x80xf32>, vector<5x80xf32> -> vector<5x80xf32>
    %128 = vector.extract_strided_slice %125 {offsets = [1, 0], sizes = [5, 42], strides = [1, 1]} : vector<7x42xf32> to vector<5x42xf32>
    %cst_67 = arith.constant dense<0.000000e+00> : vector<5x80xf32>
    %129 = tpu.matmul %128, %9, %cst_67 {dimension_numbers = #tpu.dot_dimension_numbers<[1], [0], [0], [1], [0, 0, 1, 1], [], []>} : vector<5x42xf32>, vector<42x80xf32>, vector<5x80xf32> -> vector<5x80xf32>
    %130 = arith.addf %127, %129 : vector<5x80xf32>
    %131 = vector.extract_strided_slice %125 {offsets = [2, 0], sizes = [5, 42], strides = [1, 1]} : vector<7x42xf32> to vector<5x42xf32>
    %cst_68 = arith.constant dense<0.000000e+00> : vector<5x80xf32>
    %132 = tpu.matmul %131, %10, %cst_68 {dimension_numbers = #tpu.dot_dimension_numbers<[1], [0], [0], [1], [0, 0, 1, 1], [], []>} : vector<5x42xf32>, vector<42x80xf32>, vector<5x80xf32> -> vector<5x80xf32>
    %133 = arith.addf %130, %132 : vector<5x80xf32>
    %134 = vector.broadcast %11 : vector<1x80xf32> to vector<5x80xf32>
    %135 = arith.addf %133, %134 : vector<5x80xf32>
    %cst_69 = arith.constant 0.000000e+00 : f32
    %136 = vector.broadcast %cst_69 : f32 to vector<5x80xf32>
    %137 = arith.maximumf %135, %136 : vector<5x80xf32>
    %cst_70 = arith.constant dense<0.000000e+00> : vector<5x32xf32>
    %138 = tpu.matmul %137, %12, %cst_70 {dimension_numbers = #tpu.dot_dimension_numbers<[1], [0], [0], [1], [0, 0, 1, 1], [], []>} : vector<5x80xf32>, vector<80x32xf32>, vector<5x32xf32> -> vector<5x32xf32>
    %cst_71 = arith.constant dense<0.000000e+00> : vector<5x32xf32>
    %139 = tpu.matmul %137, %13, %cst_71 {dimension_numbers = #tpu.dot_dimension_numbers<[1], [0], [0], [1], [0, 0, 1, 1], [], []>} : vector<5x80xf32>, vector<80x32xf32>, vector<5x32xf32> -> vector<5x32xf32>
    %140 = arith.maximumf %138, %139 : vector<5x32xf32>
    %141 = vector.extract_strided_slice %140 {offsets = [0, 0], sizes = [1, 32], strides = [1, 1]} : vector<5x32xf32> to vector<1x32xf32>
    %142 = vector.extract_strided_slice %140 {offsets = [1, 0], sizes = [1, 32], strides = [1, 1]} : vector<5x32xf32> to vector<1x32xf32>
    %143 = arith.maximumf %141, %142 : vector<1x32xf32>
    %144 = vector.extract_strided_slice %140 {offsets = [2, 0], sizes = [1, 32], strides = [1, 1]} : vector<5x32xf32> to vector<1x32xf32>
    %145 = vector.extract_strided_slice %140 {offsets = [3, 0], sizes = [1, 32], strides = [1, 1]} : vector<5x32xf32> to vector<1x32xf32>
    %146 = arith.maximumf %144, %145 : vector<1x32xf32>
    %147 = tpu.concatenate %143, %146 in 1 : vector<1x32xf32>, vector<1x32xf32> -> vector<1x64xf32>
    %c2_72 = arith.constant 2 : index
    %c0_73 = arith.constant 0 : index
    %148 = vector.load %arg4[%c2_72, %c0_73] : memref<8x64xf32, #tpu.memory_space<vmem>>, vector<1x64xf32>
    tpu.vector_store %arg4[%c2_72, %c0_73], %147 {strides = array<i32>} : memref<8x64xf32, #tpu.memory_space<vmem>>, vector<1x64xf32>,
    %c3 = arith.constant 3 : index
    %c0_74 = arith.constant 0 : index
    %c0_75 = arith.constant 0 : index
    %149 = vector.load %arg1[%c3, %c0_74, %c0_75] : memref<8x16x16xf32, #tpu.memory_space<vmem>>, vector<1x16x16xf32>
    %150 = vector.shape_cast %149 : vector<1x16x16xf32> to vector<16x16xf32>
    %151 = vector.extract_strided_slice %150 {offsets = [0, 0], sizes = [14, 16], strides = [1, 1]} : vector<16x16xf32> to vector<14x16xf32>
    %cst_76 = arith.constant dense<0.000000e+00> : vector<14x84xf32>
    %152 = tpu.matmul %151, %0, %cst_76 {dimension_numbers = #tpu.dot_dimension_numbers<[1], [0], [0], [1], [0, 0, 1, 1], [], []>} : vector<14x16xf32>, vector<16x84xf32>, vector<14x84xf32> -> vector<14x84xf32>
    %153 = vector.extract_strided_slice %150 {offsets = [1, 0], sizes = [14, 16], strides = [1, 1]} : vector<16x16xf32> to vector<14x16xf32>
    %cst_77 = arith.constant dense<0.000000e+00> : vector<14x84xf32>
    %154 = tpu.matmul %153, %1, %cst_77 {dimension_numbers = #tpu.dot_dimension_numbers<[1], [0], [0], [1], [0, 0, 1, 1], [], []>} : vector<14x16xf32>, vector<16x84xf32>, vector<14x84xf32> -> vector<14x84xf32>
    %155 = arith.addf %152, %154 : vector<14x84xf32>
    %156 = vector.extract_strided_slice %150 {offsets = [2, 0], sizes = [14, 16], strides = [1, 1]} : vector<16x16xf32> to vector<14x16xf32>
    %cst_78 = arith.constant dense<0.000000e+00> : vector<14x84xf32>
    %157 = tpu.matmul %156, %2, %cst_78 {dimension_numbers = #tpu.dot_dimension_numbers<[1], [0], [0], [1], [0, 0, 1, 1], [], []>} : vector<14x16xf32>, vector<16x84xf32>, vector<14x84xf32> -> vector<14x84xf32>
    %158 = arith.addf %155, %157 : vector<14x84xf32>
    %159 = vector.broadcast %3 : vector<1x84xf32> to vector<14x84xf32>
    %160 = arith.addf %158, %159 : vector<14x84xf32>
    %cst_79 = arith.constant 0.000000e+00 : f32
    %161 = vector.broadcast %cst_79 : f32 to vector<14x84xf32>
    %162 = arith.maximumf %160, %161 : vector<14x84xf32>
    %cst_80 = arith.constant dense<0.000000e+00> : vector<14x42xf32>
    %163 = tpu.matmul %162, %4, %cst_80 {dimension_numbers = #tpu.dot_dimension_numbers<[1], [0], [0], [1], [0, 0, 1, 1], [], []>} : vector<14x84xf32>, vector<84x42xf32>, vector<14x42xf32> -> vector<14x42xf32>
    %cst_81 = arith.constant dense<0.000000e+00> : vector<14x42xf32>
    %164 = tpu.matmul %162, %5, %cst_81 {dimension_numbers = #tpu.dot_dimension_numbers<[1], [0], [0], [1], [0, 0, 1, 1], [], []>} : vector<14x84xf32>, vector<84x42xf32>, vector<14x42xf32> -> vector<14x42xf32>
    %165 = arith.maximumf %163, %164 : vector<14x42xf32>
    %cst_82 = arith.constant dense<0.000000e+00> : vector<7x42xf32>
    %166 = tpu.matmul %6, %165, %cst_82 {dimension_numbers = #tpu.dot_dimension_numbers<[1], [0], [0], [1], [0, 0, 1, 1], [], []>} : vector<7x14xf32>, vector<14x42xf32>, vector<7x42xf32> -> vector<7x42xf32>
    %cst_83 = arith.constant dense<0.000000e+00> : vector<7x42xf32>
    %167 = tpu.matmul %7, %165, %cst_83 {dimension_numbers = #tpu.dot_dimension_numbers<[1], [0], [0], [1], [0, 0, 1, 1], [], []>} : vector<7x14xf32>, vector<14x42xf32>, vector<7x42xf32> -> vector<7x42xf32>
    %168 = arith.maximumf %166, %167 : vector<7x42xf32>
    %169 = vector.extract_strided_slice %168 {offsets = [0, 0], sizes = [5, 42], strides = [1, 1]} : vector<7x42xf32> to vector<5x42xf32>
    %cst_84 = arith.constant dense<0.000000e+00> : vector<5x80xf32>
    %170 = tpu.matmul %169, %8, %cst_84 {dimension_numbers = #tpu.dot_dimension_numbers<[1], [0], [0], [1], [0, 0, 1, 1], [], []>} : vector<5x42xf32>, vector<42x80xf32>, vector<5x80xf32> -> vector<5x80xf32>
    %171 = vector.extract_strided_slice %168 {offsets = [1, 0], sizes = [5, 42], strides = [1, 1]} : vector<7x42xf32> to vector<5x42xf32>
    %cst_85 = arith.constant dense<0.000000e+00> : vector<5x80xf32>
    %172 = tpu.matmul %171, %9, %cst_85 {dimension_numbers = #tpu.dot_dimension_numbers<[1], [0], [0], [1], [0, 0, 1, 1], [], []>} : vector<5x42xf32>, vector<42x80xf32>, vector<5x80xf32> -> vector<5x80xf32>
    %173 = arith.addf %170, %172 : vector<5x80xf32>
    %174 = vector.extract_strided_slice %168 {offsets = [2, 0], sizes = [5, 42], strides = [1, 1]} : vector<7x42xf32> to vector<5x42xf32>
    %cst_86 = arith.constant dense<0.000000e+00> : vector<5x80xf32>
    %175 = tpu.matmul %174, %10, %cst_86 {dimension_numbers = #tpu.dot_dimension_numbers<[1], [0], [0], [1], [0, 0, 1, 1], [], []>} : vector<5x42xf32>, vector<42x80xf32>, vector<5x80xf32> -> vector<5x80xf32>
    %176 = arith.addf %173, %175 : vector<5x80xf32>
    %177 = vector.broadcast %11 : vector<1x80xf32> to vector<5x80xf32>
    %178 = arith.addf %176, %177 : vector<5x80xf32>
    %cst_87 = arith.constant 0.000000e+00 : f32
    %179 = vector.broadcast %cst_87 : f32 to vector<5x80xf32>
    %180 = arith.maximumf %178, %179 : vector<5x80xf32>
    %cst_88 = arith.constant dense<0.000000e+00> : vector<5x32xf32>
    %181 = tpu.matmul %180, %12, %cst_88 {dimension_numbers = #tpu.dot_dimension_numbers<[1], [0], [0], [1], [0, 0, 1, 1], [], []>} : vector<5x80xf32>, vector<80x32xf32>, vector<5x32xf32> -> vector<5x32xf32>
    %cst_89 = arith.constant dense<0.000000e+00> : vector<5x32xf32>
    %182 = tpu.matmul %180, %13, %cst_89 {dimension_numbers = #tpu.dot_dimension_numbers<[1], [0], [0], [1], [0, 0, 1, 1], [], []>} : vector<5x80xf32>, vector<80x32xf32>, vector<5x32xf32> -> vector<5x32xf32>
    %183 = arith.maximumf %181, %182 : vector<5x32xf32>
    %184 = vector.extract_strided_slice %183 {offsets = [0, 0], sizes = [1, 32], strides = [1, 1]} : vector<5x32xf32> to vector<1x32xf32>
    %185 = vector.extract_strided_slice %183 {offsets = [1, 0], sizes = [1, 32], strides = [1, 1]} : vector<5x32xf32> to vector<1x32xf32>
    %186 = arith.maximumf %184, %185 : vector<1x32xf32>
    %187 = vector.extract_strided_slice %183 {offsets = [2, 0], sizes = [1, 32], strides = [1, 1]} : vector<5x32xf32> to vector<1x32xf32>
    %188 = vector.extract_strided_slice %183 {offsets = [3, 0], sizes = [1, 32], strides = [1, 1]} : vector<5x32xf32> to vector<1x32xf32>
    %189 = arith.maximumf %187, %188 : vector<1x32xf32>
    %190 = tpu.concatenate %186, %189 in 1 : vector<1x32xf32>, vector<1x32xf32> -> vector<1x64xf32>
    %c3_90 = arith.constant 3 : index
    %c0_91 = arith.constant 0 : index
    %191 = vector.load %arg4[%c3_90, %c0_91] : memref<8x64xf32, #tpu.memory_space<vmem>>, vector<1x64xf32>
    tpu.vector_store %arg4[%c3_90, %c0_91], %190 {strides = array<i32>} : memref<8x64xf32, #tpu.memory_space<vmem>>, vector<1x64xf32>,
    %c4 = arith.constant 4 : index
    %c0_92 = arith.constant 0 : index
    %c0_93 = arith.constant 0 : index
    %192 = vector.load %arg1[%c4, %c0_92, %c0_93] : memref<8x16x16xf32, #tpu.memory_space<vmem>>, vector<1x16x16xf32>
    %193 = vector.shape_cast %192 : vector<1x16x16xf32> to vector<16x16xf32>
    %194 = vector.extract_strided_slice %193 {offsets = [0, 0], sizes = [14, 16], strides = [1, 1]} : vector<16x16xf32> to vector<14x16xf32>
    %cst_94 = arith.constant dense<0.000000e+00> : vector<14x84xf32>
    %195 = tpu.matmul %194, %0, %cst_94 {dimension_numbers = #tpu.dot_dimension_numbers<[1], [0], [0], [1], [0, 0, 1, 1], [], []>} : vector<14x16xf32>, vector<16x84xf32>, vector<14x84xf32> -> vector<14x84xf32>
    %196 = vector.extract_strided_slice %193 {offsets = [1, 0], sizes = [14, 16], strides = [1, 1]} : vector<16x16xf32> to vector<14x16xf32>
    %cst_95 = arith.constant dense<0.000000e+00> : vector<14x84xf32>
    %197 = tpu.matmul %196, %1, %cst_95 {dimension_numbers = #tpu.dot_dimension_numbers<[1], [0], [0], [1], [0, 0, 1, 1], [], []>} : vector<14x16xf32>, vector<16x84xf32>, vector<14x84xf32> -> vector<14x84xf32>
    %198 = arith.addf %195, %197 : vector<14x84xf32>
    %199 = vector.extract_strided_slice %193 {offsets = [2, 0], sizes = [14, 16], strides = [1, 1]} : vector<16x16xf32> to vector<14x16xf32>
    %cst_96 = arith.constant dense<0.000000e+00> : vector<14x84xf32>
    %200 = tpu.matmul %199, %2, %cst_96 {dimension_numbers = #tpu.dot_dimension_numbers<[1], [0], [0], [1], [0, 0, 1, 1], [], []>} : vector<14x16xf32>, vector<16x84xf32>, vector<14x84xf32> -> vector<14x84xf32>
    %201 = arith.addf %198, %200 : vector<14x84xf32>
    %202 = vector.broadcast %3 : vector<1x84xf32> to vector<14x84xf32>
    %203 = arith.addf %201, %202 : vector<14x84xf32>
    %cst_97 = arith.constant 0.000000e+00 : f32
    %204 = vector.broadcast %cst_97 : f32 to vector<14x84xf32>
    %205 = arith.maximumf %203, %204 : vector<14x84xf32>
    %cst_98 = arith.constant dense<0.000000e+00> : vector<14x42xf32>
    %206 = tpu.matmul %205, %4, %cst_98 {dimension_numbers = #tpu.dot_dimension_numbers<[1], [0], [0], [1], [0, 0, 1, 1], [], []>} : vector<14x84xf32>, vector<84x42xf32>, vector<14x42xf32> -> vector<14x42xf32>
    %cst_99 = arith.constant dense<0.000000e+00> : vector<14x42xf32>
    %207 = tpu.matmul %205, %5, %cst_99 {dimension_numbers = #tpu.dot_dimension_numbers<[1], [0], [0], [1], [0, 0, 1, 1], [], []>} : vector<14x84xf32>, vector<84x42xf32>, vector<14x42xf32> -> vector<14x42xf32>
    %208 = arith.maximumf %206, %207 : vector<14x42xf32>
    %cst_100 = arith.constant dense<0.000000e+00> : vector<7x42xf32>
    %209 = tpu.matmul %6, %208, %cst_100 {dimension_numbers = #tpu.dot_dimension_numbers<[1], [0], [0], [1], [0, 0, 1, 1], [], []>} : vector<7x14xf32>, vector<14x42xf32>, vector<7x42xf32> -> vector<7x42xf32>
    %cst_101 = arith.constant dense<0.000000e+00> : vector<7x42xf32>
    %210 = tpu.matmul %7, %208, %cst_101 {dimension_numbers = #tpu.dot_dimension_numbers<[1], [0], [0], [1], [0, 0, 1, 1], [], []>} : vector<7x14xf32>, vector<14x42xf32>, vector<7x42xf32> -> vector<7x42xf32>
    %211 = arith.maximumf %209, %210 : vector<7x42xf32>
    %212 = vector.extract_strided_slice %211 {offsets = [0, 0], sizes = [5, 42], strides = [1, 1]} : vector<7x42xf32> to vector<5x42xf32>
    %cst_102 = arith.constant dense<0.000000e+00> : vector<5x80xf32>
    %213 = tpu.matmul %212, %8, %cst_102 {dimension_numbers = #tpu.dot_dimension_numbers<[1], [0], [0], [1], [0, 0, 1, 1], [], []>} : vector<5x42xf32>, vector<42x80xf32>, vector<5x80xf32> -> vector<5x80xf32>
    %214 = vector.extract_strided_slice %211 {offsets = [1, 0], sizes = [5, 42], strides = [1, 1]} : vector<7x42xf32> to vector<5x42xf32>
    %cst_103 = arith.constant dense<0.000000e+00> : vector<5x80xf32>
    %215 = tpu.matmul %214, %9, %cst_103 {dimension_numbers = #tpu.dot_dimension_numbers<[1], [0], [0], [1], [0, 0, 1, 1], [], []>} : vector<5x42xf32>, vector<42x80xf32>, vector<5x80xf32> -> vector<5x80xf32>
    %216 = arith.addf %213, %215 : vector<5x80xf32>
    %217 = vector.extract_strided_slice %211 {offsets = [2, 0], sizes = [5, 42], strides = [1, 1]} : vector<7x42xf32> to vector<5x42xf32>
    %cst_104 = arith.constant dense<0.000000e+00> : vector<5x80xf32>
    %218 = tpu.matmul %217, %10, %cst_104 {dimension_numbers = #tpu.dot_dimension_numbers<[1], [0], [0], [1], [0, 0, 1, 1], [], []>} : vector<5x42xf32>, vector<42x80xf32>, vector<5x80xf32> -> vector<5x80xf32>
    %219 = arith.addf %216, %218 : vector<5x80xf32>
    %220 = vector.broadcast %11 : vector<1x80xf32> to vector<5x80xf32>
    %221 = arith.addf %219, %220 : vector<5x80xf32>
    %cst_105 = arith.constant 0.000000e+00 : f32
    %222 = vector.broadcast %cst_105 : f32 to vector<5x80xf32>
    %223 = arith.maximumf %221, %222 : vector<5x80xf32>
    %cst_106 = arith.constant dense<0.000000e+00> : vector<5x32xf32>
    %224 = tpu.matmul %223, %12, %cst_106 {dimension_numbers = #tpu.dot_dimension_numbers<[1], [0], [0], [1], [0, 0, 1, 1], [], []>} : vector<5x80xf32>, vector<80x32xf32>, vector<5x32xf32> -> vector<5x32xf32>
    %cst_107 = arith.constant dense<0.000000e+00> : vector<5x32xf32>
    %225 = tpu.matmul %223, %13, %cst_107 {dimension_numbers = #tpu.dot_dimension_numbers<[1], [0], [0], [1], [0, 0, 1, 1], [], []>} : vector<5x80xf32>, vector<80x32xf32>, vector<5x32xf32> -> vector<5x32xf32>
    %226 = arith.maximumf %224, %225 : vector<5x32xf32>
    %227 = vector.extract_strided_slice %226 {offsets = [0, 0], sizes = [1, 32], strides = [1, 1]} : vector<5x32xf32> to vector<1x32xf32>
    %228 = vector.extract_strided_slice %226 {offsets = [1, 0], sizes = [1, 32], strides = [1, 1]} : vector<5x32xf32> to vector<1x32xf32>
    %229 = arith.maximumf %227, %228 : vector<1x32xf32>
    %230 = vector.extract_strided_slice %226 {offsets = [2, 0], sizes = [1, 32], strides = [1, 1]} : vector<5x32xf32> to vector<1x32xf32>
    %231 = vector.extract_strided_slice %226 {offsets = [3, 0], sizes = [1, 32], strides = [1, 1]} : vector<5x32xf32> to vector<1x32xf32>
    %232 = arith.maximumf %230, %231 : vector<1x32xf32>
    %233 = tpu.concatenate %229, %232 in 1 : vector<1x32xf32>, vector<1x32xf32> -> vector<1x64xf32>
    %c4_108 = arith.constant 4 : index
    %c0_109 = arith.constant 0 : index
    %234 = vector.load %arg4[%c4_108, %c0_109] : memref<8x64xf32, #tpu.memory_space<vmem>>, vector<1x64xf32>
    tpu.vector_store %arg4[%c4_108, %c0_109], %233 {strides = array<i32>} : memref<8x64xf32, #tpu.memory_space<vmem>>, vector<1x64xf32>,
    %c5 = arith.constant 5 : index
    %c0_110 = arith.constant 0 : index
    %c0_111 = arith.constant 0 : index
    %235 = vector.load %arg1[%c5, %c0_110, %c0_111] : memref<8x16x16xf32, #tpu.memory_space<vmem>>, vector<1x16x16xf32>
    %236 = vector.shape_cast %235 : vector<1x16x16xf32> to vector<16x16xf32>
    %237 = vector.extract_strided_slice %236 {offsets = [0, 0], sizes = [14, 16], strides = [1, 1]} : vector<16x16xf32> to vector<14x16xf32>
    %cst_112 = arith.constant dense<0.000000e+00> : vector<14x84xf32>
    %238 = tpu.matmul %237, %0, %cst_112 {dimension_numbers = #tpu.dot_dimension_numbers<[1], [0], [0], [1], [0, 0, 1, 1], [], []>} : vector<14x16xf32>, vector<16x84xf32>, vector<14x84xf32> -> vector<14x84xf32>
    %239 = vector.extract_strided_slice %236 {offsets = [1, 0], sizes = [14, 16], strides = [1, 1]} : vector<16x16xf32> to vector<14x16xf32>
    %cst_113 = arith.constant dense<0.000000e+00> : vector<14x84xf32>
    %240 = tpu.matmul %239, %1, %cst_113 {dimension_numbers = #tpu.dot_dimension_numbers<[1], [0], [0], [1], [0, 0, 1, 1], [], []>} : vector<14x16xf32>, vector<16x84xf32>, vector<14x84xf32> -> vector<14x84xf32>
    %241 = arith.addf %238, %240 : vector<14x84xf32>
    %242 = vector.extract_strided_slice %236 {offsets = [2, 0], sizes = [14, 16], strides = [1, 1]} : vector<16x16xf32> to vector<14x16xf32>
    %cst_114 = arith.constant dense<0.000000e+00> : vector<14x84xf32>
    %243 = tpu.matmul %242, %2, %cst_114 {dimension_numbers = #tpu.dot_dimension_numbers<[1], [0], [0], [1], [0, 0, 1, 1], [], []>} : vector<14x16xf32>, vector<16x84xf32>, vector<14x84xf32> -> vector<14x84xf32>
    %244 = arith.addf %241, %243 : vector<14x84xf32>
    %245 = vector.broadcast %3 : vector<1x84xf32> to vector<14x84xf32>
    %246 = arith.addf %244, %245 : vector<14x84xf32>
    %cst_115 = arith.constant 0.000000e+00 : f32
    %247 = vector.broadcast %cst_115 : f32 to vector<14x84xf32>
    %248 = arith.maximumf %246, %247 : vector<14x84xf32>
    %cst_116 = arith.constant dense<0.000000e+00> : vector<14x42xf32>
    %249 = tpu.matmul %248, %4, %cst_116 {dimension_numbers = #tpu.dot_dimension_numbers<[1], [0], [0], [1], [0, 0, 1, 1], [], []>} : vector<14x84xf32>, vector<84x42xf32>, vector<14x42xf32> -> vector<14x42xf32>
    %cst_117 = arith.constant dense<0.000000e+00> : vector<14x42xf32>
    %250 = tpu.matmul %248, %5, %cst_117 {dimension_numbers = #tpu.dot_dimension_numbers<[1], [0], [0], [1], [0, 0, 1, 1], [], []>} : vector<14x84xf32>, vector<84x42xf32>, vector<14x42xf32> -> vector<14x42xf32>
    %251 = arith.maximumf %249, %250 : vector<14x42xf32>
    %cst_118 = arith.constant dense<0.000000e+00> : vector<7x42xf32>
    %252 = tpu.matmul %6, %251, %cst_118 {dimension_numbers = #tpu.dot_dimension_numbers<[1], [0], [0], [1], [0, 0, 1, 1], [], []>} : vector<7x14xf32>, vector<14x42xf32>, vector<7x42xf32> -> vector<7x42xf32>
    %cst_119 = arith.constant dense<0.000000e+00> : vector<7x42xf32>
    %253 = tpu.matmul %7, %251, %cst_119 {dimension_numbers = #tpu.dot_dimension_numbers<[1], [0], [0], [1], [0, 0, 1, 1], [], []>} : vector<7x14xf32>, vector<14x42xf32>, vector<7x42xf32> -> vector<7x42xf32>
    %254 = arith.maximumf %252, %253 : vector<7x42xf32>
    %255 = vector.extract_strided_slice %254 {offsets = [0, 0], sizes = [5, 42], strides = [1, 1]} : vector<7x42xf32> to vector<5x42xf32>
    %cst_120 = arith.constant dense<0.000000e+00> : vector<5x80xf32>
    %256 = tpu.matmul %255, %8, %cst_120 {dimension_numbers = #tpu.dot_dimension_numbers<[1], [0], [0], [1], [0, 0, 1, 1], [], []>} : vector<5x42xf32>, vector<42x80xf32>, vector<5x80xf32> -> vector<5x80xf32>
    %257 = vector.extract_strided_slice %254 {offsets = [1, 0], sizes = [5, 42], strides = [1, 1]} : vector<7x42xf32> to vector<5x42xf32>
    %cst_121 = arith.constant dense<0.000000e+00> : vector<5x80xf32>
    %258 = tpu.matmul %257, %9, %cst_121 {dimension_numbers = #tpu.dot_dimension_numbers<[1], [0], [0], [1], [0, 0, 1, 1], [], []>} : vector<5x42xf32>, vector<42x80xf32>, vector<5x80xf32> -> vector<5x80xf32>
    %259 = arith.addf %256, %258 : vector<5x80xf32>
    %260 = vector.extract_strided_slice %254 {offsets = [2, 0], sizes = [5, 42], strides = [1, 1]} : vector<7x42xf32> to vector<5x42xf32>
    %cst_122 = arith.constant dense<0.000000e+00> : vector<5x80xf32>
    %261 = tpu.matmul %260, %10, %cst_122 {dimension_numbers = #tpu.dot_dimension_numbers<[1], [0], [0], [1], [0, 0, 1, 1], [], []>} : vector<5x42xf32>, vector<42x80xf32>, vector<5x80xf32> -> vector<5x80xf32>
    %262 = arith.addf %259, %261 : vector<5x80xf32>
    %263 = vector.broadcast %11 : vector<1x80xf32> to vector<5x80xf32>
    %264 = arith.addf %262, %263 : vector<5x80xf32>
    %cst_123 = arith.constant 0.000000e+00 : f32
    %265 = vector.broadcast %cst_123 : f32 to vector<5x80xf32>
    %266 = arith.maximumf %264, %265 : vector<5x80xf32>
    %cst_124 = arith.constant dense<0.000000e+00> : vector<5x32xf32>
    %267 = tpu.matmul %266, %12, %cst_124 {dimension_numbers = #tpu.dot_dimension_numbers<[1], [0], [0], [1], [0, 0, 1, 1], [], []>} : vector<5x80xf32>, vector<80x32xf32>, vector<5x32xf32> -> vector<5x32xf32>
    %cst_125 = arith.constant dense<0.000000e+00> : vector<5x32xf32>
    %268 = tpu.matmul %266, %13, %cst_125 {dimension_numbers = #tpu.dot_dimension_numbers<[1], [0], [0], [1], [0, 0, 1, 1], [], []>} : vector<5x80xf32>, vector<80x32xf32>, vector<5x32xf32> -> vector<5x32xf32>
    %269 = arith.maximumf %267, %268 : vector<5x32xf32>
    %270 = vector.extract_strided_slice %269 {offsets = [0, 0], sizes = [1, 32], strides = [1, 1]} : vector<5x32xf32> to vector<1x32xf32>
    %271 = vector.extract_strided_slice %269 {offsets = [1, 0], sizes = [1, 32], strides = [1, 1]} : vector<5x32xf32> to vector<1x32xf32>
    %272 = arith.maximumf %270, %271 : vector<1x32xf32>
    %273 = vector.extract_strided_slice %269 {offsets = [2, 0], sizes = [1, 32], strides = [1, 1]} : vector<5x32xf32> to vector<1x32xf32>
    %274 = vector.extract_strided_slice %269 {offsets = [3, 0], sizes = [1, 32], strides = [1, 1]} : vector<5x32xf32> to vector<1x32xf32>
    %275 = arith.maximumf %273, %274 : vector<1x32xf32>
    %276 = tpu.concatenate %272, %275 in 1 : vector<1x32xf32>, vector<1x32xf32> -> vector<1x64xf32>
    %c5_126 = arith.constant 5 : index
    %c0_127 = arith.constant 0 : index
    %277 = vector.load %arg4[%c5_126, %c0_127] : memref<8x64xf32, #tpu.memory_space<vmem>>, vector<1x64xf32>
    tpu.vector_store %arg4[%c5_126, %c0_127], %276 {strides = array<i32>} : memref<8x64xf32, #tpu.memory_space<vmem>>, vector<1x64xf32>,
    %c6 = arith.constant 6 : index
    %c0_128 = arith.constant 0 : index
    %c0_129 = arith.constant 0 : index
    %278 = vector.load %arg1[%c6, %c0_128, %c0_129] : memref<8x16x16xf32, #tpu.memory_space<vmem>>, vector<1x16x16xf32>
    %279 = vector.shape_cast %278 : vector<1x16x16xf32> to vector<16x16xf32>
    %280 = vector.extract_strided_slice %279 {offsets = [0, 0], sizes = [14, 16], strides = [1, 1]} : vector<16x16xf32> to vector<14x16xf32>
    %cst_130 = arith.constant dense<0.000000e+00> : vector<14x84xf32>
    %281 = tpu.matmul %280, %0, %cst_130 {dimension_numbers = #tpu.dot_dimension_numbers<[1], [0], [0], [1], [0, 0, 1, 1], [], []>} : vector<14x16xf32>, vector<16x84xf32>, vector<14x84xf32> -> vector<14x84xf32>
    %282 = vector.extract_strided_slice %279 {offsets = [1, 0], sizes = [14, 16], strides = [1, 1]} : vector<16x16xf32> to vector<14x16xf32>
    %cst_131 = arith.constant dense<0.000000e+00> : vector<14x84xf32>
    %283 = tpu.matmul %282, %1, %cst_131 {dimension_numbers = #tpu.dot_dimension_numbers<[1], [0], [0], [1], [0, 0, 1, 1], [], []>} : vector<14x16xf32>, vector<16x84xf32>, vector<14x84xf32> -> vector<14x84xf32>
    %284 = arith.addf %281, %283 : vector<14x84xf32>
    %285 = vector.extract_strided_slice %279 {offsets = [2, 0], sizes = [14, 16], strides = [1, 1]} : vector<16x16xf32> to vector<14x16xf32>
    %cst_132 = arith.constant dense<0.000000e+00> : vector<14x84xf32>
    %286 = tpu.matmul %285, %2, %cst_132 {dimension_numbers = #tpu.dot_dimension_numbers<[1], [0], [0], [1], [0, 0, 1, 1], [], []>} : vector<14x16xf32>, vector<16x84xf32>, vector<14x84xf32> -> vector<14x84xf32>
    %287 = arith.addf %284, %286 : vector<14x84xf32>
    %288 = vector.broadcast %3 : vector<1x84xf32> to vector<14x84xf32>
    %289 = arith.addf %287, %288 : vector<14x84xf32>
    %cst_133 = arith.constant 0.000000e+00 : f32
    %290 = vector.broadcast %cst_133 : f32 to vector<14x84xf32>
    %291 = arith.maximumf %289, %290 : vector<14x84xf32>
    %cst_134 = arith.constant dense<0.000000e+00> : vector<14x42xf32>
    %292 = tpu.matmul %291, %4, %cst_134 {dimension_numbers = #tpu.dot_dimension_numbers<[1], [0], [0], [1], [0, 0, 1, 1], [], []>} : vector<14x84xf32>, vector<84x42xf32>, vector<14x42xf32> -> vector<14x42xf32>
    %cst_135 = arith.constant dense<0.000000e+00> : vector<14x42xf32>
    %293 = tpu.matmul %291, %5, %cst_135 {dimension_numbers = #tpu.dot_dimension_numbers<[1], [0], [0], [1], [0, 0, 1, 1], [], []>} : vector<14x84xf32>, vector<84x42xf32>, vector<14x42xf32> -> vector<14x42xf32>
    %294 = arith.maximumf %292, %293 : vector<14x42xf32>
    %cst_136 = arith.constant dense<0.000000e+00> : vector<7x42xf32>
    %295 = tpu.matmul %6, %294, %cst_136 {dimension_numbers = #tpu.dot_dimension_numbers<[1], [0], [0], [1], [0, 0, 1, 1], [], []>} : vector<7x14xf32>, vector<14x42xf32>, vector<7x42xf32> -> vector<7x42xf32>
    %cst_137 = arith.constant dense<0.000000e+00> : vector<7x42xf32>
    %296 = tpu.matmul %7, %294, %cst_137 {dimension_numbers = #tpu.dot_dimension_numbers<[1], [0], [0], [1], [0, 0, 1, 1], [], []>} : vector<7x14xf32>, vector<14x42xf32>, vector<7x42xf32> -> vector<7x42xf32>
    %297 = arith.maximumf %295, %296 : vector<7x42xf32>
    %298 = vector.extract_strided_slice %297 {offsets = [0, 0], sizes = [5, 42], strides = [1, 1]} : vector<7x42xf32> to vector<5x42xf32>
    %cst_138 = arith.constant dense<0.000000e+00> : vector<5x80xf32>
    %299 = tpu.matmul %298, %8, %cst_138 {dimension_numbers = #tpu.dot_dimension_numbers<[1], [0], [0], [1], [0, 0, 1, 1], [], []>} : vector<5x42xf32>, vector<42x80xf32>, vector<5x80xf32> -> vector<5x80xf32>
    %300 = vector.extract_strided_slice %297 {offsets = [1, 0], sizes = [5, 42], strides = [1, 1]} : vector<7x42xf32> to vector<5x42xf32>
    %cst_139 = arith.constant dense<0.000000e+00> : vector<5x80xf32>
    %301 = tpu.matmul %300, %9, %cst_139 {dimension_numbers = #tpu.dot_dimension_numbers<[1], [0], [0], [1], [0, 0, 1, 1], [], []>} : vector<5x42xf32>, vector<42x80xf32>, vector<5x80xf32> -> vector<5x80xf32>
    %302 = arith.addf %299, %301 : vector<5x80xf32>
    %303 = vector.extract_strided_slice %297 {offsets = [2, 0], sizes = [5, 42], strides = [1, 1]} : vector<7x42xf32> to vector<5x42xf32>
    %cst_140 = arith.constant dense<0.000000e+00> : vector<5x80xf32>
    %304 = tpu.matmul %303, %10, %cst_140 {dimension_numbers = #tpu.dot_dimension_numbers<[1], [0], [0], [1], [0, 0, 1, 1], [], []>} : vector<5x42xf32>, vector<42x80xf32>, vector<5x80xf32> -> vector<5x80xf32>
    %305 = arith.addf %302, %304 : vector<5x80xf32>
    %306 = vector.broadcast %11 : vector<1x80xf32> to vector<5x80xf32>
    %307 = arith.addf %305, %306 : vector<5x80xf32>
    %cst_141 = arith.constant 0.000000e+00 : f32
    %308 = vector.broadcast %cst_141 : f32 to vector<5x80xf32>
    %309 = arith.maximumf %307, %308 : vector<5x80xf32>
    %cst_142 = arith.constant dense<0.000000e+00> : vector<5x32xf32>
    %310 = tpu.matmul %309, %12, %cst_142 {dimension_numbers = #tpu.dot_dimension_numbers<[1], [0], [0], [1], [0, 0, 1, 1], [], []>} : vector<5x80xf32>, vector<80x32xf32>, vector<5x32xf32> -> vector<5x32xf32>
    %cst_143 = arith.constant dense<0.000000e+00> : vector<5x32xf32>
    %311 = tpu.matmul %309, %13, %cst_143 {dimension_numbers = #tpu.dot_dimension_numbers<[1], [0], [0], [1], [0, 0, 1, 1], [], []>} : vector<5x80xf32>, vector<80x32xf32>, vector<5x32xf32> -> vector<5x32xf32>
    %312 = arith.maximumf %310, %311 : vector<5x32xf32>
    %313 = vector.extract_strided_slice %312 {offsets = [0, 0], sizes = [1, 32], strides = [1, 1]} : vector<5x32xf32> to vector<1x32xf32>
    %314 = vector.extract_strided_slice %312 {offsets = [1, 0], sizes = [1, 32], strides = [1, 1]} : vector<5x32xf32> to vector<1x32xf32>
    %315 = arith.maximumf %313, %314 : vector<1x32xf32>
    %316 = vector.extract_strided_slice %312 {offsets = [2, 0], sizes = [1, 32], strides = [1, 1]} : vector<5x32xf32> to vector<1x32xf32>
    %317 = vector.extract_strided_slice %312 {offsets = [3, 0], sizes = [1, 32], strides = [1, 1]} : vector<5x32xf32> to vector<1x32xf32>
    %318 = arith.maximumf %316, %317 : vector<1x32xf32>
    %319 = tpu.concatenate %315, %318 in 1 : vector<1x32xf32>, vector<1x32xf32> -> vector<1x64xf32>
    %c6_144 = arith.constant 6 : index
    %c0_145 = arith.constant 0 : index
    %320 = vector.load %arg4[%c6_144, %c0_145] : memref<8x64xf32, #tpu.memory_space<vmem>>, vector<1x64xf32>
    tpu.vector_store %arg4[%c6_144, %c0_145], %319 {strides = array<i32>} : memref<8x64xf32, #tpu.memory_space<vmem>>, vector<1x64xf32>,
    %c7 = arith.constant 7 : index
    %c0_146 = arith.constant 0 : index
    %c0_147 = arith.constant 0 : index
    %321 = vector.load %arg1[%c7, %c0_146, %c0_147] : memref<8x16x16xf32, #tpu.memory_space<vmem>>, vector<1x16x16xf32>
    %322 = vector.shape_cast %321 : vector<1x16x16xf32> to vector<16x16xf32>
    %323 = vector.extract_strided_slice %322 {offsets = [0, 0], sizes = [14, 16], strides = [1, 1]} : vector<16x16xf32> to vector<14x16xf32>
    %cst_148 = arith.constant dense<0.000000e+00> : vector<14x84xf32>
    %324 = tpu.matmul %323, %0, %cst_148 {dimension_numbers = #tpu.dot_dimension_numbers<[1], [0], [0], [1], [0, 0, 1, 1], [], []>} : vector<14x16xf32>, vector<16x84xf32>, vector<14x84xf32> -> vector<14x84xf32>
    %325 = vector.extract_strided_slice %322 {offsets = [1, 0], sizes = [14, 16], strides = [1, 1]} : vector<16x16xf32> to vector<14x16xf32>
    %cst_149 = arith.constant dense<0.000000e+00> : vector<14x84xf32>
    %326 = tpu.matmul %325, %1, %cst_149 {dimension_numbers = #tpu.dot_dimension_numbers<[1], [0], [0], [1], [0, 0, 1, 1], [], []>} : vector<14x16xf32>, vector<16x84xf32>, vector<14x84xf32> -> vector<14x84xf32>
    %327 = arith.addf %324, %326 : vector<14x84xf32>
    %328 = vector.extract_strided_slice %322 {offsets = [2, 0], sizes = [14, 16], strides = [1, 1]} : vector<16x16xf32> to vector<14x16xf32>
    %cst_150 = arith.constant dense<0.000000e+00> : vector<14x84xf32>
    %329 = tpu.matmul %328, %2, %cst_150 {dimension_numbers = #tpu.dot_dimension_numbers<[1], [0], [0], [1], [0, 0, 1, 1], [], []>} : vector<14x16xf32>, vector<16x84xf32>, vector<14x84xf32> -> vector<14x84xf32>
    %330 = arith.addf %327, %329 : vector<14x84xf32>
    %331 = vector.broadcast %3 : vector<1x84xf32> to vector<14x84xf32>
    %332 = arith.addf %330, %331 : vector<14x84xf32>
    %cst_151 = arith.constant 0.000000e+00 : f32
    %333 = vector.broadcast %cst_151 : f32 to vector<14x84xf32>
    %334 = arith.maximumf %332, %333 : vector<14x84xf32>
    %cst_152 = arith.constant dense<0.000000e+00> : vector<14x42xf32>
    %335 = tpu.matmul %334, %4, %cst_152 {dimension_numbers = #tpu.dot_dimension_numbers<[1], [0], [0], [1], [0, 0, 1, 1], [], []>} : vector<14x84xf32>, vector<84x42xf32>, vector<14x42xf32> -> vector<14x42xf32>
    %cst_153 = arith.constant dense<0.000000e+00> : vector<14x42xf32>
    %336 = tpu.matmul %334, %5, %cst_153 {dimension_numbers = #tpu.dot_dimension_numbers<[1], [0], [0], [1], [0, 0, 1, 1], [], []>} : vector<14x84xf32>, vector<84x42xf32>, vector<14x42xf32> -> vector<14x42xf32>
    %337 = arith.maximumf %335, %336 : vector<14x42xf32>
    %cst_154 = arith.constant dense<0.000000e+00> : vector<7x42xf32>
    %338 = tpu.matmul %6, %337, %cst_154 {dimension_numbers = #tpu.dot_dimension_numbers<[1], [0], [0], [1], [0, 0, 1, 1], [], []>} : vector<7x14xf32>, vector<14x42xf32>, vector<7x42xf32> -> vector<7x42xf32>
    %cst_155 = arith.constant dense<0.000000e+00> : vector<7x42xf32>
    %339 = tpu.matmul %7, %337, %cst_155 {dimension_numbers = #tpu.dot_dimension_numbers<[1], [0], [0], [1], [0, 0, 1, 1], [], []>} : vector<7x14xf32>, vector<14x42xf32>, vector<7x42xf32> -> vector<7x42xf32>
    %340 = arith.maximumf %338, %339 : vector<7x42xf32>
    %341 = vector.extract_strided_slice %340 {offsets = [0, 0], sizes = [5, 42], strides = [1, 1]} : vector<7x42xf32> to vector<5x42xf32>
    %cst_156 = arith.constant dense<0.000000e+00> : vector<5x80xf32>
    %342 = tpu.matmul %341, %8, %cst_156 {dimension_numbers = #tpu.dot_dimension_numbers<[1], [0], [0], [1], [0, 0, 1, 1], [], []>} : vector<5x42xf32>, vector<42x80xf32>, vector<5x80xf32> -> vector<5x80xf32>
    %343 = vector.extract_strided_slice %340 {offsets = [1, 0], sizes = [5, 42], strides = [1, 1]} : vector<7x42xf32> to vector<5x42xf32>
    %cst_157 = arith.constant dense<0.000000e+00> : vector<5x80xf32>
    %344 = tpu.matmul %343, %9, %cst_157 {dimension_numbers = #tpu.dot_dimension_numbers<[1], [0], [0], [1], [0, 0, 1, 1], [], []>} : vector<5x42xf32>, vector<42x80xf32>, vector<5x80xf32> -> vector<5x80xf32>
    %345 = arith.addf %342, %344 : vector<5x80xf32>
    %346 = vector.extract_strided_slice %340 {offsets = [2, 0], sizes = [5, 42], strides = [1, 1]} : vector<7x42xf32> to vector<5x42xf32>
    %cst_158 = arith.constant dense<0.000000e+00> : vector<5x80xf32>
    %347 = tpu.matmul %346, %10, %cst_158 {dimension_numbers = #tpu.dot_dimension_numbers<[1], [0], [0], [1], [0, 0, 1, 1], [], []>} : vector<5x42xf32>, vector<42x80xf32>, vector<5x80xf32> -> vector<5x80xf32>
    %348 = arith.addf %345, %347 : vector<5x80xf32>
    %349 = vector.broadcast %11 : vector<1x80xf32> to vector<5x80xf32>
    %350 = arith.addf %348, %349 : vector<5x80xf32>
    %cst_159 = arith.constant 0.000000e+00 : f32
    %351 = vector.broadcast %cst_159 : f32 to vector<5x80xf32>
    %352 = arith.maximumf %350, %351 : vector<5x80xf32>
    %cst_160 = arith.constant dense<0.000000e+00> : vector<5x32xf32>
    %353 = tpu.matmul %352, %12, %cst_160 {dimension_numbers = #tpu.dot_dimension_numbers<[1], [0], [0], [1], [0, 0, 1, 1], [], []>} : vector<5x80xf32>, vector<80x32xf32>, vector<5x32xf32> -> vector<5x32xf32>
    %cst_161 = arith.constant dense<0.000000e+00> : vector<5x32xf32>
    %354 = tpu.matmul %352, %13, %cst_161 {dimension_numbers = #tpu.dot_dimension_numbers<[1], [0], [0], [1], [0, 0, 1, 1], [], []>} : vector<5x80xf32>, vector<80x32xf32>, vector<5x32xf32> -> vector<5x32xf32>
    %355 = arith.maximumf %353, %354 : vector<5x32xf32>
    %356 = vector.extract_strided_slice %355 {offsets = [0, 0], sizes = [1, 32], strides = [1, 1]} : vector<5x32xf32> to vector<1x32xf32>
    %357 = vector.extract_strided_slice %355 {offsets = [1, 0], sizes = [1, 32], strides = [1, 1]} : vector<5x32xf32> to vector<1x32xf32>
    %358 = arith.maximumf %356, %357 : vector<1x32xf32>
    %359 = vector.extract_strided_slice %355 {offsets = [2, 0], sizes = [1, 32], strides = [1, 1]} : vector<5x32xf32> to vector<1x32xf32>
    %360 = vector.extract_strided_slice %355 {offsets = [3, 0], sizes = [1, 32], strides = [1, 1]} : vector<5x32xf32> to vector<1x32xf32>
    %361 = arith.maximumf %359, %360 : vector<1x32xf32>
    %362 = tpu.concatenate %358, %361 in 1 : vector<1x32xf32>, vector<1x32xf32> -> vector<1x64xf32>
    %c7_162 = arith.constant 7 : index
    %c0_163 = arith.constant 0 : index
    %363 = vector.load %arg4[%c7_162, %c0_163] : memref<8x64xf32, #tpu.memory_space<vmem>>, vector<1x64xf32>
    tpu.vector_store %arg4[%c7_162, %c0_163], %362 {strides = array<i32>} : memref<8x64xf32, #tpu.memory_space<vmem>>, vector<1x64xf32>,
    %c0_164 = arith.constant 0 : index
    %c0_165 = arith.constant 0 : index
    %364 = vector.load %arg4[%c0_164, %c0_165] : memref<8x64xf32, #tpu.memory_space<vmem>>, vector<8x64xf32>
    %cst_166 = arith.constant dense<0.000000e+00> : vector<8x128xf32>
    %365 = tpu.matmul %364, %14, %cst_166 {dimension_numbers = #tpu.dot_dimension_numbers<[1], [0], [0], [1], [0, 0, 1, 1], [], []>} : vector<8x64xf32>, vector<64x128xf32>, vector<8x128xf32> -> vector<8x128xf32>
    %366 = vector.broadcast %15 : vector<1x128xf32> to vector<8x128xf32>
    %367 = arith.addf %365, %366 : vector<8x128xf32>
    %cst_167 = arith.constant 0.000000e+00 : f32
    %368 = vector.broadcast %cst_167 : f32 to vector<8x128xf32>
    %369 = arith.maximumf %367, %368 : vector<8x128xf32>
    %cst_168 = arith.constant dense<0.000000e+00> : vector<8x64xf32>
    %370 = tpu.matmul %369, %16, %cst_168 {dimension_numbers = #tpu.dot_dimension_numbers<[1], [0], [0], [1], [0, 0, 1, 1], [], []>} : vector<8x128xf32>, vector<128x64xf32>, vector<8x64xf32> -> vector<8x64xf32>
    %371 = vector.broadcast %17 : vector<1x64xf32> to vector<8x64xf32>
    %372 = arith.addf %370, %371 : vector<8x64xf32>
    %cst_169 = arith.constant 0.000000e+00 : f32
    %373 = vector.broadcast %cst_169 : f32 to vector<8x64xf32>
    %374 = arith.maximumf %372, %373 : vector<8x64xf32>
    %cst_170 = arith.constant dense<0.000000e+00> : vector<8x128xf32>
    %375 = tpu.matmul %374, %18, %cst_170 {dimension_numbers = #tpu.dot_dimension_numbers<[1], [0], [0], [1], [0, 0, 1, 1], [], []>} : vector<8x64xf32>, vector<64x128xf32>, vector<8x128xf32> -> vector<8x128xf32>
    %376 = vector.broadcast %19 : vector<1x128xf32> to vector<8x128xf32>
    %377 = arith.addf %375, %376 : vector<8x128xf32>
    %cst_171 = arith.constant dense<0xFF800000> : vector<8xf32>
    %378 = vector.multi_reduction <maximumf>, %377, %cst_171 [1] : vector<8x128xf32> to vector<8xf32>
    %379 = vector.shape_cast %378 : vector<8xf32> to vector<8x1xf32>
    %380 = vector.broadcast %379 : vector<8x1xf32> to vector<8x128xf32>
    %381 = arith.subf %377, %380 : vector<8x128xf32>
    %382 = math.exp %381 : vector<8x128xf32>
    %cst_172 = arith.constant dense<0.000000e+00> : vector<8xf32>
    %383 = vector.multi_reduction <add>, %382, %cst_172 [1] : vector<8x128xf32> to vector<8xf32>
    %384 = vector.shape_cast %383 : vector<8xf32> to vector<8x1xf32>
    %385 = math.log %384 : vector<8x1xf32>
    %386 = vector.broadcast %385 : vector<8x1xf32> to vector<8x128xf32>
    %387 = arith.subf %381, %386 : vector<8x128xf32>
    %c0_173 = arith.constant 0 : index
    %c0_174 = arith.constant 0 : index
    %388 = vector.load %arg3[%c0_173, %c0_174] : memref<8x128xf32, #tpu.memory_space<vmem>>, vector<8x128xf32>
    tpu.vector_store %arg3[%c0_173, %c0_174], %387 {strides = array<i32>} : memref<8x128xf32, #tpu.memory_space<vmem>>, vector<8x128xf32>,
    return
  }
  func.func @transform_0(%arg0: i32) -> (i32, i32, i32) {
    %c0_i32 = arith.constant 0 : i32
    %c0_i32_0 = arith.constant 0 : i32
    %c0_i32_1 = arith.constant 0 : i32
    return %arg0, %c0_i32, %c0_i32_0 : i32, i32, i32
  }
  func.func @transform_1(%arg0: i32) -> (i32, i32) {
    %c0_i32 = arith.constant 0 : i32
    %c0_i32_0 = arith.constant 0 : i32
    %c0_i32_1 = arith.constant 0 : i32
    return %c0_i32, %c0_i32_0 : i32, i32
  }
  func.func @transform_2(%arg0: i32) -> (i32, i32) {
    %c0_i32 = arith.constant 0 : i32
    %c0_i32_0 = arith.constant 0 : i32
    return %arg0, %c0_i32 : i32, i32
  }
}

</mosaic_0001>

<bundles_post_ra>
// kernel: forward.1
= control target key start
LH: loop header
LB: loop body
LE: loop exit
PB: predicated region body
PF: predicated region fallthrough
CT: control target
= control target key end

     0   :  { %7 = vsyncpa [#allocation4], 0  ;;  %s13063_s0 = inlined_call_operand.hbm [shape: f32[16,16,16], index: 0, kind: input, shape index: {}]   ;;  %s13064_s1 = inlined_call_operand.hbm [shape: f32[840,128], index: 1, kind: input, shape index: {}]   ;;  %s13065_s2 = inlined_call_operand.vmem [shape: f32[16,128], index: 2, kind: output, shape index: {}]  }
   0x1   :  { %9 = vsyncpa [#allocation4 + $0x1], 0 }
   0x2   :  { %10 = vsyncpa [#allocation6], 0  ;;  %s11776_s9 = smov 0   ;;  %s11778_s10 = smov 0  }
   0x3   :  { %s11780_s11 = smov 0   ;;  %s11782_s12 = smov 0  }
   0x4 LB: > { %s11795_s13 = sadd.s32 4294967295, %s11750_s12   ;;  %p36_p0 = scmp.ne.s32.totalorder %s11742_s10, %s11738_s9  ;;  %s11750_s12 = sphi %s11782_s12, %s13084_s12   ;;  %s11746_s11 = sphi %s11780_s11, %s13083_s11   ;;  %s11742_s10 = sphi %s11778_s10, %s13082_s10   ;;  %s11738_s9 = sphi %s11776_s9, %s13081_s9  }
   0x5   : > { %p13066_p1 = scmp.eq.s32.totalorder %s11795_s13, 0  ;;  %p8106_p2 = scmp.ge.s32.totalorder %s11750_s12, 1 }
   0x6   : > { %p94_p3 = scmp.lt.s32.totalorder %s11750_s12, 3  ;;  %s11752_s16 = smov [#allocation5]  }
   0x7   : > { %p11803_p4 = por %p13066_p1, %p36_p0  ;;  %s106_s17 = sshll.u32 %s11752_s16, 4  ;;  %s107_s17 = int_to_ptr.vmem [resolvable:$true] %s106_s17 }
   0x8   : > { %p11807_p5 = pnand %p8106_p2, %p94_p3  ;;  %s11820_s19 = sadd.s32 1, %s11750_s12  }
   0x9   : > { %s13069_s14 = scalar_select %p11803_p4, 1, 0 }
   0xa   : > { %s13070_s15 = scalar_select %p11807_p5, 1, 0 }
   0xb   : > { %p11592_p6 = pneg %p11807_p5  ;;  %s23_s20 = sadd.s32 1, %s11746_s11 }
   0xc   : > { %s20_s21 = ssub.s32 %s11750_s12, %s11820_s19  ;;  %s11654_s24 = scalar_lea.hbm %s13064_s1, 13440 }
   0xd   : > { %p11815_p7 = pnand %p11592_p6, %p13066_p1  ;;  %p11655_p8 = scmp.ne.s32.totalorder %s13064_s1, %s11654_s24 }
   0xe   : > { %p11661_p12 = scmp.lt.u32.totalorder %s11654_s24, %s13064_s1 }
   0xf   : > { %p11656_p9 = pneg %p11815_p7 }
  0x11   : > { %p11657_p10 = pnand %p11656_p9, %p11655_p8 }
  0x13   : > { %p11658_p11 = pneg %p11657_p10 }
  0x15   : > { %p11663_p13 = pnand %p11661_p12, %p11658_p11 }
  0x17   : > { %11666 = shalt.err (!%p11663_p13)
}
  0x18   : > { %s11667_s29 = scalar_lea.vmem %s107_s17, 13440  ;;  %p11675_p6 = scmp.lt.s32.totalorder %s107_s17, %s107_s17 }
  0x19   : > { %p11668_p0 = scmp.ne.s32.totalorder %s107_s17, %s11667_s29  ;;  %p11676_p1 = scmp.lt.s32.totalorder %s11667_s29, %s11667_s29 }
  0x1b   : > { %p11670_p2 = pnand %p11668_p0, %p11656_p9  ;;  %p11677_p4 = por %p11676_p1, %p11675_p6 }
  0x1d   : > { %p11671_p3 = pneg %p11670_p2 }
  0x1f   : > { %p11678_p5 = pnand %p11677_p4, %p11671_p3 }
  0x21   : > { %11681 = shalt.err (!%p11678_p5)
}
  0x22   : > { %s11753_s30 = smov 128   ;;  %s11754_s3 = smov 8  }
  0x23   : > { %11595 = dma.hbm_to_vmem [thread:$0]  (!%p11815_p7), %s13064_s1, 13440, %s107_s17, [#allocation6], %s11753_s30, %s11753_s30, %s11754_s3  }
  0x24   : > { %p21_p1 = scmp.eq.s32.totalorder %s20_s21, 0  ;;  %p30_p4 = scmp.ne.s32.totalorder %s11746_s11, %s11742_s10 }
  0x25   : > { %p31_p5 = scmp.eq.s32.totalorder %s11750_s12, 0  ;;  %p11601_p8 = scmp.lt.s32.totalorder %s11750_s12, 2 }
  0x26   : > { %s11849_s6 = scalar_select %p21_p1, %s11746_s11, %s23_s20  }
  0x27   : > { %p32_p9 = por %p31_p5, %p30_p4  ;;  %s120_s7 = sand.u32 1, %s11746_s11  }
  0x28   : > { %s8109_s8 = sshll.u32 %s120_s7, 7  ;;  %s8333_s9 = sshll.u32 %s11750_s12, 11 }
  0x29   : > { %s11856_s18 = scalar_lea.hbm %s13063_s0, %s8333_s9  ;;  %s124_s17 = scalar_lea.vmem [#allocation3], %s8109_s8 }
  0x2a   : > { %s132_s21 = sshll.u32 %s124_s17, 4  ;;  %p11860_p7 = pnand %p11601_p8, %p32_p9  ;;  %s11858_s21 = int_to_ptr.vmem [resolvable:$true] %s132_s21 }
  0x2b   : > { %s11864_s12 = scalar_lea.sflag [#allocation4], %s120_s7  ;;  %s11682_s23 = scalar_lea.hbm %s11856_s18, 2048 }
  0x2c   : > { %p11683_p10 = scmp.ne.s32.totalorder %s11856_s18, %s11682_s23  ;;  %p11684_p11 = pneg %p11860_p7 }
  0x2d   : > { %s11687_s26 = scalar_lea.hbm %s13063_s0, 4096  ;;  %p11688_p0 = scmp.lt.u32.totalorder %s11856_s18, %s13063_s0 }
  0x2e   : > { %p11685_p12 = pnand %p11684_p11, %p11683_p10  ;;  %p11689_p2 = scmp.lt.u32.totalorder %s11687_s26, %s11682_s23 }
  0x2f   : > { %p11691_p6 = scmp.lt.u32.totalorder %s11682_s23, %s11856_s18 }
  0x30   : > { %p11686_p13 = pneg %p11685_p12  ;;  %p11690_p3 = por %p11689_p2, %p11688_p0 }
  0x32   : > { %p11692_p1 = por %p11691_p6, %p11690_p3 }
  0x34   : > { %p11693_p4 = pnand %p11692_p1, %p11686_p13 }
  0x36   : > { %11696 = shalt.err (!%p11693_p4)
}
  0x37   : > { %s11697_s29 = scalar_lea.vmem %s11858_s21, 2048  ;;  %s11755_s4 = smov [#allocation3]  }
  0x38   : > { %p11698_p5 = scmp.ne.s32.totalorder %s11858_s21, %s11697_s29  ;;  %s11702_s5 = sshll.u32 %s11755_s4, 4  ;;  %s11703_s5 = int_to_ptr.vmem [resolvable:$false] %s11702_s5 }
  0x39   : > { %s11704_s7 = scalar_lea.vmem %s11703_s5, 4096  ;;  %p11705_p10 = scmp.lt.s32.totalorder %s11858_s21, %s11703_s5 }
  0x3a   : > { %p11700_p8 = pnand %p11698_p5, %p11684_p11  ;;  %p11706_p12 = scmp.lt.s32.totalorder %s11704_s7, %s11697_s29 }
  0x3c   : > { %p11701_p9 = pneg %p11700_p8  ;;  %p11707_p0 = por %p11706_p12, %p11705_p10 }
  0x3e   : > { %p11708_p2 = pnand %p11707_p0, %p11701_p9 }
  0x40   : > { %11711 = shalt.err (!%p11708_p2)
}
  0x41   : > { %11599 = dma.hbm_to_vmem [thread:$0]  (!%p11860_p7), %s11856_s18, 2048, %s11858_s21, %s11864_s12, %s11753_s30, %s11753_s30, %s11754_s3  }
  0x42   : > { %p13073_p11 = scmp.ne.s32.totalorder %s13070_s15, 0 }
  0x43   : > { %s146_s8 = sand.u32 (!%p13073_p11), 1, %s11742_s10   ;;  %p13074_p13 = scmp.ne.s32.totalorder (!%p13073_p11), %s13069_s14, 0 }
  0x44   : > { %144 = sbr.rel (%p13073_p11) target bundleno = 8619 (0x21ab), region = 28  ;;  %s8114_s9 = sshll.u32 (!%p13073_p11), %s146_s8, 7 }
  0x45   : > { %s147_s16 = scalar_lea.sflag (!%p13073_p11), [#allocation4], %s146_s8  ;;  %s11898_s22 = scalar_lea.vmem (!%p13073_p11), [#allocation3], %s8114_s9 }
  0x4b   : > { %11729 = dma.done.wait (%p13074_p13), %s147_s16, 2048  }
  0x4c   : > { %11731 = vsyncadd (%p13074_p13), %s147_s16, 4294965248  ;;  %p13075_p3 = scmp.eq.s32.totalorder %s11795_s13, 0 }
  0x4e   : > { %11733 = dma.done.wait (%p13075_p3), [#allocation6], 13440   ;;  %p13076_p7 = pmov %p13075_p3 }
  0x4f   : > { %v181_v0 = vld [vmem:[#allocation5 + $0x10] sm:$0xff]  ;;  %v182_v1 = vld [vmem:[#allocation5 + $0x18] sm:$0xff]  ;;  %v284_v2 = vld [vmem:[%s11898_s22] sm:$0xff]  ;;  %vm288_vm0 = vcmask 1046528   ;;  %vm292_vm1 = vcmask 130048   ;;  %vm451_vm2 = vcmask 1045504  }
  0x50   : > { %11735 = vsyncadd (%p13076_p7), [#allocation6], 4294953856  ;;  %v11909_v3 = vpack.c.bf16 %v182_v1, %v181_v0  ;;  %v285_v4 = vld [vmem:[%s11898_s22 + $0x8] sm:$0xff]  ;;  %v289_v5 = vrot.slane %v284_v2, 1  ;;  %v179_v6 = vld [vmem:[#allocation5] sm:$0xff]  ;;  %v452_v23 = vrot.slane %v284_v2, 2 }
  0x51   : > { %v180_v7 = vld [vmem:[#allocation5 + $0x8] sm:$0xff]  ;;  %v290_v8 = vrot.slane %v285_v4, 1  ;;  %v183_v10 = vld [vmem:[#allocation5 + $0x20] sm:$0xff]  ;;  %v186_v12 = vld [vmem:[#allocation5 + $0x38] sm:$0xff]  ;;  %v453_v24 = vrot.slane %v285_v4, 2  ;;  %vm551_vm3 = vcmask 1043456  }
  0x52   : > { %v11912_v9 = vpack.c.bf16 %v180_v7, %v179_v6  ;;  %v184_v11 = vld [vmem:[#allocation5 + $0x28] sm:$0xff]  ;;  %10547 = vmatprep.subr.bf16.mxu0 %v11909_v3  ;;  %v187_v13 = vld [vmem:[#allocation5 + $0x40] sm:$0xff]  ;;  %v189_v17 = vld [vmem:[#allocation5 + $0x50] sm:$0xff]  ;;  %vm544_vm4 = vcmask 687104   ;;  %v11756_v56 = vmov 0.0|0.0   ;;  %vm11757_vm5 = vmmov 0  }
  0x53   : > { %10549 = vmatpush3.bf16.msra.mxu0 %v11909_v3  ;;  %v291_v14 = vsel %vm288_vm0, %v289_v5, %v290_v8  ;;  %v11917_v15 = vpack.c.bf16 %v187_v13, %v186_v12  ;;  %v188_v16 = vld [vmem:[#allocation5 + $0x48] sm:$0xff]  ;;  %v11921_v18 = vpack.c.bf16 %v184_v11, %v183_v10  ;;  %v190_v20 = vld [vmem:[#allocation5 + $0x58] sm:$0xff]  ;;  %v191_v21 = vld [vmem:[#allocation5 + $0x60] sm:$0xff]  ;;  %v454_v29 = vsel %vm451_vm2, %v452_v23, %v453_v24  ;;  %s11760_s14 = smov 32   ;;  %p175_p6 = scmp.lt.s32.totalorder %s11795_s13, 1 }
  0x54   : > { %9069 = vmatprep.mubr.msk.f32.mxu0 %vm292_vm1, %v291_v14  ;;  %10551 = vmatprep.subr.bf16.mxu0 %v11912_v9  ;;  %v11923_v19 = vpack.c.bf16 %v189_v17, %v188_v16  ;;  %v11930_v22 = vpack.c.bf16 %v191_v21, %v190_v20  ;;  %v197_v25 = vld [vmem:[#allocation5 + $0x90] sm:$0xff]  ;;  %v198_v26 = vld [vmem:[#allocation5 + $0x98] sm:$0xff]  ;;  %v192_v27 = vld [vmem:[#allocation5 + $0x68] sm:$0xff]  ;;  %v11758_v57 = vmov 0.0   ;;  %vm11759_vm6 = vmmov 1  }
  0x55   : > { %10559 = vmatprep.subr.bf16.mxu1 %v11917_v15  ;;  %v193_v28 = vld [vmem:[#allocation5 + $0x70] sm:$0xff]  ;;  %v11937_v30 = vpack.c.bf16 %v198_v26, %v197_v25  ;;  %v199_v32 = vld [vmem:[#allocation5 + $0xa0] sm:$0xff]  ;;  %v200_v33 = vld [vmem:[#allocation5 + $0xa8] sm:$0xff]  ;;  %vm710_vm8 = vcmask 113664   ;;  %vm866_vm9 = vcmask 1041408   ;;  %vm863_vm11 = vcmask 343040  }
  0x56   : > { %9070 = vmatmul.mubr.msk.f32.vlgmr.msra.gmra.mrb[0].mxu0 %vm292_vm1, %v290_v8  ;;  %10561 = vmatpush3.bf16.msra.mxu1 %v11917_v15  ;;  %v11939_v31 = vpack.c.bf16 %v193_v28, %v192_v27  ;;  %v11948_v34 = vpack.c.bf16 %v200_v33, %v199_v32  ;;  %v201_v35 = vld [vmem:[#allocation5 + $0xb0] sm:$0xff]  ;;  %v202_v36 = vld [vmem:[#allocation5 + $0xb8] sm:$0xff]  ;;  %v203_v38 = vld [vmem:[#allocation5 + $0xc0] sm:$0xff]  ;;  %vm1098_vm12 = vcmask 654336   ;;  %vm1252_vm13 = vcmask 261120   ;;  %s13086_s13 = smov (!%p175_p6, %s11795_s13), 1 }
  0x57   : > { %10553 = vmatpush3.bf16.msra.mxu0 %v11912_v9  ;;  %9076 = vmatprep.mubr.msk.f32.mxu0 %vm292_vm1, %v284_v2  ;;  %v11953_v37 = vpack.c.bf16 %v202_v36, %v201_v35  ;;  %v204_v39 = vld [vmem:[#allocation5 + $0xc8] sm:$0xff]  ;;  %v194_v41 = vld [vmem:[#allocation5 + $0x78] sm:$0xff]  ;;  %v195_v42 = vld [vmem:[#allocation5 + $0x80] sm:$0xff]  ;;  %vm1254_vm14 = vcmask 516096   ;;  %vm7792_vm15 = vcmask 523264   ;;  %s8116_s15 = sshll.u32 %s13086_s13, 3 }
  0x58   : > { %10555 = vmatprep.subr.bf16.mxu0 %v11921_v18  ;;  %10563 = vmatprep.subr.bf16.mxu1 %v11923_v19  ;;  %v11957_v40 = vpack.c.bf16 %v204_v39, %v203_v38  ;;  %v205_v43 = vld [vmem:[#allocation5 + $0xd0] sm:$0xff]  ;;  %v11962_v44 = vpack.c.bf16 %v195_v42, %v194_v41  ;;  %v206_v45 = vld [vmem:[#allocation5 + $0xd8] sm:$0xff]  ;;  %v11970_v47 = vld [vmem:[#allocation5 + $0x88] sm:$0xf]  ;;  %s178_s18 = scalar_lea.vmem %s13065_s2, %s8116_s15 }
  0x59   : > { %v11964_v46 = vpack.c.bf16 %v206_v45, %v205_v43  ;;  %v11972_v48 = vld [vmem:[#allocation5 + $0xe0] sm:$0xf]  ;;  %v11982_v49 = vld [vmem:[#allocation5 + $0x30] ss:$0 sm:$0xff]  ;;  %vm11998_vm7 = vmpackc.low %vm451_vm2, %vm11759_vm6 }
  0x5a   : > { %10565 = vmatpush3.bf16.msra.mxu1 %v11923_v19  ;;  %v210_v1 = vld [vmem:[#allocation5 + $0xf8] sm:$0xff]  ;;  %v211_v2 = vld [vmem:[#allocation5 + $0x100] sm:$0xff]  ;;  %v217_v5 = vld [vmem:[#allocation5 + $0x130] sm:$0xff] }
  0x5b   : > { %10567 = vmatprep.subr.bf16.mxu1 %v11930_v22  ;;  %v12006_v7 = vld [vmem:[#allocation5 + $0xe8] sm:$0x7f]  ;;  %v12008_v8 = vld [vmem:[#allocation5 + $0xf0] sm:$0x7f]  ;;  %v12010_v10 = vpack.c.bf16 %v211_v2, %v210_v1  ;;  %v218_v14 = vld [vmem:[#allocation5 + $0x138] sm:$0xff] }
  0x5c   : > { %v212_v12 = vld [vmem:[#allocation5 + $0x108] sm:$0xff]  ;;  %v213_v13 = vld [vmem:[#allocation5 + $0x110] sm:$0xff]  ;;  %v219_v16 = vld [vmem:[#allocation5 + $0x140] sm:$0xff] }
  0x5d   : > { %v12022_v17 = vpack.c.bf16 %v213_v13, %v212_v12  ;;  %v12024_v20 = vpack.c.bf16 %v219_v16, %v218_v14  ;;  %vm12037_vm10 = vmpackc.low %vm866_vm9, %vm11759_vm6  ;;  %v214_v23 = vld [vmem:[#allocation5 + $0x118] sm:$0xff]  ;;  %v220_v26 = vld [vmem:[#allocation5 + $0x148] sm:$0xff] }
  0x5e   : > { %9077 = vmatmul.mubr.msk.f32.vlgmr.msra.gmra.mrb[0].mxu0 %vm292_vm1, %v285_v4  ;;  %10569 = vmatpush3.bf16.msra.mxu1 %v11930_v22  ;;  %v216_v4 = vld [vmem:[#allocation5 + $0x128] sm:$0xff]  ;;  %v221_v27 = vld [vmem:[#allocation5 + $0x150] sm:$0x3]  ;;  %v223_v32 = vld [vmem:[#allocation5 + $0x160] sm:$0xff] }
  0x5f   : > { %10557 = vmatpush3.bf16.msra.mxu0 %v11921_v18  ;;  %9083 = vmatprep.mubr.msk.f32.mxu0 %vm292_vm1, %v454_v29  ;;  %v12012_v11 = vpack.c.bf16 %v217_v5, %v216_v4  ;;  %v12043_v28 = vpack.c.bf16 %v221_v27, %v220_v26  ;;  %v222_v29 = vld [vmem:[#allocation5 + $0x158] sm:$0xff]  ;;  %v224_v43 = vld [vmem:[#allocation5 + $0x168] sm:$0xff]  ;;  %v225_v45 = vld [vmem:[#allocation5 + $0x170] sm:$0xff] }
  0x60   : > { %10579 = vmatprep.subr.bf16.mxu0 %v11937_v30  ;;  %10571 = vmatprep.subr.bf16.mxu1 %v11939_v31  ;;  %v12053_v41 = vpack.c.bf16 %v223_v32, %v222_v29  ;;  %v232_v1 = vld [vmem:[#allocation5 + $0x1a8] sm:$0xff]  ;;  %v241_v2 = vld [vmem:[#allocation5 + $0x1f0] sm:$0xff]  ;;  %v242_v5 = vld [vmem:[#allocation5 + $0x1f8] sm:$0xff] }
  0x61   : > { %v234_v12 = vld [vmem:[#allocation5 + $0x1b8] sm:$0xff]  ;;  %v12086_v13 = vpack.c.bf16 %v242_v5, %v241_v2  ;;  %v243_v14 = vld [vmem:[#allocation5 + $0x200] sm:$0xff]  ;;  %v244_v16 = vld [vmem:[#allocation5 + $0x208] sm:$0xff] }
  0x62   : > { %10573 = vmatpush3.bf16.msra.mxu1 %v11939_v31  ;;  %v235_v26 = vld [vmem:[#allocation5 + $0x1c0] sm:$0xff]  ;;  %v236_v27 = vld [vmem:[#allocation5 + $0x1c8] sm:$0xff]  ;;  %v245_v29 = vld [vmem:[#allocation5 + $0x210] sm:$0xff] }
  0x63   : > { %10575 = vmatprep.subr.bf16.mxu1 %v11962_v44  ;;  %v12100_v32 = vpack.c.bf16 %v236_v27, %v235_v26 }
  0x66   : > { %9084 = vmatmul.mubr.msk.f32.vlgmr.msra.gmra.mrb[0].mxu0 %vm292_vm1, %v453_v24  ;;  %10577 = vmatpush3.bf16.msra.mxu1 %v11962_v44  ;;  %v215_v24 = vld [vmem:[#allocation5 + $0x120] sm:$0x3] }
  0x67   : > { %10581 = vmatpush3.bf16.msra.mxu0 %v11937_v30  ;;  %9106 = vmatprep.subr.msk.mxu1 %vm551_vm3, %v11970_v47  ;;  %v12041_v25 = vpack.c.bf16 %v215_v24, %v214_v23  ;;  %v12093_v24 = vpack.c.bf16 %v244_v16, %v243_v14 }
  0x68   : > { %10583 = vmatprep.subr.bf16.mxu0 %v11948_v34 }
  0x6a   : > { %9107 = vmatpush3.msk.msra.mxu1 %vm551_vm3, %v11970_v47 }
  0x6b   : > { %10585 = vmatpush3.bf16.msra.mxu0 %v11948_v34  ;;  %10602 = vmatprep.subr.bf16.mxu1 %v11756_v56 }
  0x6c   : > { %10587 = vmatprep.subr.bf16.mxu0 %v11953_v37 }
  0x6f   : > { %10589 = vmatpush3.bf16.msra.mxu0 %v11953_v37 }
  0x70   : > { %10591 = vmatprep.subr.bf16.mxu0 %v11957_v40 }
  0x73   : > { %10593 = vmatpush3.bf16.msra.mxu0 %v11957_v40 }
  0x74   : > { %10595 = vmatprep.subr.bf16.mxu0 %v11964_v46 }
  0x77   : > { %10597 = vmatpush3.bf16.msra.mxu0 %v11964_v46 }
  0x78   : > { %9131 = vmatprep.subr.msk.mxu0 %vm551_vm3, %v11972_v48 }
  0x7b   : > { %9132 = vmatpush3.msk.msra.mxu0 %vm551_vm3, %v11972_v48 }
  0x7c   : > { %10598 = vmatprep.subr.bf16.mxu0 %v11756_v56 }
 0x139   : > { %v9085_v50 = vpop.f32.mrb[0].mxu0 }
 0x13a   : > { %v541_v51 = vadd.f32 %v9085_v50, %v11982_v49  ;;  %v525_v52 = vpop.f32.mrb[1].mxu0  ;;  %v12060_v50 = vpack.c.bf16 %v225_v45, %v224_v43  ;;  %v248_v43 = vld [vmem:[#allocation5 + $0x228] sm:$0xff] }
 0x13b   : > { %v540_v53 = vadd.f32 %v11982_v49, %v525_v52  ;;  %v227_v52 = vld [vmem:[#allocation5 + $0x180] sm:$0x3] }
 0x13c   : > { %v543_v55 = vmax.f32 %v541_v51, 0.0  ;;  %v226_v51 = vld [vmem:[#allocation5 + $0x178] sm:$0xff] }
 0x13d   : > { %v542_v54 = vmax.f32 %v540_v53, 0.0  ;;  %v12066_v53 = vpack.c.bf16 %v227_v52, %v226_v51 }
 0x13f   : > { %9108 = vmatprep.mubr.msk.f32.mxu1 %vm544_vm4, %v542_v54  ;;  %9133 = vmatprep.mubr.msk.f32.mxu0 %vm544_vm4, %v542_v54 }
 0x140   : > { %9109 = vmatmul.mubr.msk.f32.vlgmr.msra.gmra.mrb[0].mxu1 %vm544_vm4, %v543_v55  ;;  %9134 = vmatmul.mubr.msk.f32.vlgmr.msra.gmra.mrb[2].mxu0 %vm544_vm4, %v543_v55  ;;  %v229_v55 = vld [vmem:[#allocation5 + $0x190] sm:$0xff] }
 0x141   : > { %9140 = vmatprep.mubr.msk.f32.mxu0 %vm11757_vm5, %v11758_v57  ;;  %9147 = vmatprep.mubr.msk.f32.mxu1 %vm11757_vm5, %v11758_v57 }
 0x213   : > { %v9110_v58 = vpop.f32.mrb[0].mxu1  ;;  %v9135_v59 = vpop.f32.mrb[2].mxu0 }
 0x214   : > { %v709_v60 = vmax.f32 %v9110_v58, %v9135_v59  ;;  %v621_v61 = vpop.f32.mrb[1].mxu1  ;;  %v699_v62 = vpop.f32.mrb[3].mxu0  ;;  %v230_v58 = vld [vmem:[#allocation5 + $0x198] sm:$0xff]  ;;  %v239_v59 = vld [vmem:[#allocation5 + $0x1e0] sm:$0xff] }
 0x215   : > { %v708_v0 = vmax.f32 %v621_v61, %v699_v62  ;;  %v240_v61 = vld [vmem:[#allocation5 + $0x1e8] sm:$0xff] }
 0x216   : > { %v12078_v62 = vpack.c.bf16 %v240_v61, %v239_v59  ;;  %v8143_v59 = vld [vmem:[%s11898_s22 + $0x10] sm:$0xff]  ;;  %v8144_v61 = vld [vmem:[%s11898_s22 + $0x18] sm:$0xff] }
 0x217   : > { %v10599_v6 = vpack.c.bf16 %v709_v60, %v708_v0  ;;  %v12076_v60 = vpack.c.bf16 %v230_v58, %v229_v55  ;;  %v231_v0 = vld [vmem:[#allocation5 + $0x1a0] sm:$0xff]  ;;  %v1422_v27 = vrot.slane %v8143_v59, 2 }
 0x218   : > { %v12084_v4 = vpack.c.bf16 %v232_v1, %v231_v0  ;;  %v12118_v0 = vld [vmem:[#allocation5 + $0x188] ss:$0 sm:$0xff] }
 0x219   : > { %10601 = vmatpush3.bf16.msk.msra.mxu0 %vm11998_vm7, %v10599_v6  ;;  %10605 = vmatpush3.bf16.msk.msra.mxu1 %vm11998_vm7, %v10599_v6  ;;  %v233_v6 = vld [vmem:[#allocation5 + $0x1b0] sm:$0xff] }
 0x21a   : > { %10616 = vmatprep.subr.bf16.mxu0 %v11756_v56  ;;  %10606 = vmatprep.subr.bf16.mxu1 %v11756_v56  ;;  %v12089_v23 = vpack.c.bf16 %v234_v12, %v233_v6  ;;  %v1261_v6 = vrot.slane %v8143_v59, 1  ;;  %v1262_v12 = vrot.slane %v8144_v61, 1 }
 0x21c   : > { %9141 = vmatmul.mubr.msk.f32.vlgmr.msra.gmra.mrb[4].mxu0 %vm710_vm8, %v12006_v7  ;;  %9148 = vmatmul.mubr.msk.f32.vlgmr.msra.gmra.mrb[2].mxu1 %vm710_vm8, %v12008_v8  ;;  %v1263_v26 = vsel %vm288_vm0, %v1261_v6, %v1262_v12 }
 0x21d   : > { %10618 = vmatpush3.bf16.msra.mxu0 %v12010_v10  ;;  %10608 = vmatpush3.bf16.msra.mxu1 %v12012_v11 }
 0x21e   : > { %10619 = vmatprep.subr.bf16.mxu0 %v11756_v56  ;;  %10609 = vmatprep.subr.bf16.mxu1 %v11756_v56 }
 0x21f   : > { %9177 = vmatprep.mubr.msk.f32.mxu0 %vm11757_vm5, %v11758_v57  ;;  %9162 = vmatprep.mubr.msk.f32.mxu1 %vm11757_vm5, %v11758_v57 }
 0x221   : > { %10621 = vmatpush3.bf16.msra.mxu0 %v12022_v17  ;;  %10611 = vmatpush3.bf16.msra.mxu1 %v12024_v20 }
 0x222   : > { %10622 = vmatprep.subr.bf16.mxu0 %v11756_v56  ;;  %10612 = vmatprep.subr.bf16.mxu1 %v11756_v56 }
 0x225   : > { %10625 = vmatpush3.bf16.msk.msra.mxu0 %vm12037_vm10, %v12041_v25  ;;  %10615 = vmatpush3.bf16.msk.msra.mxu1 %vm12037_vm10, %v12043_v28 }
 0x226   : > { %10636 = vmatprep.subr.bf16.mxu0 %v11756_v56  ;;  %10626 = vmatprep.subr.bf16.mxu1 %v11756_v56 }
 0x2ef   : > { %v783_v33 = vpop.f32.mrb[4].mxu0  ;;  %v856_v35 = vpop.f32.mrb[2].mxu1 }
 0x2f0   : > { %v860_v36 = vmax.f32 %v783_v33, %v856_v35  ;;  %v9142_v38 = vpop.f32.mrb[5].mxu0  ;;  %v9149_v39 = vpop.f32.mrb[3].mxu1  ;;  %v246_v33 = vld [vmem:[#allocation5 + $0x218] sm:$0xff] }
 0x2f1   : > { %v12102_v35 = vpack.c.bf16 %v246_v33, %v245_v29  ;;  %v238_v38 = vld [vmem:[#allocation5 + $0x1d8] sm:$0xff]  ;;  %v247_v39 = vld [vmem:[#allocation5 + $0x220] sm:$0xff]  ;;  %v1423_v29 = vrot.slane %v8144_v61, 2 }
 0x2f2   : > { %v862_v42 = vrot.slane %v860_v36, 1  ;;  %9178 = vmatmul.mubr.msk.f32.vlgmr.msra.gmra.mrb[6].mxu0 %vm863_vm11, %v860_v36  ;;  %v1015_v54 = vrot.slane %v860_v36, 2  ;;  %v237_v36 = vld [vmem:[#allocation5 + $0x1d0] sm:$0xff]  ;;  %v12110_v45 = vpack.c.bf16 %v248_v43, %v247_v39 }
 0x2f3   : > { %9215 = vmatprep.mubr.msk.f32.mxu0 %vm11757_vm5, %v11758_v57  ;;  %10638 = vmatpush3.bf16.msra.mxu0 %v12076_v60  ;;  %v1424_v33 = vsel %vm451_vm2, %v1422_v27, %v1423_v29 }
 0x2f4   : > { %9163 = vmatmul.mubr.msk.f32.vlgmr.msra.gmra.mrb[4].mxu1 %vm863_vm11, %v862_v42  ;;  %10639 = vmatprep.subr.bf16.mxu0 %v11756_v56  ;;  %v12108_v42 = vpack.c.bf16 %v238_v38, %v237_v36 }
 0x2f5   : > { %10628 = vmatpush3.bf16.msra.mxu1 %v12053_v41  ;;  %9192 = vmatprep.mubr.msk.f32.mxu1 %vm11757_vm5, %v11758_v57 }
 0x2f6   : > { %10629 = vmatprep.subr.bf16.mxu1 %v11756_v56 }
 0x2f7   : > { %10641 = vmatpush3.bf16.msra.mxu0 %v12084_v4 }
 0x2f8   : > { %10642 = vmatprep.subr.bf16.mxu0 %v11756_v56 }
 0x2f9   : > { %10631 = vmatpush3.bf16.msra.mxu1 %v12060_v50 }
 0x2fa   : > { %10632 = vmatprep.subr.bf16.mxu1 %v11756_v56 }
 0x2fb   : > { %10644 = vmatpush3.bf16.msra.mxu0 %v12089_v23 }
 0x2fc   : > { %10645 = vmatprep.subr.bf16.mxu0 %v11756_v56 }
 0x2fd   : > { %10635 = vmatpush3.bf16.msk.msra.mxu1 %vm12037_vm10, %v12066_v53 }
 0x2fe   : > { %10651 = vmatprep.subr.bf16.mxu1 %v11756_v56 }
 0x2ff   : > { %10647 = vmatpush3.bf16.msra.mxu0 %v12100_v32 }
 0x300   : > { %9193 = vmatmul.mubr.msk.f32.vlgmr.msra.gmra.mrb[6].mxu1 %vm863_vm11, %v1015_v54  ;;  %10648 = vmatprep.subr.bf16.mxu0 %v11756_v56 }
 0x301   : > { %9238 = vmatprep.mubr.msk.f32.mxu1 %vm11757_vm5, %v11758_v57  ;;  %10653 = vmatpush3.bf16.msra.mxu1 %v12078_v62 }
 0x302   : > { %10654 = vmatprep.subr.bf16.mxu1 %v11756_v56 }
 0x303   : > { %10650 = vmatpush3.bf16.msra.mxu0 %v12108_v42 }
 0x304   : > { %10667 = vmatprep.subr.bf16.mxu0 %v11909_v3 }
 0x305   : > { %10656 = vmatpush3.bf16.msra.mxu1 %v12086_v13 }
 0x306   : > { %10657 = vmatprep.subr.bf16.mxu1 %v11756_v56 }
 0x309   : > { %10659 = vmatpush3.bf16.msra.mxu1 %v12093_v24 }
 0x30a   : > { %10660 = vmatprep.subr.bf16.mxu1 %v11756_v56 }
 0x30d   : > { %10662 = vmatpush3.bf16.msra.mxu1 %v12102_v35 }
 0x30e   : > { %10663 = vmatprep.subr.bf16.mxu1 %v11756_v56 }
 0x311   : > { %10665 = vmatpush3.bf16.msra.mxu1 %v12110_v45 }
 0x312   : > { %10679 = vmatprep.subr.bf16.mxu1 %v11917_v15 }
 0x3c5   : > { %v1011_v51 = vpop.f32.mrb[6].mxu0 }
 0x3c6   : > { %v9179_v52 = vpop.f32.mrb[7].mxu0 }
 0x3c7   : > { %v936_v54 = vpop.f32.mrb[4].mxu1 }
 0x3c8   : > { %v1012_v55 = vadd.f32 %v1011_v51, %v936_v54  ;;  %v9164_v58 = vpop.f32.mrb[5].mxu1 }
 0x3d3   : > { %v1087_v1 = vpop.f32.mrb[6].mxu1 }
 0x3d4   : > { %v1091_v2 = vadd.f32 %v1087_v1, %v1012_v55  ;;  %v9194_v5 = vpop.f32.mrb[7].mxu1 }
 0x3d6   : > { %v1096_v14 = vadd.f32 %v12118_v0, %v1091_v2 }
 0x3d8   : > { %v1097_v16 = vmax.f32 %v1096_v14, 0.0 }
 0x3da   : > { %9216 = vmatmul.mubr.msk.f32.vlgmr.msra.gmra.mrb[8].mxu0 %vm1098_vm12, %v1097_v16  ;;  %9239 = vmatmul.mubr.msk.f32.vlgmr.msra.gmra.mrb[8].mxu1 %vm1098_vm12, %v1097_v16 }
 0x3db   : > { %10669 = vmatpush3.bf16.msra.mxu0 %v11909_v3  ;;  %9245 = vmatprep.mubr.msk.f32.mxu0 %vm292_vm1, %v1263_v26 }
 0x3dc   : > { %10671 = vmatprep.subr.bf16.mxu0 %v11912_v9  ;;  %10681 = vmatpush3.bf16.msra.mxu1 %v11917_v15 }
 0x3dd   : > { %10683 = vmatprep.subr.bf16.mxu1 %v11923_v19 }
 0x3de   : > { %9246 = vmatmul.mubr.msk.f32.vlgmr.msra.gmra.mrb[10].mxu0 %vm292_vm1, %v1262_v12 }
 0x3df   : > { %10673 = vmatpush3.bf16.msra.mxu0 %v11912_v9  ;;  %9252 = vmatprep.mubr.msk.f32.mxu0 %vm292_vm1, %v8143_v59 }
 0x3e0   : > { %10675 = vmatprep.subr.bf16.mxu0 %v11921_v18  ;;  %10685 = vmatpush3.bf16.msra.mxu1 %v11923_v19 }
 0x3e1   : > { %10687 = vmatprep.subr.bf16.mxu1 %v11930_v22 }
 0x3e4   : > { %10689 = vmatpush3.bf16.msra.mxu1 %v11930_v22 }
 0x3e5   : > { %10691 = vmatprep.subr.bf16.mxu1 %v11939_v31 }
 0x3e6   : > { %9253 = vmatmul.mubr.msk.f32.vlgmr.msra.gmra.mrb[10].mxu0 %vm292_vm1, %v8144_v61 }
 0x3e7   : > { %10677 = vmatpush3.bf16.msra.mxu0 %v11921_v18  ;;  %9259 = vmatprep.mubr.msk.f32.mxu0 %vm292_vm1, %v1424_v33 }
 0x3e8   : > { %10699 = vmatprep.subr.bf16.mxu0 %v11937_v30  ;;  %10693 = vmatpush3.bf16.msra.mxu1 %v11939_v31 }
 0x3e9   : > { %10695 = vmatprep.subr.bf16.mxu1 %v11962_v44 }
 0x3ec   : > { %10697 = vmatpush3.bf16.msra.mxu1 %v11962_v44 }
 0x3ed   : > { %9282 = vmatprep.subr.msk.mxu1 %vm551_vm3, %v11970_v47 }
 0x3ee   : > { %9260 = vmatmul.mubr.msk.f32.vlgmr.msra.gmra.mrb[10].mxu0 %vm292_vm1, %v1423_v29 }
 0x3ef   : > { %10701 = vmatpush3.bf16.msra.mxu0 %v11937_v30 }
 0x3f0   : > { %10703 = vmatprep.subr.bf16.mxu0 %v11948_v34  ;;  %9283 = vmatpush3.msk.msra.mxu1 %vm551_vm3, %v11970_v47 }
 0x3f1   : > { %10718 = vmatprep.subr.bf16.mxu1 %v11756_v56 }
 0x3f3   : > { %10705 = vmatpush3.bf16.msra.mxu0 %v11948_v34 }
 0x3f4   : > { %10707 = vmatprep.subr.bf16.mxu0 %v11953_v37 }
 0x3f7   : > { %10709 = vmatpush3.bf16.msra.mxu0 %v11953_v37 }
 0x3f8   : > { %10711 = vmatprep.subr.bf16.mxu0 %v11957_v40 }
 0x3fb   : > { %10713 = vmatpush3.bf16.msra.mxu0 %v11957_v40 }
 0x3fc   : > { %10715 = vmatprep.subr.bf16.mxu0 %v11964_v46 }
 0x3ff   : > { %10717 = vmatpush3.bf16.msra.mxu0 %v11964_v46 }
 0x400   : > { %9307 = vmatprep.subr.msk.mxu0 %vm551_vm3, %v11972_v48 }
 0x403   : > { %9308 = vmatpush3.msk.msra.mxu0 %vm551_vm3, %v11972_v48 }
 0x404   : > { %10722 = vmatprep.subr.bf16.mxu0 %v11756_v56 }
 0x4ad   : > { %v1168_v36 = vpop.f32.mrb[8].mxu0  ;;  %v1238_v38 = vpop.f32.mrb[8].mxu1 }
 0x4ae   : > { %v1242_v39 = vmax.f32 %v1168_v36, %v1238_v38  ;;  %v9217_v43 = vpop.f32.mrb[9].mxu0  ;;  %v9240_v51 = vpop.f32.mrb[9].mxu1 }
 0x4b0   : > { %v1244_v52 = vrot.slane %v1242_v39, 1 }
 0x4b2   : > { %v1246_v54 = vmax.f32 %v1242_v39, %v1244_v52 }
 0x4b4   : > { %v1248_v55 = vrot.slane %v1246_v54, 2 }
 0x4b6   : > { %1249 = vrot.lane.b32.xlu0 %v1248_v55, %s11760_s14 }
 0x4c1   : > { %v9261_v58 = vpop.f32.mrb[10].mxu0 }
 0x4c2   : > { %v1507_v59 = vadd.f32 %v9261_v58, %v11982_v49  ;;  %v1495_v61 = vpop.f32.mrb[11].mxu0 }
 0x4c3   : > { %v1506_v1 = vadd.f32 %v11982_v49, %v1495_v61 }
 0x4c4   : > { %v1509_v5 = vmax.f32 %v1507_v59, 0.0 }
 0x4c5   : > { %v1508_v2 = vmax.f32 %v1506_v1, 0.0 }
 0x4c7   : > { %9284 = vmatprep.mubr.msk.f32.mxu1 %vm544_vm4, %v1508_v2  ;;  %9309 = vmatprep.mubr.msk.f32.mxu0 %vm544_vm4, %v1508_v2 }
 0x4c8   : > { %9285 = vmatmul.mubr.msk.f32.vlgmr.msra.gmra.mrb[10].mxu1 %vm544_vm4, %v1509_v5  ;;  %9310 = vmatmul.mubr.msk.f32.vlgmr.msra.gmra.mrb[12].mxu0 %vm544_vm4, %v1509_v5  ;;  %v8169_v5 = vld [vmem:[%s11898_s22 + $0x20] sm:$0xff] }
 0x4c9   : > { %9316 = vmatprep.mubr.msk.f32.mxu1 %vm11757_vm5, %v11758_v57  ;;  %9323 = vmatprep.mubr.msk.f32.mxu0 %vm11757_vm5, %v11758_v57 }
 0x528   : > { %v1250_v6 = vpop.permute.xlu0 %1249 }
 0x529   : > { %v1253_v12 = vsel %vm1252_vm13, %v1246_v54, %v1250_v6  ;;  %v8170_v6 = vld [vmem:[%s11898_s22 + $0x28] sm:$0xff] }
 0x52a   : > { %1255 = vst.msk [vmem:[#allocation2] sm:$0x1] %vm1254_vm14, %v1253_v12 }
 0x59b   : > { %v9286_v14 = vpop.f32.mrb[10].mxu1  ;;  %v9311_v16 = vpop.f32.mrb[12].mxu0 }
 0x59c   : > { %v1667_v26 = vmax.f32 %v9286_v14, %v9311_v16  ;;  %v1582_v27 = vpop.f32.mrb[11].mxu1  ;;  %v1657_v29 = vpop.f32.mrb[13].mxu0 }
 0x59d   : > { %v1666_v33 = vmax.f32 %v1582_v27, %v1657_v29  ;;  %v2195_v27 = vrot.slane %v8170_v6, 1 }
 0x59f   : > { %v10719_v36 = vpack.c.bf16 %v1667_v26, %v1666_v33  ;;  %v2194_v26 = vrot.slane %v8169_v5, 1 }
 0x5a1   : > { %10721 = vmatpush3.bf16.msk.msra.mxu1 %vm11998_vm7, %v10719_v36  ;;  %10725 = vmatpush3.bf16.msk.msra.mxu0 %vm11998_vm7, %v10719_v36  ;;  %v2196_v36 = vsel %vm288_vm0, %v2194_v26, %v2195_v27 }
 0x5a2   : > { %10736 = vmatprep.subr.bf16.mxu0 %v11756_v56  ;;  %10726 = vmatprep.subr.bf16.mxu1 %v11756_v56 }
 0x5a4   : > { %9317 = vmatmul.mubr.msk.f32.vlgmr.msra.gmra.mrb[12].mxu1 %vm710_vm8, %v12006_v7  ;;  %9324 = vmatmul.mubr.msk.f32.vlgmr.msra.gmra.mrb[14].mxu0 %vm710_vm8, %v12008_v8 }
 0x5a5   : > { %10738 = vmatpush3.bf16.msra.mxu0 %v12010_v10  ;;  %10728 = vmatpush3.bf16.msra.mxu1 %v12012_v11 }
 0x5a6   : > { %10739 = vmatprep.subr.bf16.mxu0 %v11756_v56  ;;  %10729 = vmatprep.subr.bf16.mxu1 %v11756_v56 }
 0x5a7   : > { %9353 = vmatprep.mubr.msk.f32.mxu0 %vm11757_vm5, %v11758_v57  ;;  %9338 = vmatprep.mubr.msk.f32.mxu1 %vm11757_vm5, %v11758_v57 }
 0x5a9   : > { %10741 = vmatpush3.bf16.msra.mxu0 %v12022_v17  ;;  %10731 = vmatpush3.bf16.msra.mxu1 %v12024_v20 }
 0x5aa   : > { %10742 = vmatprep.subr.bf16.mxu0 %v11756_v56  ;;  %10732 = vmatprep.subr.bf16.mxu1 %v11756_v56 }
 0x5ad   : > { %10745 = vmatpush3.bf16.msk.msra.mxu0 %vm12037_vm10, %v12041_v25  ;;  %10735 = vmatpush3.bf16.msk.msra.mxu1 %vm12037_vm10, %v12043_v28 }
 0x5ae   : > { %10746 = vmatprep.subr.bf16.mxu1 %v11756_v56  ;;  %10756 = vmatprep.subr.bf16.mxu0 %v11756_v56 }
 0x677   : > { %v1737_v38 = vpop.f32.mrb[12].mxu1  ;;  %v1807_v39 = vpop.f32.mrb[14].mxu0 }
 0x678   : > { %v1811_v43 = vmax.f32 %v1737_v38, %v1807_v39  ;;  %v9318_v51 = vpop.f32.mrb[13].mxu1  ;;  %v9325_v52 = vpop.f32.mrb[15].mxu0  ;;  %v2355_v38 = vrot.slane %v8169_v5, 2  ;;  %v2356_v39 = vrot.slane %v8170_v6, 2 }
 0x67a   : > { %v1813_v54 = vrot.slane %v1811_v43, 1  ;;  %9354 = vmatmul.mubr.msk.f32.vlgmr.msra.gmra.mrb[16].mxu0 %vm863_vm11, %v1811_v43  ;;  %v1958_v55 = vrot.slane %v1811_v43, 2  ;;  %v2357_v43 = vsel %vm451_vm2, %v2355_v38, %v2356_v39 }
 0x67b   : > { %10758 = vmatpush3.bf16.msra.mxu0 %v12076_v60  ;;  %9391 = vmatprep.mubr.msk.f32.mxu0 %vm11757_vm5, %v11758_v57 }
 0x67c   : > { %9339 = vmatmul.mubr.msk.f32.vlgmr.msra.gmra.mrb[14].mxu1 %vm863_vm11, %v1813_v54  ;;  %10759 = vmatprep.subr.bf16.mxu0 %v11756_v56 }
 0x67d   : > { %10748 = vmatpush3.bf16.msra.mxu1 %v12053_v41  ;;  %9368 = vmatprep.mubr.msk.f32.mxu1 %vm11757_vm5, %v11758_v57 }
 0x67e   : > { %10749 = vmatprep.subr.bf16.mxu1 %v11756_v56 }
 0x67f   : > { %10761 = vmatpush3.bf16.msra.mxu0 %v12084_v4 }
 0x680   : > { %10762 = vmatprep.subr.bf16.mxu0 %v11756_v56 }
 0x681   : > { %10751 = vmatpush3.bf16.msra.mxu1 %v12060_v50 }
 0x682   : > { %10752 = vmatprep.subr.bf16.mxu1 %v11756_v56 }
 0x683   : > { %10764 = vmatpush3.bf16.msra.mxu0 %v12089_v23 }
 0x684   : > { %10765 = vmatprep.subr.bf16.mxu0 %v11756_v56 }
 0x685   : > { %10755 = vmatpush3.bf16.msk.msra.mxu1 %vm12037_vm10, %v12066_v53 }
 0x686   : > { %10771 = vmatprep.subr.bf16.mxu1 %v11756_v56 }
 0x687   : > { %10767 = vmatpush3.bf16.msra.mxu0 %v12100_v32 }
 0x688   : > { %9369 = vmatmul.mubr.msk.f32.vlgmr.msra.gmra.mrb[16].mxu1 %vm863_vm11, %v1958_v55  ;;  %10768 = vmatprep.subr.bf16.mxu0 %v11756_v56 }
 0x689   : > { %10773 = vmatpush3.bf16.msra.mxu1 %v12078_v62  ;;  %9414 = vmatprep.mubr.msk.f32.mxu1 %vm11757_vm5, %v11758_v57 }
 0x68a   : > { %10774 = vmatprep.subr.bf16.mxu1 %v11756_v56 }
 0x68b   : > { %10770 = vmatpush3.bf16.msra.mxu0 %v12108_v42 }
 0x68c   : > { %10787 = vmatprep.subr.bf16.mxu0 %v11909_v3 }
 0x68d   : > { %10776 = vmatpush3.bf16.msra.mxu1 %v12086_v13 }
 0x68e   : > { %10777 = vmatprep.subr.bf16.mxu1 %v11756_v56 }
 0x691   : > { %10779 = vmatpush3.bf16.msra.mxu1 %v12093_v24 }
 0x692   : > { %10780 = vmatprep.subr.bf16.mxu1 %v11756_v56 }
 0x695   : > { %10782 = vmatpush3.bf16.msra.mxu1 %v12102_v35 }
 0x696   : > { %10783 = vmatprep.subr.bf16.mxu1 %v11756_v56 }
 0x699   : > { %10785 = vmatpush3.bf16.msra.mxu1 %v12110_v45 }
 0x69a   : > { %10799 = vmatprep.subr.bf16.mxu1 %v11917_v15 }
 0x74d   : > { %v1954_v58 = vpop.f32.mrb[16].mxu0 }
 0x74e   : > { %v9355_v59 = vpop.f32.mrb[17].mxu0 }
 0x74f   : > { %v1882_v61 = vpop.f32.mrb[14].mxu1 }
 0x750   : > { %v1955_v1 = vadd.f32 %v1954_v58, %v1882_v61  ;;  %v9340_v2 = vpop.f32.mrb[15].mxu1 }
 0x75b   : > { %v2027_v12 = vpop.f32.mrb[16].mxu1 }
 0x75c   : > { %v2031_v14 = vadd.f32 %v2027_v12, %v1955_v1  ;;  %v9370_v16 = vpop.f32.mrb[17].mxu1 }
 0x75e   : > { %v2032_v29 = vadd.f32 %v12118_v0, %v2031_v14 }
 0x760   : > { %v2033_v33 = vmax.f32 %v2032_v29, 0.0 }
 0x762   : > { %9392 = vmatmul.mubr.msk.f32.vlgmr.msra.gmra.mrb[18].mxu0 %vm1098_vm12, %v2033_v33  ;;  %9415 = vmatmul.mubr.msk.f32.vlgmr.msra.gmra.mrb[18].mxu1 %vm1098_vm12, %v2033_v33 }
 0x763   : > { %10789 = vmatpush3.bf16.msra.mxu0 %v11909_v3  ;;  %9421 = vmatprep.mubr.msk.f32.mxu0 %vm292_vm1, %v2196_v36 }
 0x764   : > { %10791 = vmatprep.subr.bf16.mxu0 %v11912_v9  ;;  %10801 = vmatpush3.bf16.msra.mxu1 %v11917_v15 }
 0x765   : > { %10803 = vmatprep.subr.bf16.mxu1 %v11923_v19 }
 0x766   : > { %9422 = vmatmul.mubr.msk.f32.vlgmr.msra.gmra.mrb[20].mxu0 %vm292_vm1, %v2195_v27 }
 0x767   : > { %10793 = vmatpush3.bf16.msra.mxu0 %v11912_v9  ;;  %9428 = vmatprep.mubr.msk.f32.mxu0 %vm292_vm1, %v8169_v5 }
 0x768   : > { %10795 = vmatprep.subr.bf16.mxu0 %v11921_v18  ;;  %10805 = vmatpush3.bf16.msra.mxu1 %v11923_v19 }
 0x769   : > { %10807 = vmatprep.subr.bf16.mxu1 %v11930_v22 }
 0x76c   : > { %10809 = vmatpush3.bf16.msra.mxu1 %v11930_v22 }
 0x76d   : > { %10811 = vmatprep.subr.bf16.mxu1 %v11939_v31 }
 0x76e   : > { %9429 = vmatmul.mubr.msk.f32.vlgmr.msra.gmra.mrb[20].mxu0 %vm292_vm1, %v8170_v6 }
 0x76f   : > { %10797 = vmatpush3.bf16.msra.mxu0 %v11921_v18  ;;  %9435 = vmatprep.mubr.msk.f32.mxu0 %vm292_vm1, %v2357_v43 }
 0x770   : > { %10819 = vmatprep.subr.bf16.mxu0 %v11937_v30  ;;  %10813 = vmatpush3.bf16.msra.mxu1 %v11939_v31 }
 0x771   : > { %10815 = vmatprep.subr.bf16.mxu1 %v11962_v44 }
 0x774   : > { %10817 = vmatpush3.bf16.msra.mxu1 %v11962_v44 }
 0x775   : > { %9458 = vmatprep.subr.msk.mxu1 %vm551_vm3, %v11970_v47 }
 0x776   : > { %9436 = vmatmul.mubr.msk.f32.vlgmr.msra.gmra.mrb[20].mxu0 %vm292_vm1, %v2356_v39 }
 0x777   : > { %10821 = vmatpush3.bf16.msra.mxu0 %v11937_v30 }
 0x778   : > { %10823 = vmatprep.subr.bf16.mxu0 %v11948_v34  ;;  %9459 = vmatpush3.msk.msra.mxu1 %vm551_vm3, %v11970_v47 }
 0x779   : > { %10838 = vmatprep.subr.bf16.mxu1 %v11756_v56 }
 0x77b   : > { %10825 = vmatpush3.bf16.msra.mxu0 %v11948_v34 }
 0x77c   : > { %10827 = vmatprep.subr.bf16.mxu0 %v11953_v37 }
 0x77f   : > { %10829 = vmatpush3.bf16.msra.mxu0 %v11953_v37 }
 0x780   : > { %10831 = vmatprep.subr.bf16.mxu0 %v11957_v40 }
 0x783   : > { %10833 = vmatpush3.bf16.msra.mxu0 %v11957_v40 }
 0x784   : > { %10835 = vmatprep.subr.bf16.mxu0 %v11964_v46 }
 0x787   : > { %10837 = vmatpush3.bf16.msra.mxu0 %v11964_v46 }
 0x788   : > { %9483 = vmatprep.subr.msk.mxu0 %vm551_vm3, %v11972_v48 }
 0x78b   : > { %9484 = vmatpush3.msk.msra.mxu0 %vm551_vm3, %v11972_v48 }
 0x78c   : > { %10842 = vmatprep.subr.bf16.mxu0 %v11756_v56 }
 0x835   : > { %v2103_v51 = vpop.f32.mrb[18].mxu0  ;;  %v2173_v52 = vpop.f32.mrb[18].mxu1 }
 0x836   : > { %v2177_v54 = vmax.f32 %v2103_v51, %v2173_v52  ;;  %v9393_v55 = vpop.f32.mrb[19].mxu0  ;;  %v9416_v58 = vpop.f32.mrb[19].mxu1 }
 0x838   : > { %v2179_v59 = vrot.slane %v2177_v54, 1 }
 0x83a   : > { %v2181_v61 = vmax.f32 %v2177_v54, %v2179_v59 }
 0x83c   : > { %v2183_v1 = vrot.slane %v2181_v61, 2 }
 0x83e   : > { %2184 = vrot.lane.b32.xlu0 %v2183_v1, %s11760_s14 }
 0x849   : > { %v9437_v2 = vpop.f32.mrb[20].mxu0 }
 0x84a   : > { %v2440_v5 = vadd.f32 %v9437_v2, %v11982_v49  ;;  %v2428_v6 = vpop.f32.mrb[21].mxu0 }
 0x84b   : > { %v2439_v12 = vadd.f32 %v11982_v49, %v2428_v6 }
 0x84c   : > { %v2442_v16 = vmax.f32 %v2440_v5, 0.0 }
 0x84d   : > { %v2441_v14 = vmax.f32 %v2439_v12, 0.0 }
 0x84f   : > { %9460 = vmatprep.mubr.msk.f32.mxu1 %vm544_vm4, %v2441_v14  ;;  %9485 = vmatprep.mubr.msk.f32.mxu0 %vm544_vm4, %v2441_v14  ;;  %v8195_v14 = vld [vmem:[%s11898_s22 + $0x30] sm:$0xff] }
 0x850   : > { %9461 = vmatmul.mubr.msk.f32.vlgmr.msra.gmra.mrb[20].mxu1 %vm544_vm4, %v2442_v16  ;;  %9486 = vmatmul.mubr.msk.f32.vlgmr.msra.gmra.mrb[22].mxu0 %vm544_vm4, %v2442_v16  ;;  %v8196_v16 = vld [vmem:[%s11898_s22 + $0x38] sm:$0xff] }
 0x851   : > { %9492 = vmatprep.mubr.msk.f32.mxu1 %vm11757_vm5, %v11758_v57  ;;  %9499 = vmatprep.mubr.msk.f32.mxu0 %vm11757_vm5, %v11758_v57 }
 0x8b0   : > { %v2185_v26 = vpop.permute.xlu0 %2184 }
 0x8b1   : > { %v2187_v27 = vsel %vm1252_vm13, %v2181_v61, %v2185_v26 }
 0x8b2   : > { %2188 = vst.msk [vmem:[#allocation2 + $0x1] sm:$0x1] %vm1254_vm14, %v2187_v27 }
 0x923   : > { %v9462_v49 = vpop.f32.mrb[20].mxu1  ;;  %v9487_v29 = vpop.f32.mrb[22].mxu0 }
 0x924   : > { %v2600_v33 = vmax.f32 %v9462_v49, %v9487_v29  ;;  %v2515_v36 = vpop.f32.mrb[21].mxu1  ;;  %v2590_v38 = vpop.f32.mrb[23].mxu0  ;;  %v3127_v29 = vrot.slane %v8195_v14, 1 }
 0x925   : > { %v2599_v39 = vmax.f32 %v2515_v36, %v2590_v38 }
 0x927   : > { %v10839_v43 = vpack.c.bf16 %v2600_v33, %v2599_v39  ;;  %v3128_v33 = vrot.slane %v8196_v16, 1 }
 0x929   : > { %10841 = vmatpush3.bf16.msk.msra.mxu1 %vm11998_vm7, %v10839_v43  ;;  %10845 = vmatpush3.bf16.msk.msra.mxu0 %vm11998_vm7, %v10839_v43  ;;  %v3129_v39 = vsel %vm288_vm0, %v3127_v29, %v3128_v33  ;;  %v3288_v43 = vrot.slane %v8195_v14, 2 }
 0x92a   : > { %10856 = vmatprep.subr.bf16.mxu0 %v11756_v56  ;;  %10846 = vmatprep.subr.bf16.mxu1 %v11756_v56 }
 0x92c   : > { %9493 = vmatmul.mubr.msk.f32.vlgmr.msra.gmra.mrb[22].mxu1 %vm710_vm8, %v12006_v7  ;;  %9500 = vmatmul.mubr.msk.f32.vlgmr.msra.gmra.mrb[24].mxu0 %vm710_vm8, %v12008_v8 }
 0x92d   : > { %10858 = vmatpush3.bf16.msra.mxu0 %v12010_v10  ;;  %10848 = vmatpush3.bf16.msra.mxu1 %v12012_v11 }
 0x92e   : > { %10859 = vmatprep.subr.bf16.mxu0 %v11756_v56  ;;  %10849 = vmatprep.subr.bf16.mxu1 %v11756_v56 }
 0x92f   : > { %9529 = vmatprep.mubr.msk.f32.mxu0 %vm11757_vm5, %v11758_v57  ;;  %9514 = vmatprep.mubr.msk.f32.mxu1 %vm11757_vm5, %v11758_v57 }
 0x931   : > { %10861 = vmatpush3.bf16.msra.mxu0 %v12022_v17  ;;  %10851 = vmatpush3.bf16.msra.mxu1 %v12024_v20 }
 0x932   : > { %10862 = vmatprep.subr.bf16.mxu0 %v11756_v56  ;;  %10852 = vmatprep.subr.bf16.mxu1 %v11756_v56 }
 0x935   : > { %10865 = vmatpush3.bf16.msk.msra.mxu0 %vm12037_vm10, %v12041_v25  ;;  %10855 = vmatpush3.bf16.msk.msra.mxu1 %vm12037_vm10, %v12043_v28 }
 0x936   : > { %10866 = vmatprep.subr.bf16.mxu1 %v11756_v56  ;;  %10876 = vmatprep.subr.bf16.mxu0 %v11756_v56 }
 0x9ff   : > { %v2670_v51 = vpop.f32.mrb[22].mxu1  ;;  %v2740_v52 = vpop.f32.mrb[24].mxu0 }
 0xa00   : > { %v2744_v54 = vmax.f32 %v2670_v51, %v2740_v52  ;;  %v9494_v55 = vpop.f32.mrb[23].mxu1  ;;  %v9501_v58 = vpop.f32.mrb[25].mxu0  ;;  %v3289_v51 = vrot.slane %v8196_v16, 2 }
 0xa02   : > { %v2746_v59 = vrot.slane %v2744_v54, 1  ;;  %9530 = vmatmul.mubr.msk.f32.vlgmr.msra.gmra.mrb[26].mxu0 %vm863_vm11, %v2744_v54  ;;  %v2891_v61 = vrot.slane %v2744_v54, 2  ;;  %v3290_v52 = vsel %vm451_vm2, %v3288_v43, %v3289_v51 }
 0xa03   : > { %10878 = vmatpush3.bf16.msra.mxu0 %v12076_v60  ;;  %9567 = vmatprep.mubr.msk.f32.mxu0 %vm11757_vm5, %v11758_v57 }
 0xa04   : > { %9515 = vmatmul.mubr.msk.f32.vlgmr.msra.gmra.mrb[24].mxu1 %vm863_vm11, %v2746_v59  ;;  %10879 = vmatprep.subr.bf16.mxu0 %v11756_v56 }
 0xa05   : > { %10868 = vmatpush3.bf16.msra.mxu1 %v12053_v41  ;;  %9544 = vmatprep.mubr.msk.f32.mxu1 %vm11757_vm5, %v11758_v57 }
 0xa06   : > { %10869 = vmatprep.subr.bf16.mxu1 %v11756_v56 }
 0xa07   : > { %10881 = vmatpush3.bf16.msra.mxu0 %v12084_v4 }
 0xa08   : > { %10882 = vmatprep.subr.bf16.mxu0 %v11756_v56 }
 0xa09   : > { %10871 = vmatpush3.bf16.msra.mxu1 %v12060_v50 }
 0xa0a   : > { %10872 = vmatprep.subr.bf16.mxu1 %v11756_v56 }
 0xa0b   : > { %10884 = vmatpush3.bf16.msra.mxu0 %v12089_v23 }
 0xa0c   : > { %10885 = vmatprep.subr.bf16.mxu0 %v11756_v56 }
 0xa0d   : > { %10875 = vmatpush3.bf16.msk.msra.mxu1 %vm12037_vm10, %v12066_v53 }
 0xa0e   : > { %10891 = vmatprep.subr.bf16.mxu1 %v11756_v56 }
 0xa0f   : > { %10887 = vmatpush3.bf16.msra.mxu0 %v12100_v32 }
 0xa10   : > { %9545 = vmatmul.mubr.msk.f32.vlgmr.msra.gmra.mrb[26].mxu1 %vm863_vm11, %v2891_v61  ;;  %10888 = vmatprep.subr.bf16.mxu0 %v11756_v56 }
 0xa11   : > { %10893 = vmatpush3.bf16.msra.mxu1 %v12078_v62  ;;  %9590 = vmatprep.mubr.msk.f32.mxu1 %vm11757_vm5, %v11758_v57 }
 0xa12   : > { %10894 = vmatprep.subr.bf16.mxu1 %v11756_v56 }
 0xa13   : > { %10890 = vmatpush3.bf16.msra.mxu0 %v12108_v42 }
 0xa14   : > { %10907 = vmatprep.subr.bf16.mxu0 %v11909_v3 }
 0xa15   : > { %10896 = vmatpush3.bf16.msra.mxu1 %v12086_v13 }
 0xa16   : > { %10897 = vmatprep.subr.bf16.mxu1 %v11756_v56 }
 0xa19   : > { %10899 = vmatpush3.bf16.msra.mxu1 %v12093_v24 }
 0xa1a   : > { %10900 = vmatprep.subr.bf16.mxu1 %v11756_v56 }
 0xa1d   : > { %10902 = vmatpush3.bf16.msra.mxu1 %v12102_v35 }
 0xa1e   : > { %10903 = vmatprep.subr.bf16.mxu1 %v11756_v56 }
 0xa21   : > { %10905 = vmatpush3.bf16.msra.mxu1 %v12110_v45 }
 0xa22   : > { %10919 = vmatprep.subr.bf16.mxu1 %v11917_v15 }
 0xad5   : > { %v2887_v1 = vpop.f32.mrb[26].mxu0 }
 0xad6   : > { %v9531_v2 = vpop.f32.mrb[27].mxu0 }
 0xad7   : > { %v2815_v5 = vpop.f32.mrb[24].mxu1 }
 0xad8   : > { %v2888_v6 = vadd.f32 %v2887_v1, %v2815_v5  ;;  %v9516_v12 = vpop.f32.mrb[25].mxu1 }
 0xae3   : > { %v2960_v26 = vpop.f32.mrb[26].mxu1 }
 0xae4   : > { %v2964_v27 = vadd.f32 %v2960_v26, %v2888_v6  ;;  %v9546_v49 = vpop.f32.mrb[27].mxu1  ;;  %v12420_v6 = vld [vmem:[#allocation5 + $0x30] ss:$0 sm:$0xff] }
 0xae6   : > { %v2965_v36 = vadd.f32 %v12118_v0, %v2964_v27 }
 0xae8   : > { %v2966_v38 = vmax.f32 %v2965_v36, 0.0 }
 0xaea   : > { %9568 = vmatmul.mubr.msk.f32.vlgmr.msra.gmra.mrb[28].mxu0 %vm1098_vm12, %v2966_v38  ;;  %9591 = vmatmul.mubr.msk.f32.vlgmr.msra.gmra.mrb[28].mxu1 %vm1098_vm12, %v2966_v38 }
 0xaeb   : > { %10909 = vmatpush3.bf16.msra.mxu0 %v11909_v3  ;;  %9597 = vmatprep.mubr.msk.f32.mxu0 %vm292_vm1, %v3129_v39 }
 0xaec   : > { %10911 = vmatprep.subr.bf16.mxu0 %v11912_v9  ;;  %10921 = vmatpush3.bf16.msra.mxu1 %v11917_v15 }
 0xaed   : > { %10923 = vmatprep.subr.bf16.mxu1 %v11923_v19 }
 0xaee   : > { %9598 = vmatmul.mubr.msk.f32.vlgmr.msra.gmra.mrb[30].mxu0 %vm292_vm1, %v3128_v33 }
 0xaef   : > { %10913 = vmatpush3.bf16.msra.mxu0 %v11912_v9  ;;  %9604 = vmatprep.mubr.msk.f32.mxu0 %vm292_vm1, %v8195_v14 }
 0xaf0   : > { %10915 = vmatprep.subr.bf16.mxu0 %v11921_v18  ;;  %10925 = vmatpush3.bf16.msra.mxu1 %v11923_v19 }
 0xaf1   : > { %10927 = vmatprep.subr.bf16.mxu1 %v11930_v22 }
 0xaf4   : > { %10929 = vmatpush3.bf16.msra.mxu1 %v11930_v22 }
 0xaf5   : > { %10931 = vmatprep.subr.bf16.mxu1 %v11939_v31 }
 0xaf6   : > { %9605 = vmatmul.mubr.msk.f32.vlgmr.msra.gmra.mrb[30].mxu0 %vm292_vm1, %v8196_v16 }
 0xaf7   : > { %10917 = vmatpush3.bf16.msra.mxu0 %v11921_v18  ;;  %9611 = vmatprep.mubr.msk.f32.mxu0 %vm292_vm1, %v3290_v52 }
 0xaf8   : > { %10939 = vmatprep.subr.bf16.mxu0 %v11937_v30  ;;  %10933 = vmatpush3.bf16.msra.mxu1 %v11939_v31 }
 0xaf9   : > { %10935 = vmatprep.subr.bf16.mxu1 %v11962_v44 }
 0xafc   : > { %10937 = vmatpush3.bf16.msra.mxu1 %v11962_v44 }
 0xafd   : > { %9634 = vmatprep.subr.msk.mxu1 %vm551_vm3, %v11970_v47 }
 0xafe   : > { %9612 = vmatmul.mubr.msk.f32.vlgmr.msra.gmra.mrb[30].mxu0 %vm292_vm1, %v3289_v51 }
 0xaff   : > { %10941 = vmatpush3.bf16.msra.mxu0 %v11937_v30 }
 0xb00   : > { %10943 = vmatprep.subr.bf16.mxu0 %v11948_v34  ;;  %9635 = vmatpush3.msk.msra.mxu1 %vm551_vm3, %v11970_v47 }
 0xb01   : > { %10958 = vmatprep.subr.bf16.mxu1 %v11756_v56 }
 0xb03   : > { %10945 = vmatpush3.bf16.msra.mxu0 %v11948_v34 }
 0xb04   : > { %10947 = vmatprep.subr.bf16.mxu0 %v11953_v37 }
 0xb07   : > { %10949 = vmatpush3.bf16.msra.mxu0 %v11953_v37 }
 0xb08   : > { %10951 = vmatprep.subr.bf16.mxu0 %v11957_v40 }
 0xb0b   : > { %10953 = vmatpush3.bf16.msra.mxu0 %v11957_v40 }
 0xb0c   : > { %10955 = vmatprep.subr.bf16.mxu0 %v11964_v46 }
 0xb0f   : > { %10957 = vmatpush3.bf16.msra.mxu0 %v11964_v46 }
 0xb10   : > { %9659 = vmatprep.subr.msk.mxu0 %vm551_vm3, %v11972_v48 }
 0xb13   : > { %9660 = vmatpush3.msk.msra.mxu0 %vm551_vm3, %v11972_v48 }
 0xb14   : > { %10962 = vmatprep.subr.bf16.mxu0 %v11756_v56 }
 0xbbd   : > { %v3036_v47 = vpop.f32.mrb[28].mxu0  ;;  %v3106_v54 = vpop.f32.mrb[28].mxu1 }
 0xbbe   : > { %v3110_v55 = vmax.f32 %v3036_v47, %v3106_v54  ;;  %v9569_v58 = vpop.f32.mrb[29].mxu0  ;;  %v9592_v59 = vpop.f32.mrb[29].mxu1 }
 0xbc0   : > { %v3112_v61 = vrot.slane %v3110_v55, 1 }
 0xbc2   : > { %v3114_v1 = vmax.f32 %v3110_v55, %v3112_v61 }
 0xbc4   : > { %v3116_v2 = vrot.slane %v3114_v1, 2 }
 0xbc6   : > { %3117 = vrot.lane.b32.xlu1 %v3116_v2, %s11760_s14 }
 0xbd1   : > { %v9613_v5 = vpop.f32.mrb[30].mxu0 }
 0xbd2   : > { %v3373_v12 = vadd.f32 %v12420_v6, %v9613_v5  ;;  %v3361_v14 = vpop.f32.mrb[31].mxu0 }
 0xbd3   : > { %v3372_v48 = vadd.f32 %v12420_v6, %v3361_v14  ;;  %v8222_v14 = vld [vmem:[%s11898_s22 + $0x48] sm:$0xff] }
 0xbd4   : > { %v3375_v26 = vmax.f32 %v3373_v12, 0.0  ;;  %v8221_v12 = vld [vmem:[%s11898_s22 + $0x40] sm:$0xff] }
 0xbd5   : > { %v3374_v16 = vmax.f32 %v3372_v48, 0.0 }
 0xbd7   : > { %9636 = vmatprep.mubr.msk.f32.mxu1 %vm544_vm4, %v3374_v16  ;;  %9661 = vmatprep.mubr.msk.f32.mxu0 %vm544_vm4, %v3374_v16 }
 0xbd8   : > { %9637 = vmatmul.mubr.msk.f32.vlgmr.msra.gmra.mrb[30].mxu1 %vm544_vm4, %v3375_v26  ;;  %9662 = vmatmul.mubr.msk.f32.vlgmr.msra.gmra.mrb[32].mxu0 %vm544_vm4, %v3375_v26 }
 0xbd9   : > { %9668 = vmatprep.mubr.msk.f32.mxu1 %vm11757_vm5, %v11758_v57  ;;  %9675 = vmatprep.mubr.msk.f32.mxu0 %vm11757_vm5, %v11758_v57 }
 0xc38   : > { %v3118_v27 = vpop.permute.xlu1 %3117 }
 0xc39   : > { %v3120_v49 = vsel %vm1252_vm13, %v3114_v1, %v3118_v27  ;;  %v4060_v27 = vrot.slane %v8221_v12, 1 }
 0xc3a   : > { %3121 = vst.msk [vmem:[#allocation2 + $0x2] sm:$0x1] %vm1254_vm14, %v3120_v49  ;;  %v4061_v49 = vrot.slane %v8222_v14, 1 }
 0xcab   : > { %v9638_v29 = vpop.f32.mrb[30].mxu1  ;;  %v9663_v33 = vpop.f32.mrb[32].mxu0 }
 0xcac   : > { %v3533_v36 = vmax.f32 %v9638_v29, %v9663_v33  ;;  %v3448_v38 = vpop.f32.mrb[31].mxu1  ;;  %v3523_v39 = vpop.f32.mrb[33].mxu0 }
 0xcad   : > { %v3532_v43 = vmax.f32 %v3448_v38, %v3523_v39  ;;  %v4222_v38 = vrot.slane %v8222_v14, 2 }
 0xcaf   : > { %v10959_v51 = vpack.c.bf16 %v3533_v36, %v3532_v43  ;;  %v4062_v36 = vsel %vm288_vm0, %v4060_v27, %v4061_v49  ;;  %v12528_v43 = vld [vmem:[#allocation5 + $0x88] sm:$0xf] }
 0xcb1   : > { %10961 = vmatpush3.bf16.msk.msra.mxu1 %vm11998_vm7, %v10959_v51  ;;  %10965 = vmatpush3.bf16.msk.msra.mxu0 %vm11998_vm7, %v10959_v51  ;;  %v12545_v51 = vld [vmem:[#allocation5 + $0xe0] sm:$0xf] }
 0xcb2   : > { %10976 = vmatprep.subr.bf16.mxu0 %v11756_v56  ;;  %10966 = vmatprep.subr.bf16.mxu1 %v11756_v56 }
 0xcb4   : > { %9669 = vmatmul.mubr.msk.f32.vlgmr.msra.gmra.mrb[32].mxu1 %vm710_vm8, %v12006_v7  ;;  %9676 = vmatmul.mubr.msk.f32.vlgmr.msra.gmra.mrb[34].mxu0 %vm710_vm8, %v12008_v8 }
 0xcb5   : > { %10978 = vmatpush3.bf16.msra.mxu0 %v12010_v10  ;;  %10968 = vmatpush3.bf16.msra.mxu1 %v12012_v11 }
 0xcb6   : > { %10979 = vmatprep.subr.bf16.mxu0 %v11756_v56  ;;  %10969 = vmatprep.subr.bf16.mxu1 %v11756_v56 }
 0xcb7   : > { %9705 = vmatprep.mubr.msk.f32.mxu0 %vm11757_vm5, %v11758_v57  ;;  %9690 = vmatprep.mubr.msk.f32.mxu1 %vm11757_vm5, %v11758_v57 }
 0xcb9   : > { %10981 = vmatpush3.bf16.msra.mxu0 %v12022_v17  ;;  %10971 = vmatpush3.bf16.msra.mxu1 %v12024_v20 }
 0xcba   : > { %10982 = vmatprep.subr.bf16.mxu0 %v11756_v56  ;;  %10972 = vmatprep.subr.bf16.mxu1 %v11756_v56 }
 0xcbd   : > { %10985 = vmatpush3.bf16.msk.msra.mxu0 %vm12037_vm10, %v12041_v25  ;;  %10975 = vmatpush3.bf16.msk.msra.mxu1 %vm12037_vm10, %v12043_v28 }
 0xcbe   : > { %10986 = vmatprep.subr.bf16.mxu1 %v11756_v56  ;;  %10996 = vmatprep.subr.bf16.mxu0 %v11756_v56 }
 0xd87   : > { %v3603_v7 = vpop.f32.mrb[32].mxu1  ;;  %v3673_v8 = vpop.f32.mrb[34].mxu0 }
 0xd88   : > { %v3677_v52 = vmax.f32 %v3603_v7, %v3673_v8  ;;  %v9670_v47 = vpop.f32.mrb[33].mxu1  ;;  %v9677_v54 = vpop.f32.mrb[35].mxu0 }
 0xd8a   : > { %v3679_v55 = vrot.slane %v3677_v52, 1  ;;  %9706 = vmatmul.mubr.msk.f32.vlgmr.msra.gmra.mrb[36].mxu0 %vm863_vm11, %v3677_v52  ;;  %v3824_v58 = vrot.slane %v3677_v52, 2 }
 0xd8b   : > { %10998 = vmatpush3.bf16.msra.mxu0 %v12076_v60  ;;  %9743 = vmatprep.mubr.msk.f32.mxu0 %vm11757_vm5, %v11758_v57 }
 0xd8c   : > { %9691 = vmatmul.mubr.msk.f32.vlgmr.msra.gmra.mrb[34].mxu1 %vm863_vm11, %v3679_v55  ;;  %10999 = vmatprep.subr.bf16.mxu0 %v11756_v56 }
 0xd8d   : > { %10988 = vmatpush3.bf16.msra.mxu1 %v12053_v41  ;;  %9720 = vmatprep.mubr.msk.f32.mxu1 %vm11757_vm5, %v11758_v57 }
 0xd8e   : > { %10989 = vmatprep.subr.bf16.mxu1 %v11756_v56 }
 0xd8f   : > { %11001 = vmatpush3.bf16.msra.mxu0 %v12084_v4 }
 0xd90   : > { %11002 = vmatprep.subr.bf16.mxu0 %v11756_v56 }
 0xd91   : > { %10991 = vmatpush3.bf16.msra.mxu1 %v12060_v50 }
 0xd92   : > { %10992 = vmatprep.subr.bf16.mxu1 %v11756_v56 }
 0xd93   : > { %11004 = vmatpush3.bf16.msra.mxu0 %v12089_v23 }
 0xd94   : > { %11005 = vmatprep.subr.bf16.mxu0 %v11756_v56 }
 0xd95   : > { %10995 = vmatpush3.bf16.msk.msra.mxu1 %vm12037_vm10, %v12066_v53 }
 0xd96   : > { %11011 = vmatprep.subr.bf16.mxu1 %v11756_v56 }
 0xd97   : > { %11007 = vmatpush3.bf16.msra.mxu0 %v12100_v32 }
 0xd98   : > { %9721 = vmatmul.mubr.msk.f32.vlgmr.msra.gmra.mrb[36].mxu1 %vm863_vm11, %v3824_v58  ;;  %11008 = vmatprep.subr.bf16.mxu0 %v11756_v56 }
 0xd99   : > { %11013 = vmatpush3.bf16.msra.mxu1 %v12078_v62  ;;  %9766 = vmatprep.mubr.msk.f32.mxu1 %vm11757_vm5, %v11758_v57 }
 0xd9a   : > { %11014 = vmatprep.subr.bf16.mxu1 %v11756_v56 }
 0xd9b   : > { %11010 = vmatpush3.bf16.msra.mxu0 %v12108_v42 }
 0xd9c   : > { %11027 = vmatprep.subr.bf16.mxu0 %v11909_v3 }
 0xd9d   : > { %11016 = vmatpush3.bf16.msra.mxu1 %v12086_v13 }
 0xd9e   : > { %11017 = vmatprep.subr.bf16.mxu1 %v11756_v56 }
 0xda1   : > { %11019 = vmatpush3.bf16.msra.mxu1 %v12093_v24 }
 0xda2   : > { %11020 = vmatprep.subr.bf16.mxu1 %v11756_v56 }
 0xda5   : > { %11022 = vmatpush3.bf16.msra.mxu1 %v12102_v35 }
 0xda6   : > { %11023 = vmatprep.subr.bf16.mxu1 %v11756_v56 }
 0xda9   : > { %11025 = vmatpush3.bf16.msra.mxu1 %v12110_v45 }
 0xdaa   : > { %11039 = vmatprep.subr.bf16.mxu1 %v11917_v15 }
 0xe5d   : > { %v3820_v59 = vpop.f32.mrb[36].mxu0 }
 0xe5e   : > { %v9707_v61 = vpop.f32.mrb[37].mxu0 }
 0xe5f   : > { %v3748_v1 = vpop.f32.mrb[34].mxu1 }
 0xe60   : > { %v3821_v2 = vadd.f32 %v3820_v59, %v3748_v1  ;;  %v9692_v5 = vpop.f32.mrb[35].mxu1 }
 0xe6b   : > { %v3893_v48 = vpop.f32.mrb[36].mxu1 }
 0xe6c   : > { %v3897_v16 = vadd.f32 %v3893_v48, %v3821_v2  ;;  %v9722_v26 = vpop.f32.mrb[37].mxu1 }
 0xe6e   : > { %v3898_v29 = vadd.f32 %v12118_v0, %v3897_v16  ;;  %v4221_v0 = vrot.slane %v8221_v12, 2 }
 0xe70   : > { %v3899_v33 = vmax.f32 %v3898_v29, 0.0  ;;  %v4223_v39 = vsel %vm451_vm2, %v4221_v0, %v4222_v38 }
 0xe72   : > { %9744 = vmatmul.mubr.msk.f32.vlgmr.msra.gmra.mrb[38].mxu0 %vm1098_vm12, %v3899_v33  ;;  %9767 = vmatmul.mubr.msk.f32.vlgmr.msra.gmra.mrb[38].mxu1 %vm1098_vm12, %v3899_v33 }
 0xe73   : > { %11029 = vmatpush3.bf16.msra.mxu0 %v11909_v3  ;;  %9773 = vmatprep.mubr.msk.f32.mxu0 %vm292_vm1, %v4062_v36 }
 0xe74   : > { %11031 = vmatprep.subr.bf16.mxu0 %v11912_v9  ;;  %11041 = vmatpush3.bf16.msra.mxu1 %v11917_v15 }
 0xe75   : > { %11043 = vmatprep.subr.bf16.mxu1 %v11923_v19 }
 0xe76   : > { %9774 = vmatmul.mubr.msk.f32.vlgmr.msra.gmra.mrb[40].mxu0 %vm292_vm1, %v4061_v49 }
 0xe77   : > { %11033 = vmatpush3.bf16.msra.mxu0 %v11912_v9  ;;  %9780 = vmatprep.mubr.msk.f32.mxu0 %vm292_vm1, %v8221_v12 }
 0xe78   : > { %11035 = vmatprep.subr.bf16.mxu0 %v11921_v18  ;;  %11045 = vmatpush3.bf16.msra.mxu1 %v11923_v19 }
 0xe79   : > { %11047 = vmatprep.subr.bf16.mxu1 %v11930_v22 }
 0xe7c   : > { %11049 = vmatpush3.bf16.msra.mxu1 %v11930_v22 }
 0xe7d   : > { %11051 = vmatprep.subr.bf16.mxu1 %v11939_v31 }
 0xe7e   : > { %9781 = vmatmul.mubr.msk.f32.vlgmr.msra.gmra.mrb[40].mxu0 %vm292_vm1, %v8222_v14 }
 0xe7f   : > { %11037 = vmatpush3.bf16.msra.mxu0 %v11921_v18  ;;  %9787 = vmatprep.mubr.msk.f32.mxu0 %vm292_vm1, %v4223_v39  ;;  %v12575_v39 = vld [vmem:[#allocation5 + $0xf0] sm:$0x7f] }
 0xe80   : > { %11059 = vmatprep.subr.bf16.mxu0 %v11937_v30  ;;  %11053 = vmatpush3.bf16.msra.mxu1 %v11939_v31 }
 0xe81   : > { %11055 = vmatprep.subr.bf16.mxu1 %v11962_v44 }
 0xe84   : > { %11057 = vmatpush3.bf16.msra.mxu1 %v11962_v44 }
 0xe85   : > { %9810 = vmatprep.subr.msk.mxu1 %vm551_vm3, %v12528_v43 }
 0xe86   : > { %9788 = vmatmul.mubr.msk.f32.vlgmr.msra.gmra.mrb[40].mxu0 %vm292_vm1, %v4222_v38  ;;  %v12571_v38 = vld [vmem:[#allocation5 + $0xe8] sm:$0x7f] }
 0xe87   : > { %11061 = vmatpush3.bf16.msra.mxu0 %v11937_v30 }
 0xe88   : > { %11063 = vmatprep.subr.bf16.mxu0 %v11948_v34  ;;  %9811 = vmatpush3.msk.msra.mxu1 %vm551_vm3, %v12528_v43 }
 0xe89   : > { %11078 = vmatprep.subr.bf16.mxu1 %v11756_v56 }
 0xe8b   : > { %11065 = vmatpush3.bf16.msra.mxu0 %v11948_v34 }
 0xe8c   : > { %11067 = vmatprep.subr.bf16.mxu0 %v11953_v37 }
 0xe8f   : > { %11069 = vmatpush3.bf16.msra.mxu0 %v11953_v37 }
 0xe90   : > { %11071 = vmatprep.subr.bf16.mxu0 %v11957_v40 }
 0xe93   : > { %11073 = vmatpush3.bf16.msra.mxu0 %v11957_v40 }
 0xe94   : > { %11075 = vmatprep.subr.bf16.mxu0 %v11964_v46 }
 0xe97   : > { %11077 = vmatpush3.bf16.msra.mxu0 %v11964_v46 }
 0xe98   : > { %9835 = vmatprep.subr.msk.mxu0 %vm551_vm3, %v12545_v51 }
 0xe9b   : > { %9836 = vmatpush3.msk.msra.mxu0 %vm551_vm3, %v12545_v51 }
 0xe9c   : > { %11082 = vmatprep.subr.bf16.mxu0 %v11756_v56 }
 0xf45   : > { %v3969_v7 = vpop.f32.mrb[38].mxu0  ;;  %v4039_v8 = vpop.f32.mrb[38].mxu1 }
 0xf46   : > { %v4043_v52 = vmax.f32 %v3969_v7, %v4039_v8  ;;  %v9745_v47 = vpop.f32.mrb[39].mxu0  ;;  %v9768_v54 = vpop.f32.mrb[39].mxu1 }
 0xf48   : > { %v4045_v55 = vrot.slane %v4043_v52, 1 }
 0xf4a   : > { %v4047_v58 = vmax.f32 %v4043_v52, %v4045_v55 }
 0xf4c   : > { %v4049_v59 = vrot.slane %v4047_v58, 2 }
 0xf4e   : > { %4050 = vrot.lane.b32.xlu1 %v4049_v59, %s11760_s14 }
 0xf59   : > { %v9789_v61 = vpop.f32.mrb[40].mxu0 }
 0xf5a   : > { %v4306_v1 = vadd.f32 %v12420_v6, %v9789_v61  ;;  %v4294_v2 = vpop.f32.mrb[41].mxu0 }
 0xf5b   : > { %v4305_v5 = vadd.f32 %v12420_v6, %v4294_v2 }
 0xf5c   : > { %v4308_v14 = vmax.f32 %v4306_v1, 0.0 }
 0xf5d   : > { %v4307_v12 = vmax.f32 %v4305_v5, 0.0 }
 0xf5f   : > { %9812 = vmatprep.mubr.msk.f32.mxu1 %vm544_vm4, %v4307_v12  ;;  %9837 = vmatprep.mubr.msk.f32.mxu0 %vm544_vm4, %v4307_v12  ;;  %v8247_v12 = vld [vmem:[%s11898_s22 + $0x50] sm:$0xff] }
 0xf60   : > { %9813 = vmatmul.mubr.msk.f32.vlgmr.msra.gmra.mrb[40].mxu1 %vm544_vm4, %v4308_v14  ;;  %9838 = vmatmul.mubr.msk.f32.vlgmr.msra.gmra.mrb[42].mxu0 %vm544_vm4, %v4308_v14  ;;  %v8248_v14 = vld [vmem:[%s11898_s22 + $0x58] sm:$0xff] }
 0xf61   : > { %9844 = vmatprep.mubr.msk.f32.mxu1 %vm11757_vm5, %v11758_v57  ;;  %9851 = vmatprep.mubr.msk.f32.mxu0 %vm11757_vm5, %v11758_v57 }
 0xfc0   : > { %v4051_v48 = vpop.permute.xlu1 %4050 }
 0xfc1   : > { %v4053_v16 = vsel %vm1252_vm13, %v4047_v58, %v4051_v48 }
 0xfc2   : > { %4054 = vst.msk [vmem:[#allocation2 + $0x3] sm:$0x1] %vm1254_vm14, %v4053_v16 }
0x1033   : > { %v9814_v26 = vpop.f32.mrb[40].mxu1  ;;  %v9839_v27 = vpop.f32.mrb[42].mxu0 }
0x1034   : > { %v4466_v49 = vmax.f32 %v9814_v26, %v9839_v27  ;;  %v4381_v29 = vpop.f32.mrb[41].mxu1  ;;  %v4456_v33 = vpop.f32.mrb[43].mxu0  ;;  %v4993_v27 = vrot.slane %v8247_v12, 1 }
0x1035   : > { %v4465_v36 = vmax.f32 %v4381_v29, %v4456_v33  ;;  %v12638_v29 = vld [vmem:[#allocation5 + $0x188] ss:$0 sm:$0xff] }
0x1037   : > { %v11079_v0 = vpack.c.bf16 %v4466_v49, %v4465_v36  ;;  %v4994_v49 = vrot.slane %v8248_v14, 1 }
0x1039   : > { %11081 = vmatpush3.bf16.msk.msra.mxu1 %vm11998_vm7, %v11079_v0  ;;  %11085 = vmatpush3.bf16.msk.msra.mxu0 %vm11998_vm7, %v11079_v0  ;;  %v4995_v0 = vsel %vm288_vm0, %v4993_v27, %v4994_v49 }
0x103a   : > { %11096 = vmatprep.subr.bf16.mxu0 %v11756_v56  ;;  %11086 = vmatprep.subr.bf16.mxu1 %v11756_v56 }
0x103c   : > { %9845 = vmatmul.mubr.msk.f32.vlgmr.msra.gmra.mrb[42].mxu1 %vm710_vm8, %v12571_v38  ;;  %9852 = vmatmul.mubr.msk.f32.vlgmr.msra.gmra.mrb[44].mxu0 %vm710_vm8, %v12575_v39 }
0x103d   : > { %11098 = vmatpush3.bf16.msra.mxu0 %v12010_v10  ;;  %11088 = vmatpush3.bf16.msra.mxu1 %v12012_v11 }
0x103e   : > { %11099 = vmatprep.subr.bf16.mxu0 %v11756_v56  ;;  %11089 = vmatprep.subr.bf16.mxu1 %v11756_v56 }
0x103f   : > { %9881 = vmatprep.mubr.msk.f32.mxu0 %vm11757_vm5, %v11758_v57  ;;  %9866 = vmatprep.mubr.msk.f32.mxu1 %vm11757_vm5, %v11758_v57 }
0x1041   : > { %11101 = vmatpush3.bf16.msra.mxu0 %v12022_v17  ;;  %11091 = vmatpush3.bf16.msra.mxu1 %v12024_v20 }
0x1042   : > { %11102 = vmatprep.subr.bf16.mxu0 %v11756_v56  ;;  %11092 = vmatprep.subr.bf16.mxu1 %v11756_v56 }
0x1045   : > { %11105 = vmatpush3.bf16.msk.msra.mxu0 %vm12037_vm10, %v12041_v25  ;;  %11095 = vmatpush3.bf16.msk.msra.mxu1 %vm12037_vm10, %v12043_v28 }
0x1046   : > { %11106 = vmatprep.subr.bf16.mxu1 %v11756_v56  ;;  %11116 = vmatprep.subr.bf16.mxu0 %v11756_v56 }
0x110f   : > { %v4536_v7 = vpop.f32.mrb[42].mxu1  ;;  %v4606_v8 = vpop.f32.mrb[44].mxu0 }
0x1110   : > { %v4610_v52 = vmax.f32 %v4536_v7, %v4606_v8  ;;  %v9846_v47 = vpop.f32.mrb[43].mxu1  ;;  %v9853_v54 = vpop.f32.mrb[45].mxu0  ;;  %v5154_v7 = vrot.slane %v8247_v12, 2  ;;  %v5155_v8 = vrot.slane %v8248_v14, 2 }
0x1112   : > { %v4612_v55 = vrot.slane %v4610_v52, 1  ;;  %9882 = vmatmul.mubr.msk.f32.vlgmr.msra.gmra.mrb[46].mxu0 %vm863_vm11, %v4610_v52  ;;  %v4757_v58 = vrot.slane %v4610_v52, 2  ;;  %v5156_v52 = vsel %vm451_vm2, %v5154_v7, %v5155_v8 }
0x1113   : > { %11118 = vmatpush3.bf16.msra.mxu0 %v12076_v60  ;;  %9919 = vmatprep.mubr.msk.f32.mxu0 %vm11757_vm5, %v11758_v57 }
0x1114   : > { %9867 = vmatmul.mubr.msk.f32.vlgmr.msra.gmra.mrb[44].mxu1 %vm863_vm11, %v4612_v55  ;;  %11119 = vmatprep.subr.bf16.mxu0 %v11756_v56 }
0x1115   : > { %11108 = vmatpush3.bf16.msra.mxu1 %v12053_v41  ;;  %9896 = vmatprep.mubr.msk.f32.mxu1 %vm11757_vm5, %v11758_v57 }
0x1116   : > { %11109 = vmatprep.subr.bf16.mxu1 %v11756_v56 }
0x1117   : > { %11121 = vmatpush3.bf16.msra.mxu0 %v12084_v4 }
0x1118   : > { %11122 = vmatprep.subr.bf16.mxu0 %v11756_v56 }
0x1119   : > { %11111 = vmatpush3.bf16.msra.mxu1 %v12060_v50 }
0x111a   : > { %11112 = vmatprep.subr.bf16.mxu1 %v11756_v56 }
0x111b   : > { %11124 = vmatpush3.bf16.msra.mxu0 %v12089_v23 }
0x111c   : > { %11125 = vmatprep.subr.bf16.mxu0 %v11756_v56 }
0x111d   : > { %11115 = vmatpush3.bf16.msk.msra.mxu1 %vm12037_vm10, %v12066_v53 }
0x111e   : > { %11131 = vmatprep.subr.bf16.mxu1 %v11756_v56 }
0x111f   : > { %11127 = vmatpush3.bf16.msra.mxu0 %v12100_v32 }
0x1120   : > { %9897 = vmatmul.mubr.msk.f32.vlgmr.msra.gmra.mrb[46].mxu1 %vm863_vm11, %v4757_v58  ;;  %11128 = vmatprep.subr.bf16.mxu0 %v11756_v56 }
0x1121   : > { %11133 = vmatpush3.bf16.msra.mxu1 %v12078_v62  ;;  %9942 = vmatprep.mubr.msk.f32.mxu1 %vm11757_vm5, %v11758_v57 }
0x1122   : > { %11134 = vmatprep.subr.bf16.mxu1 %v11756_v56 }
0x1123   : > { %11130 = vmatpush3.bf16.msra.mxu0 %v12108_v42 }
0x1124   : > { %11147 = vmatprep.subr.bf16.mxu0 %v11909_v3 }
0x1125   : > { %11136 = vmatpush3.bf16.msra.mxu1 %v12086_v13 }
0x1126   : > { %11137 = vmatprep.subr.bf16.mxu1 %v11756_v56 }
0x1129   : > { %11139 = vmatpush3.bf16.msra.mxu1 %v12093_v24 }
0x112a   : > { %11140 = vmatprep.subr.bf16.mxu1 %v11756_v56 }
0x112d   : > { %11142 = vmatpush3.bf16.msra.mxu1 %v12102_v35 }
0x112e   : > { %11143 = vmatprep.subr.bf16.mxu1 %v11756_v56 }
0x1131   : > { %11145 = vmatpush3.bf16.msra.mxu1 %v12110_v45 }
0x1132   : > { %11159 = vmatprep.subr.bf16.mxu1 %v11917_v15 }
0x11e5   : > { %v4753_v59 = vpop.f32.mrb[46].mxu0 }
0x11e6   : > { %v9883_v61 = vpop.f32.mrb[47].mxu0 }
0x11e7   : > { %v4681_v1 = vpop.f32.mrb[44].mxu1 }
0x11e8   : > { %v4754_v2 = vadd.f32 %v4753_v59, %v4681_v1  ;;  %v9868_v5 = vpop.f32.mrb[45].mxu1 }
0x11f3   : > { %v4826_v48 = vpop.f32.mrb[46].mxu1 }
0x11f4   : > { %v4830_v16 = vadd.f32 %v4826_v48, %v4754_v2  ;;  %v9898_v26 = vpop.f32.mrb[47].mxu1 }
0x11f6   : > { %v4831_v33 = vadd.f32 %v12638_v29, %v4830_v16 }
0x11f8   : > { %v4832_v36 = vmax.f32 %v4831_v33, 0.0 }
0x11fa   : > { %9920 = vmatmul.mubr.msk.f32.vlgmr.msra.gmra.mrb[48].mxu0 %vm1098_vm12, %v4832_v36  ;;  %9943 = vmatmul.mubr.msk.f32.vlgmr.msra.gmra.mrb[48].mxu1 %vm1098_vm12, %v4832_v36 }
0x11fb   : > { %11149 = vmatpush3.bf16.msra.mxu0 %v11909_v3  ;;  %9949 = vmatprep.mubr.msk.f32.mxu0 %vm292_vm1, %v4995_v0 }
0x11fc   : > { %11151 = vmatprep.subr.bf16.mxu0 %v11912_v9  ;;  %11161 = vmatpush3.bf16.msra.mxu1 %v11917_v15 }
0x11fd   : > { %11163 = vmatprep.subr.bf16.mxu1 %v11923_v19 }
0x11fe   : > { %9950 = vmatmul.mubr.msk.f32.vlgmr.msra.gmra.mrb[50].mxu0 %vm292_vm1, %v4994_v49 }
0x11ff   : > { %11153 = vmatpush3.bf16.msra.mxu0 %v11912_v9  ;;  %9956 = vmatprep.mubr.msk.f32.mxu0 %vm292_vm1, %v8247_v12 }
0x1200   : > { %11155 = vmatprep.subr.bf16.mxu0 %v11921_v18  ;;  %11165 = vmatpush3.bf16.msra.mxu1 %v11923_v19 }
0x1201   : > { %11167 = vmatprep.subr.bf16.mxu1 %v11930_v22 }
0x1204   : > { %11169 = vmatpush3.bf16.msra.mxu1 %v11930_v22 }
0x1205   : > { %11171 = vmatprep.subr.bf16.mxu1 %v11939_v31 }
0x1206   : > { %9957 = vmatmul.mubr.msk.f32.vlgmr.msra.gmra.mrb[50].mxu0 %vm292_vm1, %v8248_v14 }
0x1207   : > { %11157 = vmatpush3.bf16.msra.mxu0 %v11921_v18  ;;  %9963 = vmatprep.mubr.msk.f32.mxu0 %vm292_vm1, %v5156_v52 }
0x1208   : > { %11179 = vmatprep.subr.bf16.mxu0 %v11937_v30  ;;  %11173 = vmatpush3.bf16.msra.mxu1 %v11939_v31 }
0x1209   : > { %11175 = vmatprep.subr.bf16.mxu1 %v11962_v44 }
0x120c   : > { %11177 = vmatpush3.bf16.msra.mxu1 %v11962_v44 }
0x120d   : > { %9986 = vmatprep.subr.msk.mxu1 %vm551_vm3, %v12528_v43 }
0x120e   : > { %9964 = vmatmul.mubr.msk.f32.vlgmr.msra.gmra.mrb[50].mxu0 %vm292_vm1, %v5155_v8 }
0x120f   : > { %11181 = vmatpush3.bf16.msra.mxu0 %v11937_v30 }
0x1210   : > { %11183 = vmatprep.subr.bf16.mxu0 %v11948_v34  ;;  %9987 = vmatpush3.msk.msra.mxu1 %vm551_vm3, %v12528_v43 }
0x1211   : > { %11198 = vmatprep.subr.bf16.mxu1 %v11756_v56 }
0x1213   : > { %11185 = vmatpush3.bf16.msra.mxu0 %v11948_v34 }
0x1214   : > { %11187 = vmatprep.subr.bf16.mxu0 %v11953_v37 }
0x1217   : > { %11189 = vmatpush3.bf16.msra.mxu0 %v11953_v37 }
0x1218   : > { %11191 = vmatprep.subr.bf16.mxu0 %v11957_v40 }
0x121b   : > { %11193 = vmatpush3.bf16.msra.mxu0 %v11957_v40 }
0x121c   : > { %11195 = vmatprep.subr.bf16.mxu0 %v11964_v46 }
0x121f   : > { %11197 = vmatpush3.bf16.msra.mxu0 %v11964_v46 }
0x1220   : > { %10011 = vmatprep.subr.msk.mxu0 %vm551_vm3, %v12545_v51 }
0x1223   : > { %10012 = vmatpush3.msk.msra.mxu0 %vm551_vm3, %v12545_v51 }
0x1224   : > { %11202 = vmatprep.subr.bf16.mxu0 %v11756_v56 }
0x12cd   : > { %v4902_v47 = vpop.f32.mrb[48].mxu0  ;;  %v4972_v54 = vpop.f32.mrb[48].mxu1 }
0x12ce   : > { %v4976_v55 = vmax.f32 %v4902_v47, %v4972_v54  ;;  %v9921_v58 = vpop.f32.mrb[49].mxu0  ;;  %v9944_v59 = vpop.f32.mrb[49].mxu1 }
0x12d0   : > { %v4978_v61 = vrot.slane %v4976_v55, 1 }
0x12d2   : > { %v4980_v1 = vmax.f32 %v4976_v55, %v4978_v61 }
0x12d4   : > { %v4982_v2 = vrot.slane %v4980_v1, 2 }
0x12d6   : > { %4983 = vrot.lane.b32.xlu0 %v4982_v2, %s11760_s14 }
0x12e1   : > { %v9965_v5 = vpop.f32.mrb[50].mxu0 }
0x12e2   : > { %v5239_v12 = vadd.f32 %v12420_v6, %v9965_v5  ;;  %v5227_v14 = vpop.f32.mrb[51].mxu0 }
0x12e3   : > { %v5238_v48 = vadd.f32 %v12420_v6, %v5227_v14 }
0x12e4   : > { %v5241_v26 = vmax.f32 %v5239_v12, 0.0 }
0x12e5   : > { %v5240_v16 = vmax.f32 %v5238_v48, 0.0 }
0x12e7   : > { %9988 = vmatprep.mubr.msk.f32.mxu1 %vm544_vm4, %v5240_v16  ;;  %10013 = vmatprep.mubr.msk.f32.mxu0 %vm544_vm4, %v5240_v16 }
0x12e8   : > { %9989 = vmatmul.mubr.msk.f32.vlgmr.msra.gmra.mrb[50].mxu1 %vm544_vm4, %v5241_v26  ;;  %10014 = vmatmul.mubr.msk.f32.vlgmr.msra.gmra.mrb[52].mxu0 %vm544_vm4, %v5241_v26  ;;  %v8273_v26 = vld [vmem:[%s11898_s22 + $0x60] sm:$0xff] }
0x12e9   : > { %10020 = vmatprep.mubr.msk.f32.mxu1 %vm11757_vm5, %v11758_v57  ;;  %10027 = vmatprep.mubr.msk.f32.mxu0 %vm11757_vm5, %v11758_v57 }
0x1348   : > { %v4984_v27 = vpop.permute.xlu0 %4983 }
0x1349   : > { %v4986_v49 = vsel %vm1252_vm13, %v4980_v1, %v4984_v27  ;;  %v8274_v27 = vld [vmem:[%s11898_s22 + $0x68] sm:$0xff] }
0x134a   : > { %4987 = vst.msk [vmem:[#allocation2 + $0x4] sm:$0x1] %vm1254_vm14, %v4986_v49 }
0x13bb   : > { %v9990_v33 = vpop.f32.mrb[50].mxu1  ;;  %v10015_v36 = vpop.f32.mrb[52].mxu0 }
0x13bc   : > { %v5399_v0 = vmax.f32 %v9990_v33, %v10015_v36  ;;  %v5314_v7 = vpop.f32.mrb[51].mxu1  ;;  %v5389_v8 = vpop.f32.mrb[53].mxu0 }
0x13bd   : > { %v5398_v52 = vmax.f32 %v5314_v7, %v5389_v8  ;;  %v5927_v7 = vrot.slane %v8274_v27, 1 }
0x13bf   : > { %v11199_v47 = vpack.c.bf16 %v5399_v0, %v5398_v52  ;;  %v5926_v0 = vrot.slane %v8273_v26, 1 }
0x13c1   : > { %11201 = vmatpush3.bf16.msk.msra.mxu1 %vm11998_vm7, %v11199_v47  ;;  %11205 = vmatpush3.bf16.msk.msra.mxu0 %vm11998_vm7, %v11199_v47  ;;  %v5928_v47 = vsel %vm288_vm0, %v5926_v0, %v5927_v7 }
0x13c2   : > { %11216 = vmatprep.subr.bf16.mxu0 %v11756_v56  ;;  %11206 = vmatprep.subr.bf16.mxu1 %v11756_v56 }
0x13c4   : > { %10021 = vmatmul.mubr.msk.f32.vlgmr.msra.gmra.mrb[52].mxu1 %vm710_vm8, %v12571_v38  ;;  %10028 = vmatmul.mubr.msk.f32.vlgmr.msra.gmra.mrb[54].mxu0 %vm710_vm8, %v12575_v39 }
0x13c5   : > { %11218 = vmatpush3.bf16.msra.mxu0 %v12010_v10  ;;  %11208 = vmatpush3.bf16.msra.mxu1 %v12012_v11 }
0x13c6   : > { %11219 = vmatprep.subr.bf16.mxu0 %v11756_v56  ;;  %11209 = vmatprep.subr.bf16.mxu1 %v11756_v56 }
0x13c7   : > { %10057 = vmatprep.mubr.msk.f32.mxu0 %vm11757_vm5, %v11758_v57  ;;  %10042 = vmatprep.mubr.msk.f32.mxu1 %vm11757_vm5, %v11758_v57 }
0x13c9   : > { %11221 = vmatpush3.bf16.msra.mxu0 %v12022_v17  ;;  %11211 = vmatpush3.bf16.msra.mxu1 %v12024_v20 }
0x13ca   : > { %11222 = vmatprep.subr.bf16.mxu0 %v11756_v56  ;;  %11212 = vmatprep.subr.bf16.mxu1 %v11756_v56 }
0x13cd   : > { %11225 = vmatpush3.bf16.msk.msra.mxu0 %vm12037_vm10, %v12041_v25  ;;  %11215 = vmatpush3.bf16.msk.msra.mxu1 %vm12037_vm10, %v12043_v28 }
0x13ce   : > { %11226 = vmatprep.subr.bf16.mxu1 %v11756_v56  ;;  %11236 = vmatprep.subr.bf16.mxu0 %v11756_v56 }
0x1497   : > { %v5469_v54 = vpop.f32.mrb[52].mxu1  ;;  %v5539_v55 = vpop.f32.mrb[54].mxu0 }
0x1498   : > { %v5543_v58 = vmax.f32 %v5469_v54, %v5539_v55  ;;  %v10022_v59 = vpop.f32.mrb[53].mxu1  ;;  %v10029_v61 = vpop.f32.mrb[55].mxu0  ;;  %v6087_v54 = vrot.slane %v8273_v26, 2  ;;  %v6088_v55 = vrot.slane %v8274_v27, 2 }
0x149a   : > { %v5545_v1 = vrot.slane %v5543_v58, 1  ;;  %10058 = vmatmul.mubr.msk.f32.vlgmr.msra.gmra.mrb[56].mxu0 %vm863_vm11, %v5543_v58  ;;  %v5690_v2 = vrot.slane %v5543_v58, 2  ;;  %v6089_v58 = vsel %vm451_vm2, %v6087_v54, %v6088_v55 }
0x149b   : > { %11238 = vmatpush3.bf16.msra.mxu0 %v12076_v60  ;;  %10095 = vmatprep.mubr.msk.f32.mxu0 %vm11757_vm5, %v11758_v57 }
0x149c   : > { %10043 = vmatmul.mubr.msk.f32.vlgmr.msra.gmra.mrb[54].mxu1 %vm863_vm11, %v5545_v1  ;;  %11239 = vmatprep.subr.bf16.mxu0 %v11756_v56 }
0x149d   : > { %11228 = vmatpush3.bf16.msra.mxu1 %v12053_v41  ;;  %10072 = vmatprep.mubr.msk.f32.mxu1 %vm11757_vm5, %v11758_v57 }
0x149e   : > { %11229 = vmatprep.subr.bf16.mxu1 %v11756_v56 }
0x149f   : > { %11241 = vmatpush3.bf16.msra.mxu0 %v12084_v4 }
0x14a0   : > { %11242 = vmatprep.subr.bf16.mxu0 %v11756_v56 }
0x14a1   : > { %11231 = vmatpush3.bf16.msra.mxu1 %v12060_v50 }
0x14a2   : > { %11232 = vmatprep.subr.bf16.mxu1 %v11756_v56 }
0x14a3   : > { %11244 = vmatpush3.bf16.msra.mxu0 %v12089_v23 }
0x14a4   : > { %11245 = vmatprep.subr.bf16.mxu0 %v11756_v56 }
0x14a5   : > { %11235 = vmatpush3.bf16.msk.msra.mxu1 %vm12037_vm10, %v12066_v53 }
0x14a6   : > { %11251 = vmatprep.subr.bf16.mxu1 %v11756_v56 }
0x14a7   : > { %11247 = vmatpush3.bf16.msra.mxu0 %v12100_v32 }
0x14a8   : > { %10073 = vmatmul.mubr.msk.f32.vlgmr.msra.gmra.mrb[56].mxu1 %vm863_vm11, %v5690_v2  ;;  %11248 = vmatprep.subr.bf16.mxu0 %v11756_v56 }
0x14a9   : > { %11253 = vmatpush3.bf16.msra.mxu1 %v12078_v62  ;;  %10118 = vmatprep.mubr.msk.f32.mxu1 %vm11757_vm5, %v11758_v57 }
0x14aa   : > { %11254 = vmatprep.subr.bf16.mxu1 %v11756_v56 }
0x14ab   : > { %11250 = vmatpush3.bf16.msra.mxu0 %v12108_v42 }
0x14ac   : > { %11267 = vmatprep.subr.bf16.mxu0 %v11909_v3 }
0x14ad   : > { %11256 = vmatpush3.bf16.msra.mxu1 %v12086_v13 }
0x14ae   : > { %11257 = vmatprep.subr.bf16.mxu1 %v11756_v56 }
0x14b1   : > { %11259 = vmatpush3.bf16.msra.mxu1 %v12093_v24 }
0x14b2   : > { %11260 = vmatprep.subr.bf16.mxu1 %v11756_v56 }
0x14b5   : > { %11262 = vmatpush3.bf16.msra.mxu1 %v12102_v35 }
0x14b6   : > { %11263 = vmatprep.subr.bf16.mxu1 %v11756_v56 }
0x14b9   : > { %11265 = vmatpush3.bf16.msra.mxu1 %v12110_v45 }
0x14ba   : > { %11279 = vmatprep.subr.bf16.mxu1 %v11917_v15 }
0x156d   : > { %v5686_v5 = vpop.f32.mrb[56].mxu0 }
0x156e   : > { %v10059_v12 = vpop.f32.mrb[57].mxu0 }
0x156f   : > { %v5614_v14 = vpop.f32.mrb[54].mxu1 }
0x1570   : > { %v5687_v48 = vadd.f32 %v5686_v5, %v5614_v14  ;;  %v10044_v16 = vpop.f32.mrb[55].mxu1 }
0x157b   : > { %v5759_v49 = vpop.f32.mrb[56].mxu1 }
0x157c   : > { %v5763_v33 = vadd.f32 %v5759_v49, %v5687_v48  ;;  %v10074_v36 = vpop.f32.mrb[57].mxu1 }
0x157e   : > { %v5764_v8 = vadd.f32 %v12638_v29, %v5763_v33 }
0x1580   : > { %v5765_v52 = vmax.f32 %v5764_v8, 0.0 }
0x1582   : > { %10096 = vmatmul.mubr.msk.f32.vlgmr.msra.gmra.mrb[58].mxu0 %vm1098_vm12, %v5765_v52  ;;  %10119 = vmatmul.mubr.msk.f32.vlgmr.msra.gmra.mrb[58].mxu1 %vm1098_vm12, %v5765_v52 }
0x1583   : > { %11269 = vmatpush3.bf16.msra.mxu0 %v11909_v3  ;;  %10125 = vmatprep.mubr.msk.f32.mxu0 %vm292_vm1, %v5928_v47 }
0x1584   : > { %11271 = vmatprep.subr.bf16.mxu0 %v11912_v9  ;;  %11281 = vmatpush3.bf16.msra.mxu1 %v11917_v15 }
0x1585   : > { %11283 = vmatprep.subr.bf16.mxu1 %v11923_v19 }
0x1586   : > { %10126 = vmatmul.mubr.msk.f32.vlgmr.msra.gmra.mrb[60].mxu0 %vm292_vm1, %v5927_v7 }
0x1587   : > { %11273 = vmatpush3.bf16.msra.mxu0 %v11912_v9  ;;  %10132 = vmatprep.mubr.msk.f32.mxu0 %vm292_vm1, %v8273_v26 }
0x1588   : > { %11275 = vmatprep.subr.bf16.mxu0 %v11921_v18  ;;  %11285 = vmatpush3.bf16.msra.mxu1 %v11923_v19 }
0x1589   : > { %11287 = vmatprep.subr.bf16.mxu1 %v11930_v22 }
0x158c   : > { %11289 = vmatpush3.bf16.msra.mxu1 %v11930_v22 }
0x158d   : > { %11291 = vmatprep.subr.bf16.mxu1 %v11939_v31 }
0x158e   : > { %10133 = vmatmul.mubr.msk.f32.vlgmr.msra.gmra.mrb[60].mxu0 %vm292_vm1, %v8274_v27 }
0x158f   : > { %11277 = vmatpush3.bf16.msra.mxu0 %v11921_v18  ;;  %10139 = vmatprep.mubr.msk.f32.mxu0 %vm292_vm1, %v6089_v58 }
0x1590   : > { %11299 = vmatprep.subr.bf16.mxu0 %v11937_v30  ;;  %11293 = vmatpush3.bf16.msra.mxu1 %v11939_v31 }
0x1591   : > { %11295 = vmatprep.subr.bf16.mxu1 %v11962_v44 }
0x1594   : > { %11297 = vmatpush3.bf16.msra.mxu1 %v11962_v44 }
0x1595   : > { %10162 = vmatprep.subr.msk.mxu1 %vm551_vm3, %v12528_v43 }
0x1596   : > { %10140 = vmatmul.mubr.msk.f32.vlgmr.msra.gmra.mrb[60].mxu0 %vm292_vm1, %v6088_v55 }
0x1597   : > { %11301 = vmatpush3.bf16.msra.mxu0 %v11937_v30 }
0x1598   : > { %11303 = vmatprep.subr.bf16.mxu0 %v11948_v34  ;;  %10163 = vmatpush3.msk.msra.mxu1 %vm551_vm3, %v12528_v43 }
0x1599   : > { %11318 = vmatprep.subr.bf16.mxu1 %v11756_v56 }
0x159b   : > { %11305 = vmatpush3.bf16.msra.mxu0 %v11948_v34 }
0x159c   : > { %11307 = vmatprep.subr.bf16.mxu0 %v11953_v37 }
0x159f   : > { %11309 = vmatpush3.bf16.msra.mxu0 %v11953_v37 }
0x15a0   : > { %11311 = vmatprep.subr.bf16.mxu0 %v11957_v40 }
0x15a3   : > { %11313 = vmatpush3.bf16.msra.mxu0 %v11957_v40 }
0x15a4   : > { %11315 = vmatprep.subr.bf16.mxu0 %v11964_v46 }
0x15a7   : > { %11317 = vmatpush3.bf16.msra.mxu0 %v11964_v46 }
0x15a8   : > { %10187 = vmatprep.subr.msk.mxu0 %vm551_vm3, %v12545_v51 }
0x15ab   : > { %10188 = vmatpush3.msk.msra.mxu0 %vm551_vm3, %v12545_v51 }
0x15ac   : > { %11322 = vmatprep.subr.bf16.mxu0 %v11756_v56 }
0x1655   : > { %v5835_v59 = vpop.f32.mrb[58].mxu0  ;;  %v5905_v61 = vpop.f32.mrb[58].mxu1 }
0x1656   : > { %v5909_v1 = vmax.f32 %v5835_v59, %v5905_v61  ;;  %v10097_v2 = vpop.f32.mrb[59].mxu0  ;;  %v10120_v5 = vpop.f32.mrb[59].mxu1 }
0x1658   : > { %v5911_v12 = vrot.slane %v5909_v1, 1 }
0x165a   : > { %v5913_v14 = vmax.f32 %v5909_v1, %v5911_v12 }
0x165c   : > { %v5915_v48 = vrot.slane %v5913_v14, 2 }
0x165e   : > { %5916 = vrot.lane.b32.xlu1 %v5915_v48, %s11760_s14 }
0x1669   : > { %v10141_v16 = vpop.f32.mrb[60].mxu0 }
0x166a   : > { %v6172_v26 = vadd.f32 %v12420_v6, %v10141_v16  ;;  %v6160_v27 = vpop.f32.mrb[61].mxu0 }
0x166b   : > { %v6171_v49 = vadd.f32 %v12420_v6, %v6160_v27 }
0x166c   : > { %v6174_v36 = vmax.f32 %v6172_v26, 0.0 }
0x166d   : > { %v6173_v33 = vmax.f32 %v6171_v49, 0.0 }
0x166f   : > { %10164 = vmatprep.mubr.msk.f32.mxu1 %vm544_vm4, %v6173_v33  ;;  %10189 = vmatprep.mubr.msk.f32.mxu0 %vm544_vm4, %v6173_v33  ;;  %v8299_v33 = vld [vmem:[%s11898_s22 + $0x70] sm:$0xff] }
0x1670   : > { %10165 = vmatmul.mubr.msk.f32.vlgmr.msra.gmra.mrb[60].mxu1 %vm544_vm4, %v6174_v36  ;;  %10190 = vmatmul.mubr.msk.f32.vlgmr.msra.gmra.mrb[62].mxu0 %vm544_vm4, %v6174_v36  ;;  %v8300_v36 = vld [vmem:[%s11898_s22 + $0x78] sm:$0xff] }
0x1671   : > { %10196 = vmatprep.mubr.msk.f32.mxu1 %vm11757_vm5, %v11758_v57  ;;  %10203 = vmatprep.mubr.msk.f32.mxu0 %vm11757_vm5, %v11758_v57 }
0x16d0   : > { %v5917_v0 = vpop.permute.xlu1 %5916 }
0x16d1   : > { %v5919_v7 = vsel %vm1252_vm13, %v5913_v14, %v5917_v0 }
0x16d2   : > { %5920 = vst.msk [vmem:[#allocation2 + $0x5] sm:$0x1] %vm1254_vm14, %v5919_v7 }
0x1743   : > { %v10166_v6 = vpop.f32.mrb[60].mxu1  ;;  %v10191_v8 = vpop.f32.mrb[62].mxu0 }
0x1744   : > { %v6332_v52 = vmax.f32 %v10166_v6, %v10191_v8  ;;  %v6247_v47 = vpop.f32.mrb[61].mxu1  ;;  %v6322_v54 = vpop.f32.mrb[63].mxu0  ;;  %v6859_v8 = vrot.slane %v8299_v33, 1 }
0x1745   : > { %v6331_v55 = vmax.f32 %v6247_v47, %v6322_v54 }
0x1747   : > { %v11319_v58 = vpack.c.bf16 %v6332_v52, %v6331_v55  ;;  %v6860_v52 = vrot.slane %v8300_v36, 1 }
0x1749   : > { %11321 = vmatpush3.bf16.msk.msra.mxu1 %vm11998_vm7, %v11319_v58  ;;  %11325 = vmatpush3.bf16.msk.msra.mxu0 %vm11998_vm7, %v11319_v58  ;;  %v6861_v55 = vsel %vm288_vm0, %v6859_v8, %v6860_v52  ;;  %v7020_v58 = vrot.slane %v8299_v33, 2 }
0x174a   : > { %11336 = vmatprep.subr.bf16.mxu0 %v11756_v56  ;;  %11326 = vmatprep.subr.bf16.mxu1 %v11756_v56 }
0x174c   : > { %10197 = vmatmul.mubr.msk.f32.vlgmr.msra.gmra.mrb[62].mxu1 %vm710_vm8, %v12571_v38  ;;  %10204 = vmatmul.mubr.msk.f32.vlgmr.msra.gmra.mrb[64].mxu0 %vm710_vm8, %v12575_v39 }
0x174d   : > { %11338 = vmatpush3.bf16.msra.mxu0 %v12010_v10  ;;  %11328 = vmatpush3.bf16.msra.mxu1 %v12012_v11 }
0x174e   : > { %11339 = vmatprep.subr.bf16.mxu0 %v11756_v56  ;;  %11329 = vmatprep.subr.bf16.mxu1 %v11756_v56 }
0x174f   : > { %10233 = vmatprep.mubr.msk.f32.mxu0 %vm11757_vm5, %v11758_v57  ;;  %10218 = vmatprep.mubr.msk.f32.mxu1 %vm11757_vm5, %v11758_v57 }
0x1751   : > { %11341 = vmatpush3.bf16.msra.mxu0 %v12022_v17  ;;  %11331 = vmatpush3.bf16.msra.mxu1 %v12024_v20 }
0x1752   : > { %11342 = vmatprep.subr.bf16.mxu0 %v11756_v56  ;;  %11332 = vmatprep.subr.bf16.mxu1 %v11756_v56 }
0x1755   : > { %11345 = vmatpush3.bf16.msk.msra.mxu0 %vm12037_vm10, %v12041_v25  ;;  %11335 = vmatpush3.bf16.msk.msra.mxu1 %vm12037_vm10, %v12043_v28 }
0x1756   : > { %11346 = vmatprep.subr.bf16.mxu1 %v11756_v56  ;;  %11356 = vmatprep.subr.bf16.mxu0 %v11756_v56 }
0x181f   : > { %v6402_v59 = vpop.f32.mrb[62].mxu1  ;;  %v6472_v61 = vpop.f32.mrb[64].mxu0 }
0x1820   : > { %v6476_v1 = vmax.f32 %v6402_v59, %v6472_v61  ;;  %v10198_v2 = vpop.f32.mrb[63].mxu1  ;;  %v10205_v5 = vpop.f32.mrb[65].mxu0  ;;  %v7021_v59 = vrot.slane %v8300_v36, 2 }
0x1822   : > { %v6478_v12 = vrot.slane %v6476_v1, 1  ;;  %10234 = vmatmul.mubr.msk.f32.vlgmr.msra.gmra.mrb[66].mxu0 %vm863_vm11, %v6476_v1  ;;  %v6623_v14 = vrot.slane %v6476_v1, 2 }
0x1823   : > { %11358 = vmatpush3.bf16.msra.mxu0 %v12076_v60  ;;  %10271 = vmatprep.mubr.msk.f32.mxu0 %vm11757_vm5, %v11758_v57 }
0x1824   : > { %10219 = vmatmul.mubr.msk.f32.vlgmr.msra.gmra.mrb[64].mxu1 %vm863_vm11, %v6478_v12  ;;  %11359 = vmatprep.subr.bf16.mxu0 %v11756_v56 }
0x1825   : > { %11348 = vmatpush3.bf16.msra.mxu1 %v12053_v41  ;;  %10248 = vmatprep.mubr.msk.f32.mxu1 %vm11757_vm5, %v11758_v57 }
0x1826   : > { %11349 = vmatprep.subr.bf16.mxu1 %v11756_v56 }
0x1827   : > { %11361 = vmatpush3.bf16.msra.mxu0 %v12084_v4 }
0x1828   : > { %11362 = vmatprep.subr.bf16.mxu0 %v11756_v56 }
0x1829   : > { %11351 = vmatpush3.bf16.msra.mxu1 %v12060_v50 }
0x182a   : > { %11352 = vmatprep.subr.bf16.mxu1 %v11756_v56 }
0x182b   : > { %11364 = vmatpush3.bf16.msra.mxu0 %v12089_v23 }
0x182c   : > { %11365 = vmatprep.subr.bf16.mxu0 %v11756_v56 }
0x182d   : > { %11355 = vmatpush3.bf16.msk.msra.mxu1 %vm12037_vm10, %v12066_v53 }
0x182e   : > { %11371 = vmatprep.subr.bf16.mxu1 %v11756_v56 }
0x182f   : > { %11367 = vmatpush3.bf16.msra.mxu0 %v12100_v32 }
0x1830   : > { %10249 = vmatmul.mubr.msk.f32.vlgmr.msra.gmra.mrb[66].mxu1 %vm863_vm11, %v6623_v14  ;;  %11368 = vmatprep.subr.bf16.mxu0 %v11756_v56 }
0x1831   : > { %11373 = vmatpush3.bf16.msra.mxu1 %v12078_v62  ;;  %10294 = vmatprep.mubr.msk.f32.mxu1 %vm11757_vm5, %v11758_v57 }
0x1832   : > { %11374 = vmatprep.subr.bf16.mxu1 %v11756_v56 }
0x1833   : > { %11370 = vmatpush3.bf16.msra.mxu0 %v12108_v42 }
0x1834   : > { %11387 = vmatprep.subr.bf16.mxu0 %v11909_v3 }
0x1835   : > { %11376 = vmatpush3.bf16.msra.mxu1 %v12086_v13 }
0x1836   : > { %11377 = vmatprep.subr.bf16.mxu1 %v11756_v56 }
0x1839   : > { %11379 = vmatpush3.bf16.msra.mxu1 %v12093_v24 }
0x183a   : > { %11380 = vmatprep.subr.bf16.mxu1 %v11756_v56 }
0x183d   : > { %11382 = vmatpush3.bf16.msra.mxu1 %v12102_v35 }
0x183e   : > { %11383 = vmatprep.subr.bf16.mxu1 %v11756_v56 }
0x1841   : > { %11385 = vmatpush3.bf16.msra.mxu1 %v12110_v45 }
0x1842   : > { %11399 = vmatprep.subr.bf16.mxu1 %v11917_v15 }
0x18f5   : > { %v6619_v48 = vpop.f32.mrb[66].mxu0 }
0x18f6   : > { %v10235_v16 = vpop.f32.mrb[67].mxu0 }
0x18f7   : > { %v6547_v26 = vpop.f32.mrb[64].mxu1 }
0x18f8   : > { %v6620_v27 = vadd.f32 %v6619_v48, %v6547_v26  ;;  %v10220_v49 = vpop.f32.mrb[65].mxu1 }
0x18f9   : > { %v254_v49 = vld [vmem:[#allocation5 + $0x258] sm:$0xff] }
0x1903   : > { %v6692_v0 = vpop.f32.mrb[66].mxu1 }
0x1904   : > { %v6696_v7 = vadd.f32 %v6692_v0, %v6620_v27  ;;  %v10250_v6 = vpop.f32.mrb[67].mxu1  ;;  %v256_v0 = vld [vmem:[#allocation5 + $0x268] sm:$0xff] }
0x1906   : > { %v6697_v47 = vadd.f32 %v12638_v29, %v6696_v7 }
0x1908   : > { %v6698_v54 = vmax.f32 %v6697_v47, 0.0 }
0x190a   : > { %10272 = vmatmul.mubr.msk.f32.vlgmr.msra.gmra.mrb[68].mxu0 %vm1098_vm12, %v6698_v54  ;;  %10295 = vmatmul.mubr.msk.f32.vlgmr.msra.gmra.mrb[68].mxu1 %vm1098_vm12, %v6698_v54 }
0x190b   : > { %11389 = vmatpush3.bf16.msra.mxu0 %v11909_v3  ;;  %10301 = vmatprep.mubr.msk.f32.mxu0 %vm292_vm1, %v6861_v55  ;;  %v7022_v3 = vsel %vm451_vm2, %v7020_v58, %v7021_v59 }
0x190c   : > { %11391 = vmatprep.subr.bf16.mxu0 %v11912_v9  ;;  %11401 = vmatpush3.bf16.msra.mxu1 %v11917_v15 }
0x190d   : > { %11403 = vmatprep.subr.bf16.mxu1 %v11923_v19 }
0x190e   : > { %10302 = vmatmul.mubr.msk.f32.vlgmr.msra.gmra.mrb[70].mxu0 %vm292_vm1, %v6860_v52 }
0x190f   : > { %11393 = vmatpush3.bf16.msra.mxu0 %v11912_v9  ;;  %10308 = vmatprep.mubr.msk.f32.mxu0 %vm292_vm1, %v8299_v33 }
0x1910   : > { %11395 = vmatprep.subr.bf16.mxu0 %v11921_v18  ;;  %11405 = vmatpush3.bf16.msra.mxu1 %v11923_v19 }
0x1911   : > { %11407 = vmatprep.subr.bf16.mxu1 %v11930_v22 }
0x1914   : > { %11409 = vmatpush3.bf16.msra.mxu1 %v11930_v22 }
0x1915   : > { %11411 = vmatprep.subr.bf16.mxu1 %v11939_v31 }
0x1916   : > { %10309 = vmatmul.mubr.msk.f32.vlgmr.msra.gmra.mrb[70].mxu0 %vm292_vm1, %v8300_v36  ;;  %v255_v36 = vld [vmem:[#allocation5 + $0x260] sm:$0xff] }
0x1917   : > { %11397 = vmatpush3.bf16.msra.mxu0 %v11921_v18  ;;  %10315 = vmatprep.mubr.msk.f32.mxu0 %vm292_vm1, %v7022_v3  ;;  %v11516_v7 = vpack.c.bf16 %v256_v0, %v255_v36  ;;  %v259_v3 = vld [vmem:[#allocation5 + $0x280] sm:$0xff] }
0x1918   : > { %11419 = vmatprep.subr.bf16.mxu0 %v11937_v30  ;;  %11413 = vmatpush3.bf16.msra.mxu1 %v11939_v31 }
0x1919   : > { %11415 = vmatprep.subr.bf16.mxu1 %v11962_v44 }
0x191c   : > { %11417 = vmatpush3.bf16.msra.mxu1 %v11962_v44 }
0x191d   : > { %10338 = vmatprep.subr.msk.mxu1 %vm551_vm3, %v12528_v43 }
0x191e   : > { %10316 = vmatmul.mubr.msk.f32.vlgmr.msra.gmra.mrb[70].mxu0 %vm292_vm1, %v7021_v59  ;;  %v258_v59 = vld [vmem:[#allocation5 + $0x278] sm:$0xff] }
0x191f   : > { %11421 = vmatpush3.bf16.msra.mxu0 %v11937_v30 }
0x1920   : > { %11423 = vmatprep.subr.bf16.mxu0 %v11948_v34  ;;  %10339 = vmatpush3.msk.msra.mxu1 %vm551_vm3, %v12528_v43 }
0x1921   : > { %11438 = vmatprep.subr.bf16.mxu1 %v11756_v56 }
0x1923   : > { %11425 = vmatpush3.bf16.msra.mxu0 %v11948_v34 }
0x1924   : > { %11427 = vmatprep.subr.bf16.mxu0 %v11953_v37 }
0x1927   : > { %11429 = vmatpush3.bf16.msra.mxu0 %v11953_v37 }
0x1928   : > { %11431 = vmatprep.subr.bf16.mxu0 %v11957_v40 }
0x192b   : > { %11433 = vmatpush3.bf16.msra.mxu0 %v11957_v40  ;;  %v11653_v40 = vld [vmem:[#allocation5 + $0x30] ss:$0 sm:$0xff] }
0x192c   : > { %11435 = vmatprep.subr.bf16.mxu0 %v11964_v46 }
0x192f   : > { %11437 = vmatpush3.bf16.msra.mxu0 %v11964_v46 }
0x1930   : > { %10363 = vmatprep.subr.msk.mxu0 %vm551_vm3, %v12545_v51 }
0x1933   : > { %10364 = vmatpush3.msk.msra.mxu0 %vm551_vm3, %v12545_v51 }
0x1934   : > { %11442 = vmatprep.subr.bf16.mxu0 %v11756_v56 }
0x19dd   : > { %v6768_v9 = vpop.f32.mrb[68].mxu0  ;;  %v6838_v15 = vpop.f32.mrb[68].mxu1 }
0x19de   : > { %v6842_v18 = vmax.f32 %v6768_v9, %v6838_v15  ;;  %v10273_v19 = vpop.f32.mrb[69].mxu0  ;;  %v10296_v22 = vpop.f32.mrb[69].mxu1  ;;  %v260_v9 = vld [vmem:[#allocation5 + $0x288] sm:$0xff]  ;;  %v11519_v15 = vpack.c.bf16 %v259_v3, %v258_v59 }
0x19e0   : > { %v6844_v30 = vrot.slane %v6842_v18, 1 }
0x19e2   : > { %v6846_v31 = vmax.f32 %v6842_v18, %v6844_v30  ;;  %v261_v18 = vld [vmem:[#allocation5 + $0x290] sm:$0xff]  ;;  %v262_v30 = vld [vmem:[#allocation5 + $0x298] sm:$0xff] }
0x19e3   : > { %v11522_v22 = vpack.c.bf16 %v261_v18, %v260_v9 }
0x19e4   : > { %v6848_v34 = vrot.slane %v6846_v31, 2 }
0x19e6   : > { %6849 = vrot.lane.b32.xlu0 %v6848_v34, %s11760_s14 }
0x19f1   : > { %v10317_v37 = vpop.f32.mrb[70].mxu0 }
0x19f2   : > { %v7105_v44 = vadd.f32 %v11653_v40, %v10317_v37  ;;  %v7093_v46 = vpop.f32.mrb[71].mxu0  ;;  %v264_v37 = vld [vmem:[#allocation5 + $0x2a8] sm:$0xff] }
0x19f3   : > { %v7104_v43 = vadd.f32 %v11653_v40, %v7093_v46  ;;  %v265_v40 = vld [vmem:[#allocation5 + $0x2b0] sm:$0xff]  ;;  %v266_v46 = vld [vmem:[#allocation5 + $0x2b8] sm:$0xff] }
0x19f4   : > { %v7107_v1 = vmax.f32 %v7105_v44, 0.0  ;;  %v11528_v44 = vpack.c.bf16 %v265_v40, %v264_v37 }
0x19f5   : > { %v7106_v61 = vmax.f32 %v7104_v43, 0.0  ;;  %v267_v43 = vld [vmem:[#allocation5 + $0x2c0] sm:$0xff] }
0x19f7   : > { %10340 = vmatprep.mubr.msk.f32.mxu1 %vm544_vm4, %v7106_v61  ;;  %10365 = vmatprep.mubr.msk.f32.mxu0 %vm544_vm4, %v7106_v61  ;;  %v11531_v61 = vpack.c.bf16 %v267_v43, %v266_v46 }
0x19f8   : > { %10341 = vmatmul.mubr.msk.f32.vlgmr.msra.gmra.mrb[70].mxu1 %vm544_vm4, %v7107_v1  ;;  %10366 = vmatmul.mubr.msk.f32.vlgmr.msra.gmra.mrb[72].mxu0 %vm544_vm4, %v7107_v1  ;;  %v268_v1 = vld [vmem:[#allocation5 + $0x2c8] sm:$0xff] }
0x19f9   : > { %10372 = vmatprep.mubr.msk.f32.mxu1 %vm11757_vm5, %v11758_v57  ;;  %10379 = vmatprep.mubr.msk.f32.mxu0 %vm11757_vm5, %v11758_v57 }
0x1a58   : > { %v6850_v51 = vpop.permute.xlu0 %6849 }
0x1a59   : > { %v6852_v2 = vsel %vm1252_vm13, %v6846_v31, %v6850_v51  ;;  %v263_v31 = vld [vmem:[#allocation5 + $0x2a0] sm:$0xff]  ;;  %v269_v51 = vld [vmem:[#allocation5 + $0x2d0] sm:$0xff] }
0x1a5a   : > { %6853 = vst.msk [vmem:[#allocation2 + $0x6] sm:$0x1] %vm1254_vm14, %v6852_v2  ;;  %v11525_v34 = vpack.c.bf16 %v263_v31, %v262_v30  ;;  %v11534_v2 = vpack.c.bf16 %v269_v51, %v268_v1 }
0x1acb   : > { %v10342_v5 = vpop.f32.mrb[70].mxu1  ;;  %v10367_v12 = vpop.f32.mrb[72].mxu0 }
0x1acc   : > { %v7265_v14 = vmax.f32 %v10342_v5, %v10367_v12  ;;  %v7180_v48 = vpop.f32.mrb[71].mxu1  ;;  %v7255_v16 = vpop.f32.mrb[73].mxu0  ;;  %v270_v5 = vld [vmem:[#allocation5 + $0x2d8] sm:$0xff]  ;;  %v271_v12 = vld [vmem:[#allocation5 + $0x2e0] sm:$0xff] }
0x1acd   : > { %v7264_v26 = vmax.f32 %v7180_v48, %v7255_v16 }
0x1acf   : > { %v11439_v27 = vpack.c.bf16 %v7265_v14, %v7264_v26  ;;  %v11537_v14 = vpack.c.bf16 %v271_v12, %v270_v5 }
0x1ad1   : > { %11441 = vmatpush3.bf16.msk.msra.mxu1 %vm11998_vm7, %v11439_v27  ;;  %11445 = vmatpush3.bf16.msk.msra.mxu0 %vm11998_vm7, %v11439_v27  ;;  %v272_v27 = vld [vmem:[#allocation5 + $0x2e8] sm:$0xff] }
0x1ad2   : > { %11456 = vmatprep.subr.bf16.mxu0 %v11756_v56  ;;  %11446 = vmatprep.subr.bf16.mxu1 %v11756_v56 }
0x1ad4   : > { %10373 = vmatmul.mubr.msk.f32.vlgmr.msra.gmra.mrb[72].mxu1 %vm710_vm8, %v12571_v38  ;;  %10380 = vmatmul.mubr.msk.f32.vlgmr.msra.gmra.mrb[74].mxu0 %vm710_vm8, %v12575_v39 }
0x1ad5   : > { %11458 = vmatpush3.bf16.msra.mxu0 %v12010_v10  ;;  %11448 = vmatpush3.bf16.msra.mxu1 %v12012_v11 }
0x1ad6   : > { %11459 = vmatprep.subr.bf16.mxu0 %v11756_v56  ;;  %11449 = vmatprep.subr.bf16.mxu1 %v11756_v56 }
0x1ad7   : > { %10409 = vmatprep.mubr.msk.f32.mxu0 %vm11757_vm5, %v11758_v57  ;;  %10394 = vmatprep.mubr.msk.f32.mxu1 %vm11757_vm5, %v11758_v57 }
0x1ad9   : > { %11461 = vmatpush3.bf16.msra.mxu0 %v12022_v17  ;;  %11451 = vmatpush3.bf16.msra.mxu1 %v12024_v20 }
0x1ada   : > { %11462 = vmatprep.subr.bf16.mxu0 %v11756_v56  ;;  %11452 = vmatprep.subr.bf16.mxu1 %v11756_v56 }
0x1add   : > { %11465 = vmatpush3.bf16.msk.msra.mxu0 %vm12037_vm10, %v12041_v25  ;;  %11455 = vmatpush3.bf16.msk.msra.mxu1 %vm12037_vm10, %v12043_v28 }
0x1ade   : > { %11466 = vmatprep.subr.bf16.mxu1 %v11756_v56  ;;  %11476 = vmatprep.subr.bf16.mxu0 %v11756_v56 }
0x1ba7   : > { %v7335_v63 = vpop.f32.mrb[72].mxu1  ;;  %v7405_v10 = vpop.f32.mrb[74].mxu0 }
0x1ba8   : > { %v7409_v11 = vmax.f32 %v7335_v63, %v7405_v10  ;;  %v10374_v17 = vpop.f32.mrb[73].mxu1  ;;  %v10381_v20 = vpop.f32.mrb[75].mxu0  ;;  %v273_v63 = vld [vmem:[#allocation5 + $0x2f0] sm:$0xff] }
0x1ba9   : > { %v11540_v10 = vpack.c.bf16 %v273_v63, %v272_v27  ;;  %v276_v17 = vld [vmem:[#allocation5 + $0x308] sm:$0xff]  ;;  %v277_v20 = vld [vmem:[#allocation5 + $0x310] sm:$0xff] }
0x1baa   : > { %v7411_v38 = vrot.slane %v7409_v11, 1  ;;  %10410 = vmatmul.mubr.msk.f32.vlgmr.msra.gmra.mrb[76].mxu0 %vm863_vm11, %v7409_v11  ;;  %v7556_v25 = vrot.slane %v7409_v11, 2  ;;  %v275_v11 = vld [vmem:[#allocation5 + $0x300] sm:$0xff] }
0x1bab   : > { %11478 = vmatpush3.bf16.msra.mxu0 %v12076_v60  ;;  %10447 = vmatprep.mubr.msk.f32.mxu0 %vm11757_vm5, %v11758_v57 }
0x1bac   : > { %10395 = vmatmul.mubr.msk.f32.vlgmr.msra.gmra.mrb[74].mxu1 %vm863_vm11, %v7411_v38  ;;  %11479 = vmatprep.subr.bf16.mxu0 %v11756_v56  ;;  %v11543_v38 = vpack.c.bf16 %v276_v17, %v275_v11 }
0x1bad   : > { %11468 = vmatpush3.bf16.msra.mxu1 %v12053_v41  ;;  %10424 = vmatprep.mubr.msk.f32.mxu1 %vm11757_vm5, %v11758_v57 }
0x1bae   : > { %11469 = vmatprep.subr.bf16.mxu1 %v11756_v56 }
0x1baf   : > { %11481 = vmatpush3.bf16.msra.mxu0 %v12084_v4 }
0x1bb0   : > { %11482 = vmatprep.subr.bf16.mxu0 %v11756_v56 }
0x1bb1   : > { %11471 = vmatpush3.bf16.msra.mxu1 %v12060_v50 }
0x1bb2   : > { %11472 = vmatprep.subr.bf16.mxu1 %v11756_v56 }
0x1bb3   : > { %11484 = vmatpush3.bf16.msra.mxu0 %v12089_v23 }
0x1bb4   : > { %11485 = vmatprep.subr.bf16.mxu0 %v11756_v56 }
0x1bb5   : > { %11475 = vmatpush3.bf16.msk.msra.mxu1 %vm12037_vm10, %v12066_v53 }
0x1bb6   : > { %11491 = vmatprep.subr.bf16.mxu1 %v11756_v56 }
0x1bb7   : > { %11487 = vmatpush3.bf16.msra.mxu0 %v12100_v32  ;;  %v250_v32 = vld [vmem:[#allocation5 + $0x238] sm:$0xff] }
0x1bb8   : > { %10425 = vmatmul.mubr.msk.f32.vlgmr.msra.gmra.mrb[76].mxu1 %vm863_vm11, %v7556_v25  ;;  %11488 = vmatprep.subr.bf16.mxu0 %v11756_v56  ;;  %v278_v25 = vld [vmem:[#allocation5 + $0x318] sm:$0xff] }
0x1bb9   : > { %11493 = vmatpush3.bf16.msra.mxu1 %v12078_v62  ;;  %10470 = vmatprep.mubr.msk.f32.mxu1 %vm11757_vm5, %v11758_v57 }
0x1bba   : > { %11494 = vmatprep.subr.bf16.mxu1 %v11756_v56 }
0x1bbb   : > { %11490 = vmatpush3.bf16.msra.mxu0 %v12108_v42 }
0x1bbc   : > { %11506 = vmatprep.subr.bf16.mxu0 %v11756_v56 }
0x1bbd   : > { %11496 = vmatpush3.bf16.msra.mxu1 %v12086_v13 }
0x1bbe   : > { %11497 = vmatprep.subr.bf16.mxu1 %v11756_v56 }
0x1bc1   : > { %11499 = vmatpush3.bf16.msra.mxu1 %v12093_v24  ;;  %v249_v24 = vld [vmem:[#allocation5 + $0x230] sm:$0xff] }
0x1bc2   : > { %11500 = vmatprep.subr.bf16.mxu1 %v11756_v56  ;;  %v11507_v42 = vpack.c.bf16 %v250_v32, %v249_v24  ;;  %v8327_v32 = vld [vmem:[#allocation5 + $0x2f8] ss:$0 sm:$0xff] }
0x1bc5   : > { %11502 = vmatpush3.bf16.msra.mxu1 %v12102_v35  ;;  %v251_v35 = vld [vmem:[#allocation5 + $0x240] sm:$0xff] }
0x1bc6   : > { %11503 = vmatprep.subr.bf16.mxu1 %v11756_v56 }
0x1bc9   : > { %11505 = vmatpush3.bf16.msra.mxu1 %v12110_v45  ;;  %v252_v45 = vld [vmem:[#allocation5 + $0x248] sm:$0xff] }
0x1bca   : > { %11518 = vmatprep.subr.bf16.mxu1 %v11756_v56  ;;  %v11510_v39 = vpack.c.bf16 %v252_v45, %v251_v35 }
0x1c7d   : > { %v7552_v21 = vpop.f32.mrb[76].mxu0 }
0x1c7e   : > { %v10411_v28 = vpop.f32.mrb[77].mxu0 }
0x1c7f   : > { %v7480_v41 = vpop.f32.mrb[74].mxu1  ;;  %v279_v28 = vld [vmem:[#allocation5 + $0x320] sm:$0xff] }
0x1c80   : > { %v7553_v50 = vadd.f32 %v7552_v21, %v7480_v41  ;;  %v10396_v53 = vpop.f32.mrb[75].mxu1  ;;  %v11546_v21 = vpack.c.bf16 %v278_v25, %v277_v20  ;;  %v280_v41 = vld [vmem:[#allocation5 + $0x328] sm:$0xff] }
0x1c8b   : > { %v7625_v60 = vpop.f32.mrb[76].mxu1 }
0x1c8c   : > { %v7629_v62 = vadd.f32 %v7625_v60, %v7553_v50  ;;  %v10426_v4 = vpop.f32.mrb[77].mxu1  ;;  %v11549_v50 = vpack.c.bf16 %v280_v41, %v279_v28 }
0x1c8e   : > { %v7630_v13 = vadd.f32 %v12638_v29, %v7629_v62  ;;  %v253_v29 = vld [vmem:[#allocation5 + $0x250] sm:$0xff] }
0x1c8f   : > { %v11513_v33 = vpack.c.bf16 %v254_v49, %v253_v29 }
0x1c90   : > { %v7631_v23 = vmax.f32 %v7630_v13, 0.0  ;;  %v281_v13 = vld [vmem:[#allocation5 + $0x330] sm:$0xff] }
0x1c92   : > { %10448 = vmatmul.mubr.msk.f32.vlgmr.msra.gmra.mrb[78].mxu0 %vm1098_vm12, %v7631_v23  ;;  %10471 = vmatmul.mubr.msk.f32.vlgmr.msra.gmra.mrb[78].mxu1 %vm1098_vm12, %v7631_v23  ;;  %v282_v23 = vld [vmem:[#allocation5 + $0x338] sm:$0xff] }
0x1c93   : > { %10489 = vmatprep.mubr.msk.f32.mxu0 %vm11757_vm5, %v11758_v57  ;;  %10524 = vmatprep.mubr.msk.f32.mxu1 %vm11757_vm5, %v11758_v57  ;;  %v11552_v24 = vpack.c.bf16 %v282_v23, %v281_v13 }
0x1c94   : > { %11508 = vmatpush3.bf16.msra.mxu0 %v11507_v42  ;;  %11520 = vmatpush3.bf16.msra.mxu1 %v11519_v15 }
0x1c95   : > { %11509 = vmatprep.subr.bf16.mxu0 %v11756_v56  ;;  %11521 = vmatprep.subr.bf16.mxu1 %v11756_v56 }
0x1c98   : > { %11511 = vmatpush3.bf16.msra.mxu0 %v11510_v39  ;;  %11523 = vmatpush3.bf16.msra.mxu1 %v11522_v22 }
0x1c99   : > { %11512 = vmatprep.subr.bf16.mxu0 %v11756_v56  ;;  %11524 = vmatprep.subr.bf16.mxu1 %v11756_v56 }
0x1c9c   : > { %11514 = vmatpush3.bf16.msra.mxu0 %v11513_v33  ;;  %11526 = vmatpush3.bf16.msra.mxu1 %v11525_v34 }
0x1c9d   : > { %11515 = vmatprep.subr.bf16.mxu0 %v11756_v56  ;;  %11527 = vmatprep.subr.bf16.mxu1 %v11756_v56 }
0x1ca0   : > { %11517 = vmatpush3.bf16.msra.mxu0 %v11516_v7  ;;  %11529 = vmatpush3.bf16.msra.mxu1 %v11528_v44 }
0x1ca1   : > { %11542 = vmatprep.subr.bf16.mxu0 %v11756_v56  ;;  %11530 = vmatprep.subr.bf16.mxu1 %v11756_v56 }
0x1ca4   : > { %11532 = vmatpush3.bf16.msra.mxu1 %v11531_v61 }
0x1ca5   : > { %11533 = vmatprep.subr.bf16.mxu1 %v11756_v56 }
0x1ca8   : > { %11535 = vmatpush3.bf16.msra.mxu1 %v11534_v2 }
0x1ca9   : > { %11536 = vmatprep.subr.bf16.mxu1 %v11756_v56 }
0x1cac   : > { %11538 = vmatpush3.bf16.msra.mxu1 %v11537_v14 }
0x1cad   : > { %11539 = vmatprep.subr.bf16.mxu1 %v11756_v56 }
0x1cb0   : > { %11541 = vmatpush3.bf16.msra.mxu1 %v11540_v10 }
0x1d65   : > { %v7701_v6 = vpop.f32.mrb[78].mxu0  ;;  %v7771_v8 = vpop.f32.mrb[78].mxu1 }
0x1d66   : > { %v7775_v52 = vmax.f32 %v7701_v6, %v7771_v8  ;;  %v10449_v47 = vpop.f32.mrb[79].mxu0  ;;  %v10472_v54 = vpop.f32.mrb[79].mxu1 }
0x1d68   : > { %v7777_v55 = vrot.slane %v7775_v52, 1 }
0x1d6a   : > { %v7779_v58 = vmax.f32 %v7775_v52, %v7777_v55 }
0x1d6c   : > { %v7781_v19 = vrot.slane %v7779_v58, 2 }
0x1d6e   : > { %7782 = vrot.lane.b32.xlu1 %v7781_v19, %s11760_s14 }
0x1de0   : > { %v7783_v48 = vpop.permute.xlu1 %7782 }
0x1de1   : > { %v7785_v16 = vsel %vm1252_vm13, %v7779_v58, %v7783_v48 }
0x1de2   : > { %7786 = vst.msk [vmem:[#allocation2 + $0x7] sm:$0x1] %vm1254_vm14, %v7785_v16 }
0x1de9   : > { %v7787_v26 = vld [vmem:[#allocation2] sm:$0xff] }
0x1dea   : > { %10490 = vmatmul.mubr.msk.f32.vlgmr.msra.gmra.mrb[80].mxu0 %vm7792_vm15, %v7787_v26 }
0x1deb   : > { %10543 = vmatprep.mubr.msk.f32.mxu0 %vm11757_vm5, %v11758_v57  ;;  %11544 = vmatpush3.bf16.msra.mxu0 %v11543_v38  ;;  %v8325_v57 = vld [vmem:[#allocation5 + $0x270] ss:$0 sm:$0xff] }
0x1dec   : > { %11545 = vmatprep.subr.bf16.mxu0 %v11756_v56 }
0x1def   : > { %11547 = vmatpush3.bf16.msra.mxu0 %v11546_v21 }
0x1df0   : > { %11548 = vmatprep.subr.bf16.mxu0 %v11756_v56 }
0x1df3   : > { %11550 = vmatpush3.bf16.msra.mxu0 %v11549_v50 }
0x1df4   : > { %11551 = vmatprep.subr.bf16.mxu0 %v11756_v56  ;;  %v8328_v56 = vld [vmem:[#allocation5 + $0x340] ss:$0 sm:$0xff] }
0x1df7   : > { %11553 = vmatpush3.bf16.msra.mxu0 %v11552_v24 }
0x1ebd   : > { %v7862_v53 = vpop.f32.mrb[80].mxu0 }
0x1ebe   : > { %v7863_v60 = vadd.f32 %v8325_v57, %v7862_v53  ;;  %v10491_v62 = vpop.f32.mrb[81].mxu0 }
0x1ec0   : > { %v7866_v4 = vmax.f32 %v7863_v60, 0.0 }
0x1ec2   : > { %10525 = vmatmul.mubr.f32.vlgmr.msra.gmra.mrb[80].mxu1 %v7866_v4 }
0x1f95   : > { %v7937_v35 = vpop.f32.mrb[80].mxu1 }
0x1f96   : > { %v7938_v42 = vadd.f32 %v8327_v32, %v7937_v35  ;;  %v10526_v45 = vpop.f32.mrb[81].mxu1 }
0x1f98   : > { %v7941_v39 = vmax.f32 %v7938_v42, 0.0 }
0x1f9a   : > { %10544 = vmatmul.mubr.msk.f32.vlgmr.msra.gmra.mrb[82].mxu0 %vm7792_vm15, %v7941_v39 }
0x206d   : > { %v8015_v29 = vpop.f32.mrb[82].mxu0 }
0x206e   : > { %v8016_v49 = vadd.f32 %v8328_v56, %v8015_v29  ;;  %v10545_v33 = vpop.f32.mrb[83].mxu0 }
0x2070   : > { %8019 = vmax.xlane.f32.xlu0 %v8016_v49 }
0x20fd   : > { %v8020_v36 = vpop.xlane.xlu0 %8019 }
0x20fe   : > { %v8021_v0 = vsub.f32 %v8016_v49, %v8020_v36 }
0x2100   : > { %v8022_v7 = vmul.f32 1.442695, %v8021_v0 }
0x2102   : > { %11643 = vpow2.f32 %v8022_v7 }
0x210c   : > { %v11644_v6 = vpop.eup %11643 }
0x210d   : > { %8024 = vadd.xlane.f32.xlu1 %v11644_v6 }
0x219a   : > { %v8025_v8 = vpop.xlane.xlu1 %8024 }
0x219b   : > { %11645 = vlog2.f32 %v8025_v8 }
0x21a5   : > { %v11646_v52 = vpop.eup %11645 }
0x21a6   : > { %v8027_v47 = vmul.f32 0.6931472, %v11646_v52 }
0x21a8   : > { %v8028_v54 = vsub.f32 %v8021_v0, %v8027_v47 }
0x21aa   : > { %8029 = vst [vmem:[%s178_s18] sm:$0xff] %v8028_v54 }
0x21ab PF: > { %p13_p1 = scmp.ge.s32.totalorder %s11820_s19, 4   ;;  %s13081_s9 = smov %s11742_s10 }
0x21ac   : > { %s13082_s10 = smov %s11746_s11  ;;  %s13083_s11 = smov %s11849_s6 }
0x21ad   : > { %s13084_s12 = smov %s11820_s19  ;;  %15 = sbr.rel (!%p13_p1) target bundleno = 4 (0x4), region = 79 }
0x21b4   :  { %8049 = vsyncpa [#allocation4], 1 }
0x21b5   :  { %8051 = vsyncpa [#allocation4 + $0x1], 1 }
0x21b6   :  { %8052 = vsyncpa [#allocation6], 1 }

</bundles_post_ra>
